<compile_context>
chip_gen: v5e
topology: v5e:2x2
jax: 0.10.0
libtpu: 0.0.40
codegen_flags: <defaults>
</compile_context>

<pallas_src>
import functools

import jax
import jax.numpy as jnp
import numpy as np
from jax.experimental import pallas as pl
from jax.experimental.pallas import tpu as pltpu


# ----------------------------------------------------------------------------
# Fused RDB kernel: one grid step per batch element.
# ----------------------------------------------------------------------------
def _rdb_kernel(x_ref, mask_ref, w_ref, b_ref, wl_ref, bl_ref, o_ref, feat_ref,
                *, Wp, G0, G, C):
    """Layout: channels on sublanes, flattened padded spatial on lanes.

    x_ref:    (1, G0, S)      zero-padded input image, spatial flattened
    mask_ref: (1, S)          1.0 at interior pixels, 0.0 on padding ring / tail
    w_ref:    (C*9*G, Ctot)   per-(layer, tap) blocks W_t^T, zero-padded over cin
    b_ref:    (C*G, 1)        conv biases as column vectors
    wl_ref:   (G0, Ctot)      LFF 1x1 weight, transposed
    bl_ref:   (G0, 1)         LFF bias
    o_ref:    (1, G0, S)      output (padded/flattened; wrapper slices interior)
    feat_ref: (Ctot, S) VMEM  dense-block feature; padding ring kept at zero
    """
    f32 = jnp.float32
    Ctot = G0 + C * G
    S = feat_ref.shape[-1]

    mask = mask_ref[...]                       # (1, S)
    xv = x_ref[0].astype(f32)                  # (G0, S), already zero-padded

    # Fill the scratch: x into the first G0 channel rows, zeros elsewhere
    # (aligned 8-sublane, full-lane-width stores; re-done per step so there is
    # no cross-step state and the batch axis stays truly "parallel").
    feat_ref[G0:Ctot, :] = jnp.zeros((Ctot - G0, S), f32)
    feat_ref[0:G0, :] = xv

    for i in range(C):
        feat = feat_ref[...]                   # (Ctot, S) -- one VMEM read per layer
        acc = jnp.zeros((G, S), f32)
        for t in range(9):
            dy, dx = divmod(t, 3)
            # tap[q] = feat[q - (Wp+1) + dy*Wp + dx]; wrap-around only lands on
            # padding-ring / tail columns which are masked to zero below.
            shift = (Wp + 1 - dy * Wp - dx) % S
            tap = pltpu.roll(feat, shift, axis=1)                       # XLU
            wt = w_ref[(i * 9 + t) * G:(i * 9 + t + 1) * G, :]          # (G, Ctot)
            acc = acc + jnp.dot(wt, tap, preferred_element_type=f32)    # MXU
        y = acc + b_ref[i * G:(i + 1) * G, :]          # bias (G,1) bcast over lanes
        y = jnp.where(y > 0, y, 0.1 * y)               # LeakyReLU(0.1)
        y = y * mask                                   # keep zero padding ring
        # In-place channel growth: aligned 8-sublane, full-lane write.
        feat_ref[G0 + i * G:G0 + (i + 1) * G, :] = y

    # LFF 1x1 conv + residual epilogue (residual reuses the resident x value).
    feat = feat_ref[...]
    out = jnp.dot(wl_ref[...], feat, preferred_element_type=f32)        # (G0, S)
    out = out + bl_ref[...] + xv
    o_ref[0] = out.astype(o_ref.dtype)                 # lane-dense (8, 384) store


# ----------------------------------------------------------------------------
# Wrapper: packs params, pads the input once, calls the fused kernel.
# ----------------------------------------------------------------------------
def rdb_forward(params, x_nchw):
    N, G0, H, W = x_nchw.shape
    C = len(params["convs"])
    G = params["convs"][0][0].shape[-1]
    Ctot = G0 + C * G
    Hp, Wp = H + 2, W + 2
    s_real = Hp * Wp
    S = -(-s_real // 128) * 128                 # lane-dense flattened spatial

    # Pack all conv weights into one slab: per (layer, tap) a (G, Ctot) block
    # with input channels >= cin zero-padded (those feature rows are zero
    # anyway when the layer runs).  Biases -> one (C*G, 1) column.
    w_blocks, b_rows = [], []
    for i, (w, b) in enumerate(params["convs"]):        # w: (3,3,cin,G) HWIO
        cin = G0 + i * G
        wt = jnp.transpose(w, (0, 1, 3, 2))             # (3,3,G,cin)
        wt = jnp.pad(wt, ((0, 0), (0, 0), (0, 0), (0, Ctot - cin)))
        w_blocks.append(wt.reshape(9 * G, Ctot))
        b_rows.append(b.reshape(G, 1))
    w_conv = jnp.concatenate(w_blocks, axis=0).astype(jnp.float32)   # (C*9*G, Ctot)
    b_conv = jnp.concatenate(b_rows, axis=0).astype(jnp.float32)     # (C*G, 1)
    w_lff, b_lff = params["lff"]                                     # (Ctot,G0),(G0,)
    wl = jnp.transpose(w_lff).astype(jnp.float32)                    # (G0, Ctot)
    bl = b_lff.reshape(G0, 1).astype(jnp.float32)

    # Zero-pad the INPUT once (tiny, input-only); per-layer padding is free
    # because the scratch's padding ring stays zero inside the kernel.
    x_pad = jnp.pad(x_nchw, ((0, 0), (0, 0), (1, 1), (1, 1)))
    x_flat = x_pad.reshape(N, G0, s_real)
    x_flat = jnp.pad(x_flat, ((0, 0), (0, 0), (0, S - s_real)))      # (N, G0, S)

    m = np.zeros((Hp, Wp), np.float32)
    m[1:H + 1, 1:W + 1] = 1.0
    mask = jnp.asarray(np.pad(m.reshape(1, s_real), ((0, 0), (0, S - s_real))))

    kernel = functools.partial(_rdb_kernel, Wp=Wp, G0=G0, G=G, C=C)

    out_flat = pl.pallas_call(
        kernel,
        out_shape=jax.ShapeDtypeStruct((N, G0, S), x_nchw.dtype),
        grid_spec=pltpu.PrefetchScalarGridSpec(
            num_scalar_prefetch=0,
            grid=(N,),
            in_specs=[
                pl.BlockSpec((1, G0, S), lambda n: (n, 0, 0)),        # x
                pl.BlockSpec((1, S), lambda n: (0, 0)),               # interior mask
                pl.BlockSpec((C * 9 * G, Ctot), lambda n: (0, 0)),    # conv weights
                pl.BlockSpec((C * G, 1), lambda n: (0, 0)),           # conv biases
                pl.BlockSpec((G0, Ctot), lambda n: (0, 0)),           # LFF weight^T
                pl.BlockSpec((G0, 1), lambda n: (0, 0)),              # LFF bias
            ],
            out_specs=pl.BlockSpec((1, G0, S), lambda n: (n, 0, 0)),
            scratch_shapes=[pltpu.VMEM((Ctot, S), jnp.float32)],
        ),
        compiler_params=pltpu.CompilerParams(
            dimension_semantics=("parallel",),       # N=2 -> balanced on v7x's 2 TCs
            vmem_limit_bytes=32 * 1024 * 1024,
        ),
    )(x_flat, mask, w_conv, b_conv, wl, bl)

    # Metadata-cheap post-slice back to NCHW interior.
    out = out_flat[:, :, :s_real].reshape(N, G0, Hp, Wp)[:, :, 1:H + 1, 1:W + 1]
    return out


# ----------------------------------------------------------------------------
# Parameter init (PyTorch Conv2d-style uniform init) + pure-JAX reference.
# ----------------------------------------------------------------------------
def init_rdb_params(key, G0, C, G):
    params = {"convs": [], "lff": None}
    for i in range(C):
        cin = G0 + i * G
        key, kw, kb = jax.random.split(key, 3)
        bound = 1.0 / np.sqrt(cin * 3 * 3)
        w = jax.random.uniform(kw, (3, 3, cin, G), jnp.float32, -bound, bound)
        b = jax.random.uniform(kb, (G,), jnp.float32, -bound, bound)
        params["convs"].append((w, b))
    ctot = G0 + C * G
    key, kw, kb = jax.random.split(key, 3)
    bound = 1.0 / np.sqrt(ctot)
    w = jax.random.uniform(kw, (ctot, G0), jnp.float32, -bound, bound)
    b = jax.random.uniform(kb, (G0,), jnp.float32, -bound, bound)
    params["lff"] = (w, b)
    return params


def rdb_reference(params, x_nchw):
    x = jnp.transpose(x_nchw, (0, 2, 3, 1))            # NHWC
    out = x
    for (w, b) in params["convs"]:
        y = jax.lax.conv_general_dilated(
            out, w, window_strides=(1, 1), padding="SAME",
            dimension_numbers=("NHWC", "HWIO", "NHWC"))
        y = y + b
        y = jnp.where(y > 0, y, 0.1 * y)
        out = jnp.concatenate([out, y], axis=-1)
    w_lff, b_lff = params["lff"]
    lff = jnp.einsum("nhwc,co->nhwo", out, w_lff) + b_lff
    res = lff + x
    return jnp.transpose(res, (0, 3, 1, 2))            # back to NCHW


if __name__ == "__main__":
    # Small RDB config: G0=8 input channels, C=3 dense layers of growth G=8.
    G0, C, G = 8, 3, 8
    N, H, W = 2, 16, 16

    key = jax.random.PRNGKey(0)
    key, kx = jax.random.split(key)
    x_nchw = jax.random.normal(kx, (N, G0, H, W), jnp.float32)   # PyTorch layout

    params = init_rdb_params(key, G0, C, G)

    out = jax.block_until_ready(rdb_forward(params, x_nchw))
    ref = rdb_reference(params, x_nchw)

    assert out.shape == (N, G0, H, W)
    np.testing.assert_allclose(np.asarray(out), np.asarray(ref),
                               rtol=1e-4, atol=1e-4)
    print("KERNEL_OK")
</pallas_src>

<mosaic_0001>
module attributes {stable_mosaic.version = 11 : i64} {
  func.func @_rdb_kernel(%arg0: i32, %arg1: memref<1x8x384xf32, #tpu.memory_space<vmem>>, %arg2: memref<1x384xf32, #tpu.memory_space<vmem>>, %arg3: memref<216x32xf32, #tpu.memory_space<vmem>>, %arg4: memref<24x1xf32, #tpu.memory_space<vmem>>, %arg5: memref<8x32xf32, #tpu.memory_space<vmem>>, %arg6: memref<8x1xf32, #tpu.memory_space<vmem>>, %arg7: memref<1x8x384xf32, #tpu.memory_space<vmem>>, %arg8: memref<32x384xf32, #tpu.memory_space<vmem>>) attributes {dimension_semantics = [#tpu.dimension_semantics<parallel>], iteration_bounds = array<i64: 2>, scalar_prefetch = 0 : i64, scratch_operands = 1 : i64, tpu.core_type = #tpu.core_type<tc>, window_params = [{transform_indices = @transform_0, window_bounds = array<i64: 1, 8, 384>}, {pipeline_mode = #tpu.pipeline_mode<synchronous>, transform_indices = @transform_1, window_bounds = array<i64: 1, 384>}, {pipeline_mode = #tpu.pipeline_mode<synchronous>, transform_indices = @transform_2, window_bounds = array<i64: 216, 32>}, {pipeline_mode = #tpu.pipeline_mode<synchronous>, transform_indices = @transform_3, window_bounds = array<i64: 24, 1>}, {pipeline_mode = #tpu.pipeline_mode<synchronous>, transform_indices = @transform_4, window_bounds = array<i64: 8, 32>}, {pipeline_mode = #tpu.pipeline_mode<synchronous>, transform_indices = @transform_5, window_bounds = array<i64: 8, 1>}, {transform_indices = @transform_6, window_bounds = array<i64: 1, 8, 384>}]} {
    %c0 = arith.constant 0 : index
    %c0_0 = arith.constant 0 : index
    %0 = vector.load %arg2[%c0, %c0_0] : memref<1x384xf32, #tpu.memory_space<vmem>>, vector<1x384xf32>
    %c0_1 = arith.constant 0 : index
    %c0_2 = arith.constant 0 : index
    %c0_3 = arith.constant 0 : index
    %1 = vector.load %arg1[%c0_1, %c0_2, %c0_3] : memref<1x8x384xf32, #tpu.memory_space<vmem>>, vector<1x8x384xf32>
    %2 = vector.shape_cast %1 : vector<1x8x384xf32> to vector<8x384xf32>
    %cst = arith.constant 0.000000e+00 : f32
    %3 = vector.broadcast %cst : f32 to vector<24x384xf32>
    %c8 = arith.constant 8 : index
    %c0_4 = arith.constant 0 : index
    %4 = vector.load %arg8[%c8, %c0_4] : memref<32x384xf32, #tpu.memory_space<vmem>>, vector<24x384xf32>
    tpu.vector_store %arg8[%c8, %c0_4], %3 {strides = array<i32>} : memref<32x384xf32, #tpu.memory_space<vmem>>, vector<24x384xf32>,
    %c0_5 = arith.constant 0 : index
    %c0_6 = arith.constant 0 : index
    %5 = vector.load %arg8[%c0_5, %c0_6] : memref<32x384xf32, #tpu.memory_space<vmem>>, vector<8x384xf32>
    tpu.vector_store %arg8[%c0_5, %c0_6], %2 {strides = array<i32>} : memref<32x384xf32, #tpu.memory_space<vmem>>, vector<8x384xf32>,
    %c0_7 = arith.constant 0 : index
    %c0_8 = arith.constant 0 : index
    %6 = vector.load %arg8[%c0_7, %c0_8] : memref<32x384xf32, #tpu.memory_space<vmem>>, vector<32x384xf32>
    %cst_9 = arith.constant 0.000000e+00 : f32
    %7 = vector.broadcast %cst_9 : f32 to vector<8x384xf32>
    %c19_i32 = arith.constant 19 : i32
    %8 = tpu.dynamic_rotate %6 by %c19_i32 dim 1 : vector<32x384xf32>, i32 -> vector<32x384xf32>
    %c0_10 = arith.constant 0 : index
    %c0_11 = arith.constant 0 : index
    %9 = vector.load %arg3[%c0_10, %c0_11] : memref<216x32xf32, #tpu.memory_space<vmem>>, vector<8x32xf32>
    %cst_12 = arith.constant dense<0.000000e+00> : vector<8x384xf32>
    %10 = tpu.matmul %9, %8, %cst_12 {dimension_numbers = #tpu.dot_dimension_numbers<[1], [0], [0], [1], [0, 0, 1, 1], [], []>} : vector<8x32xf32>, vector<32x384xf32>, vector<8x384xf32> -> vector<8x384xf32>
    %11 = arith.addf %7, %10 : vector<8x384xf32>
    %c18_i32 = arith.constant 18 : i32
    %12 = tpu.dynamic_rotate %6 by %c18_i32 dim 1 : vector<32x384xf32>, i32 -> vector<32x384xf32>
    %c8_13 = arith.constant 8 : index
    %c0_14 = arith.constant 0 : index
    %13 = vector.load %arg3[%c8_13, %c0_14] : memref<216x32xf32, #tpu.memory_space<vmem>>, vector<8x32xf32>
    %cst_15 = arith.constant dense<0.000000e+00> : vector<8x384xf32>
    %14 = tpu.matmul %13, %12, %cst_15 {dimension_numbers = #tpu.dot_dimension_numbers<[1], [0], [0], [1], [0, 0, 1, 1], [], []>} : vector<8x32xf32>, vector<32x384xf32>, vector<8x384xf32> -> vector<8x384xf32>
    %15 = arith.addf %11, %14 : vector<8x384xf32>
    %c17_i32 = arith.constant 17 : i32
    %16 = tpu.dynamic_rotate %6 by %c17_i32 dim 1 : vector<32x384xf32>, i32 -> vector<32x384xf32>
    %c16 = arith.constant 16 : index
    %c0_16 = arith.constant 0 : index
    %17 = vector.load %arg3[%c16, %c0_16] : memref<216x32xf32, #tpu.memory_space<vmem>>, vector<8x32xf32>
    %cst_17 = arith.constant dense<0.000000e+00> : vector<8x384xf32>
    %18 = tpu.matmul %17, %16, %cst_17 {dimension_numbers = #tpu.dot_dimension_numbers<[1], [0], [0], [1], [0, 0, 1, 1], [], []>} : vector<8x32xf32>, vector<32x384xf32>, vector<8x384xf32> -> vector<8x384xf32>
    %19 = arith.addf %15, %18 : vector<8x384xf32>
    %c1_i32 = arith.constant 1 : i32
    %20 = tpu.dynamic_rotate %6 by %c1_i32 dim 1 : vector<32x384xf32>, i32 -> vector<32x384xf32>
    %c24 = arith.constant 24 : index
    %c0_18 = arith.constant 0 : index
    %21 = vector.load %arg3[%c24, %c0_18] : memref<216x32xf32, #tpu.memory_space<vmem>>, vector<8x32xf32>
    %cst_19 = arith.constant dense<0.000000e+00> : vector<8x384xf32>
    %22 = tpu.matmul %21, %20, %cst_19 {dimension_numbers = #tpu.dot_dimension_numbers<[1], [0], [0], [1], [0, 0, 1, 1], [], []>} : vector<8x32xf32>, vector<32x384xf32>, vector<8x384xf32> -> vector<8x384xf32>
    %23 = arith.addf %19, %22 : vector<8x384xf32>
    %c0_i32 = arith.constant 0 : i32
    %24 = tpu.dynamic_rotate %6 by %c0_i32 dim 1 : vector<32x384xf32>, i32 -> vector<32x384xf32>
    %c32 = arith.constant 32 : index
    %c0_20 = arith.constant 0 : index
    %25 = vector.load %arg3[%c32, %c0_20] : memref<216x32xf32, #tpu.memory_space<vmem>>, vector<8x32xf32>
    %cst_21 = arith.constant dense<0.000000e+00> : vector<8x384xf32>
    %26 = tpu.matmul %25, %24, %cst_21 {dimension_numbers = #tpu.dot_dimension_numbers<[1], [0], [0], [1], [0, 0, 1, 1], [], []>} : vector<8x32xf32>, vector<32x384xf32>, vector<8x384xf32> -> vector<8x384xf32>
    %27 = arith.addf %23, %26 : vector<8x384xf32>
    %c383_i32 = arith.constant 383 : i32
    %28 = tpu.dynamic_rotate %6 by %c383_i32 dim 1 : vector<32x384xf32>, i32 -> vector<32x384xf32>
    %c40 = arith.constant 40 : index
    %c0_22 = arith.constant 0 : index
    %29 = vector.load %arg3[%c40, %c0_22] : memref<216x32xf32, #tpu.memory_space<vmem>>, vector<8x32xf32>
    %cst_23 = arith.constant dense<0.000000e+00> : vector<8x384xf32>
    %30 = tpu.matmul %29, %28, %cst_23 {dimension_numbers = #tpu.dot_dimension_numbers<[1], [0], [0], [1], [0, 0, 1, 1], [], []>} : vector<8x32xf32>, vector<32x384xf32>, vector<8x384xf32> -> vector<8x384xf32>
    %31 = arith.addf %27, %30 : vector<8x384xf32>
    %c367_i32 = arith.constant 367 : i32
    %32 = tpu.dynamic_rotate %6 by %c367_i32 dim 1 : vector<32x384xf32>, i32 -> vector<32x384xf32>
    %c48 = arith.constant 48 : index
    %c0_24 = arith.constant 0 : index
    %33 = vector.load %arg3[%c48, %c0_24] : memref<216x32xf32, #tpu.memory_space<vmem>>, vector<8x32xf32>
    %cst_25 = arith.constant dense<0.000000e+00> : vector<8x384xf32>
    %34 = tpu.matmul %33, %32, %cst_25 {dimension_numbers = #tpu.dot_dimension_numbers<[1], [0], [0], [1], [0, 0, 1, 1], [], []>} : vector<8x32xf32>, vector<32x384xf32>, vector<8x384xf32> -> vector<8x384xf32>
    %35 = arith.addf %31, %34 : vector<8x384xf32>
    %c366_i32 = arith.constant 366 : i32
    %36 = tpu.dynamic_rotate %6 by %c366_i32 dim 1 : vector<32x384xf32>, i32 -> vector<32x384xf32>
    %c56 = arith.constant 56 : index
    %c0_26 = arith.constant 0 : index
    %37 = vector.load %arg3[%c56, %c0_26] : memref<216x32xf32, #tpu.memory_space<vmem>>, vector<8x32xf32>
    %cst_27 = arith.constant dense<0.000000e+00> : vector<8x384xf32>
    %38 = tpu.matmul %37, %36, %cst_27 {dimension_numbers = #tpu.dot_dimension_numbers<[1], [0], [0], [1], [0, 0, 1, 1], [], []>} : vector<8x32xf32>, vector<32x384xf32>, vector<8x384xf32> -> vector<8x384xf32>
    %39 = arith.addf %35, %38 : vector<8x384xf32>
    %c365_i32 = arith.constant 365 : i32
    %40 = tpu.dynamic_rotate %6 by %c365_i32 dim 1 : vector<32x384xf32>, i32 -> vector<32x384xf32>
    %c64 = arith.constant 64 : index
    %c0_28 = arith.constant 0 : index
    %41 = vector.load %arg3[%c64, %c0_28] : memref<216x32xf32, #tpu.memory_space<vmem>>, vector<8x32xf32>
    %cst_29 = arith.constant dense<0.000000e+00> : vector<8x384xf32>
    %42 = tpu.matmul %41, %40, %cst_29 {dimension_numbers = #tpu.dot_dimension_numbers<[1], [0], [0], [1], [0, 0, 1, 1], [], []>} : vector<8x32xf32>, vector<32x384xf32>, vector<8x384xf32> -> vector<8x384xf32>
    %43 = arith.addf %39, %42 : vector<8x384xf32>
    %c0_30 = arith.constant 0 : index
    %c0_31 = arith.constant 0 : index
    %44 = vector.load %arg4[%c0_30, %c0_31] : memref<24x1xf32, #tpu.memory_space<vmem>>, vector<8x1xf32>
    %45 = vector.broadcast %44 : vector<8x1xf32> to vector<8x384xf32>
    %46 = arith.addf %43, %45 : vector<8x384xf32>
    %cst_32 = arith.constant 0.000000e+00 : f32
    %47 = vector.broadcast %cst_32 : f32 to vector<8x384xf32>
    %48 = arith.cmpf ogt, %46, %47 : vector<8x384xf32>
    %cst_33 = arith.constant 1.000000e-01 : f32
    %49 = vector.broadcast %cst_33 : f32 to vector<8x384xf32>
    %50 = arith.mulf %49, %46 : vector<8x384xf32>
    %51 = arith.select %48, %46, %50 : vector<8x384xi1>, vector<8x384xf32>
    %52 = vector.broadcast %0 : vector<1x384xf32> to vector<8x384xf32>
    %53 = arith.mulf %51, %52 : vector<8x384xf32>
    %c8_34 = arith.constant 8 : index
    %c0_35 = arith.constant 0 : index
    %54 = vector.load %arg8[%c8_34, %c0_35] : memref<32x384xf32, #tpu.memory_space<vmem>>, vector<8x384xf32>
    tpu.vector_store %arg8[%c8_34, %c0_35], %53 {strides = array<i32>} : memref<32x384xf32, #tpu.memory_space<vmem>>, vector<8x384xf32>,
    %c0_36 = arith.constant 0 : index
    %c0_37 = arith.constant 0 : index
    %55 = vector.load %arg8[%c0_36, %c0_37] : memref<32x384xf32, #tpu.memory_space<vmem>>, vector<32x384xf32>
    %cst_38 = arith.constant 0.000000e+00 : f32
    %56 = vector.broadcast %cst_38 : f32 to vector<8x384xf32>
    %c19_i32_39 = arith.constant 19 : i32
    %57 = tpu.dynamic_rotate %55 by %c19_i32_39 dim 1 : vector<32x384xf32>, i32 -> vector<32x384xf32>
    %c72 = arith.constant 72 : index
    %c0_40 = arith.constant 0 : index
    %58 = vector.load %arg3[%c72, %c0_40] : memref<216x32xf32, #tpu.memory_space<vmem>>, vector<8x32xf32>
    %cst_41 = arith.constant dense<0.000000e+00> : vector<8x384xf32>
    %59 = tpu.matmul %58, %57, %cst_41 {dimension_numbers = #tpu.dot_dimension_numbers<[1], [0], [0], [1], [0, 0, 1, 1], [], []>} : vector<8x32xf32>, vector<32x384xf32>, vector<8x384xf32> -> vector<8x384xf32>
    %60 = arith.addf %56, %59 : vector<8x384xf32>
    %c18_i32_42 = arith.constant 18 : i32
    %61 = tpu.dynamic_rotate %55 by %c18_i32_42 dim 1 : vector<32x384xf32>, i32 -> vector<32x384xf32>
    %c80 = arith.constant 80 : index
    %c0_43 = arith.constant 0 : index
    %62 = vector.load %arg3[%c80, %c0_43] : memref<216x32xf32, #tpu.memory_space<vmem>>, vector<8x32xf32>
    %cst_44 = arith.constant dense<0.000000e+00> : vector<8x384xf32>
    %63 = tpu.matmul %62, %61, %cst_44 {dimension_numbers = #tpu.dot_dimension_numbers<[1], [0], [0], [1], [0, 0, 1, 1], [], []>} : vector<8x32xf32>, vector<32x384xf32>, vector<8x384xf32> -> vector<8x384xf32>
    %64 = arith.addf %60, %63 : vector<8x384xf32>
    %c17_i32_45 = arith.constant 17 : i32
    %65 = tpu.dynamic_rotate %55 by %c17_i32_45 dim 1 : vector<32x384xf32>, i32 -> vector<32x384xf32>
    %c88 = arith.constant 88 : index
    %c0_46 = arith.constant 0 : index
    %66 = vector.load %arg3[%c88, %c0_46] : memref<216x32xf32, #tpu.memory_space<vmem>>, vector<8x32xf32>
    %cst_47 = arith.constant dense<0.000000e+00> : vector<8x384xf32>
    %67 = tpu.matmul %66, %65, %cst_47 {dimension_numbers = #tpu.dot_dimension_numbers<[1], [0], [0], [1], [0, 0, 1, 1], [], []>} : vector<8x32xf32>, vector<32x384xf32>, vector<8x384xf32> -> vector<8x384xf32>
    %68 = arith.addf %64, %67 : vector<8x384xf32>
    %c1_i32_48 = arith.constant 1 : i32
    %69 = tpu.dynamic_rotate %55 by %c1_i32_48 dim 1 : vector<32x384xf32>, i32 -> vector<32x384xf32>
    %c96 = arith.constant 96 : index
    %c0_49 = arith.constant 0 : index
    %70 = vector.load %arg3[%c96, %c0_49] : memref<216x32xf32, #tpu.memory_space<vmem>>, vector<8x32xf32>
    %cst_50 = arith.constant dense<0.000000e+00> : vector<8x384xf32>
    %71 = tpu.matmul %70, %69, %cst_50 {dimension_numbers = #tpu.dot_dimension_numbers<[1], [0], [0], [1], [0, 0, 1, 1], [], []>} : vector<8x32xf32>, vector<32x384xf32>, vector<8x384xf32> -> vector<8x384xf32>
    %72 = arith.addf %68, %71 : vector<8x384xf32>
    %c0_i32_51 = arith.constant 0 : i32
    %73 = tpu.dynamic_rotate %55 by %c0_i32_51 dim 1 : vector<32x384xf32>, i32 -> vector<32x384xf32>
    %c104 = arith.constant 104 : index
    %c0_52 = arith.constant 0 : index
    %74 = vector.load %arg3[%c104, %c0_52] : memref<216x32xf32, #tpu.memory_space<vmem>>, vector<8x32xf32>
    %cst_53 = arith.constant dense<0.000000e+00> : vector<8x384xf32>
    %75 = tpu.matmul %74, %73, %cst_53 {dimension_numbers = #tpu.dot_dimension_numbers<[1], [0], [0], [1], [0, 0, 1, 1], [], []>} : vector<8x32xf32>, vector<32x384xf32>, vector<8x384xf32> -> vector<8x384xf32>
    %76 = arith.addf %72, %75 : vector<8x384xf32>
    %c383_i32_54 = arith.constant 383 : i32
    %77 = tpu.dynamic_rotate %55 by %c383_i32_54 dim 1 : vector<32x384xf32>, i32 -> vector<32x384xf32>
    %c112 = arith.constant 112 : index
    %c0_55 = arith.constant 0 : index
    %78 = vector.load %arg3[%c112, %c0_55] : memref<216x32xf32, #tpu.memory_space<vmem>>, vector<8x32xf32>
    %cst_56 = arith.constant dense<0.000000e+00> : vector<8x384xf32>
    %79 = tpu.matmul %78, %77, %cst_56 {dimension_numbers = #tpu.dot_dimension_numbers<[1], [0], [0], [1], [0, 0, 1, 1], [], []>} : vector<8x32xf32>, vector<32x384xf32>, vector<8x384xf32> -> vector<8x384xf32>
    %80 = arith.addf %76, %79 : vector<8x384xf32>
    %c367_i32_57 = arith.constant 367 : i32
    %81 = tpu.dynamic_rotate %55 by %c367_i32_57 dim 1 : vector<32x384xf32>, i32 -> vector<32x384xf32>
    %c120 = arith.constant 120 : index
    %c0_58 = arith.constant 0 : index
    %82 = vector.load %arg3[%c120, %c0_58] : memref<216x32xf32, #tpu.memory_space<vmem>>, vector<8x32xf32>
    %cst_59 = arith.constant dense<0.000000e+00> : vector<8x384xf32>
    %83 = tpu.matmul %82, %81, %cst_59 {dimension_numbers = #tpu.dot_dimension_numbers<[1], [0], [0], [1], [0, 0, 1, 1], [], []>} : vector<8x32xf32>, vector<32x384xf32>, vector<8x384xf32> -> vector<8x384xf32>
    %84 = arith.addf %80, %83 : vector<8x384xf32>
    %c366_i32_60 = arith.constant 366 : i32
    %85 = tpu.dynamic_rotate %55 by %c366_i32_60 dim 1 : vector<32x384xf32>, i32 -> vector<32x384xf32>
    %c128 = arith.constant 128 : index
    %c0_61 = arith.constant 0 : index
    %86 = vector.load %arg3[%c128, %c0_61] : memref<216x32xf32, #tpu.memory_space<vmem>>, vector<8x32xf32>
    %cst_62 = arith.constant dense<0.000000e+00> : vector<8x384xf32>
    %87 = tpu.matmul %86, %85, %cst_62 {dimension_numbers = #tpu.dot_dimension_numbers<[1], [0], [0], [1], [0, 0, 1, 1], [], []>} : vector<8x32xf32>, vector<32x384xf32>, vector<8x384xf32> -> vector<8x384xf32>
    %88 = arith.addf %84, %87 : vector<8x384xf32>
    %c365_i32_63 = arith.constant 365 : i32
    %89 = tpu.dynamic_rotate %55 by %c365_i32_63 dim 1 : vector<32x384xf32>, i32 -> vector<32x384xf32>
    %c136 = arith.constant 136 : index
    %c0_64 = arith.constant 0 : index
    %90 = vector.load %arg3[%c136, %c0_64] : memref<216x32xf32, #tpu.memory_space<vmem>>, vector<8x32xf32>
    %cst_65 = arith.constant dense<0.000000e+00> : vector<8x384xf32>
    %91 = tpu.matmul %90, %89, %cst_65 {dimension_numbers = #tpu.dot_dimension_numbers<[1], [0], [0], [1], [0, 0, 1, 1], [], []>} : vector<8x32xf32>, vector<32x384xf32>, vector<8x384xf32> -> vector<8x384xf32>
    %92 = arith.addf %88, %91 : vector<8x384xf32>
    %c8_66 = arith.constant 8 : index
    %c0_67 = arith.constant 0 : index
    %93 = vector.load %arg4[%c8_66, %c0_67] : memref<24x1xf32, #tpu.memory_space<vmem>>, vector<8x1xf32>
    %94 = vector.broadcast %93 : vector<8x1xf32> to vector<8x384xf32>
    %95 = arith.addf %92, %94 : vector<8x384xf32>
    %cst_68 = arith.constant 0.000000e+00 : f32
    %96 = vector.broadcast %cst_68 : f32 to vector<8x384xf32>
    %97 = arith.cmpf ogt, %95, %96 : vector<8x384xf32>
    %cst_69 = arith.constant 1.000000e-01 : f32
    %98 = vector.broadcast %cst_69 : f32 to vector<8x384xf32>
    %99 = arith.mulf %98, %95 : vector<8x384xf32>
    %100 = arith.select %97, %95, %99 : vector<8x384xi1>, vector<8x384xf32>
    %101 = vector.broadcast %0 : vector<1x384xf32> to vector<8x384xf32>
    %102 = arith.mulf %100, %101 : vector<8x384xf32>
    %c16_70 = arith.constant 16 : index
    %c0_71 = arith.constant 0 : index
    %103 = vector.load %arg8[%c16_70, %c0_71] : memref<32x384xf32, #tpu.memory_space<vmem>>, vector<8x384xf32>
    tpu.vector_store %arg8[%c16_70, %c0_71], %102 {strides = array<i32>} : memref<32x384xf32, #tpu.memory_space<vmem>>, vector<8x384xf32>,
    %c0_72 = arith.constant 0 : index
    %c0_73 = arith.constant 0 : index
    %104 = vector.load %arg8[%c0_72, %c0_73] : memref<32x384xf32, #tpu.memory_space<vmem>>, vector<32x384xf32>
    %cst_74 = arith.constant 0.000000e+00 : f32
    %105 = vector.broadcast %cst_74 : f32 to vector<8x384xf32>
    %c19_i32_75 = arith.constant 19 : i32
    %106 = tpu.dynamic_rotate %104 by %c19_i32_75 dim 1 : vector<32x384xf32>, i32 -> vector<32x384xf32>
    %c144 = arith.constant 144 : index
    %c0_76 = arith.constant 0 : index
    %107 = vector.load %arg3[%c144, %c0_76] : memref<216x32xf32, #tpu.memory_space<vmem>>, vector<8x32xf32>
    %cst_77 = arith.constant dense<0.000000e+00> : vector<8x384xf32>
    %108 = tpu.matmul %107, %106, %cst_77 {dimension_numbers = #tpu.dot_dimension_numbers<[1], [0], [0], [1], [0, 0, 1, 1], [], []>} : vector<8x32xf32>, vector<32x384xf32>, vector<8x384xf32> -> vector<8x384xf32>
    %109 = arith.addf %105, %108 : vector<8x384xf32>
    %c18_i32_78 = arith.constant 18 : i32
    %110 = tpu.dynamic_rotate %104 by %c18_i32_78 dim 1 : vector<32x384xf32>, i32 -> vector<32x384xf32>
    %c152 = arith.constant 152 : index
    %c0_79 = arith.constant 0 : index
    %111 = vector.load %arg3[%c152, %c0_79] : memref<216x32xf32, #tpu.memory_space<vmem>>, vector<8x32xf32>
    %cst_80 = arith.constant dense<0.000000e+00> : vector<8x384xf32>
    %112 = tpu.matmul %111, %110, %cst_80 {dimension_numbers = #tpu.dot_dimension_numbers<[1], [0], [0], [1], [0, 0, 1, 1], [], []>} : vector<8x32xf32>, vector<32x384xf32>, vector<8x384xf32> -> vector<8x384xf32>
    %113 = arith.addf %109, %112 : vector<8x384xf32>
    %c17_i32_81 = arith.constant 17 : i32
    %114 = tpu.dynamic_rotate %104 by %c17_i32_81 dim 1 : vector<32x384xf32>, i32 -> vector<32x384xf32>
    %c160 = arith.constant 160 : index
    %c0_82 = arith.constant 0 : index
    %115 = vector.load %arg3[%c160, %c0_82] : memref<216x32xf32, #tpu.memory_space<vmem>>, vector<8x32xf32>
    %cst_83 = arith.constant dense<0.000000e+00> : vector<8x384xf32>
    %116 = tpu.matmul %115, %114, %cst_83 {dimension_numbers = #tpu.dot_dimension_numbers<[1], [0], [0], [1], [0, 0, 1, 1], [], []>} : vector<8x32xf32>, vector<32x384xf32>, vector<8x384xf32> -> vector<8x384xf32>
    %117 = arith.addf %113, %116 : vector<8x384xf32>
    %c1_i32_84 = arith.constant 1 : i32
    %118 = tpu.dynamic_rotate %104 by %c1_i32_84 dim 1 : vector<32x384xf32>, i32 -> vector<32x384xf32>
    %c168 = arith.constant 168 : index
    %c0_85 = arith.constant 0 : index
    %119 = vector.load %arg3[%c168, %c0_85] : memref<216x32xf32, #tpu.memory_space<vmem>>, vector<8x32xf32>
    %cst_86 = arith.constant dense<0.000000e+00> : vector<8x384xf32>
    %120 = tpu.matmul %119, %118, %cst_86 {dimension_numbers = #tpu.dot_dimension_numbers<[1], [0], [0], [1], [0, 0, 1, 1], [], []>} : vector<8x32xf32>, vector<32x384xf32>, vector<8x384xf32> -> vector<8x384xf32>
    %121 = arith.addf %117, %120 : vector<8x384xf32>
    %c0_i32_87 = arith.constant 0 : i32
    %122 = tpu.dynamic_rotate %104 by %c0_i32_87 dim 1 : vector<32x384xf32>, i32 -> vector<32x384xf32>
    %c176 = arith.constant 176 : index
    %c0_88 = arith.constant 0 : index
    %123 = vector.load %arg3[%c176, %c0_88] : memref<216x32xf32, #tpu.memory_space<vmem>>, vector<8x32xf32>
    %cst_89 = arith.constant dense<0.000000e+00> : vector<8x384xf32>
    %124 = tpu.matmul %123, %122, %cst_89 {dimension_numbers = #tpu.dot_dimension_numbers<[1], [0], [0], [1], [0, 0, 1, 1], [], []>} : vector<8x32xf32>, vector<32x384xf32>, vector<8x384xf32> -> vector<8x384xf32>
    %125 = arith.addf %121, %124 : vector<8x384xf32>
    %c383_i32_90 = arith.constant 383 : i32
    %126 = tpu.dynamic_rotate %104 by %c383_i32_90 dim 1 : vector<32x384xf32>, i32 -> vector<32x384xf32>
    %c184 = arith.constant 184 : index
    %c0_91 = arith.constant 0 : index
    %127 = vector.load %arg3[%c184, %c0_91] : memref<216x32xf32, #tpu.memory_space<vmem>>, vector<8x32xf32>
    %cst_92 = arith.constant dense<0.000000e+00> : vector<8x384xf32>
    %128 = tpu.matmul %127, %126, %cst_92 {dimension_numbers = #tpu.dot_dimension_numbers<[1], [0], [0], [1], [0, 0, 1, 1], [], []>} : vector<8x32xf32>, vector<32x384xf32>, vector<8x384xf32> -> vector<8x384xf32>
    %129 = arith.addf %125, %128 : vector<8x384xf32>
    %c367_i32_93 = arith.constant 367 : i32
    %130 = tpu.dynamic_rotate %104 by %c367_i32_93 dim 1 : vector<32x384xf32>, i32 -> vector<32x384xf32>
    %c192 = arith.constant 192 : index
    %c0_94 = arith.constant 0 : index
    %131 = vector.load %arg3[%c192, %c0_94] : memref<216x32xf32, #tpu.memory_space<vmem>>, vector<8x32xf32>
    %cst_95 = arith.constant dense<0.000000e+00> : vector<8x384xf32>
    %132 = tpu.matmul %131, %130, %cst_95 {dimension_numbers = #tpu.dot_dimension_numbers<[1], [0], [0], [1], [0, 0, 1, 1], [], []>} : vector<8x32xf32>, vector<32x384xf32>, vector<8x384xf32> -> vector<8x384xf32>
    %133 = arith.addf %129, %132 : vector<8x384xf32>
    %c366_i32_96 = arith.constant 366 : i32
    %134 = tpu.dynamic_rotate %104 by %c366_i32_96 dim 1 : vector<32x384xf32>, i32 -> vector<32x384xf32>
    %c200 = arith.constant 200 : index
    %c0_97 = arith.constant 0 : index
    %135 = vector.load %arg3[%c200, %c0_97] : memref<216x32xf32, #tpu.memory_space<vmem>>, vector<8x32xf32>
    %cst_98 = arith.constant dense<0.000000e+00> : vector<8x384xf32>
    %136 = tpu.matmul %135, %134, %cst_98 {dimension_numbers = #tpu.dot_dimension_numbers<[1], [0], [0], [1], [0, 0, 1, 1], [], []>} : vector<8x32xf32>, vector<32x384xf32>, vector<8x384xf32> -> vector<8x384xf32>
    %137 = arith.addf %133, %136 : vector<8x384xf32>
    %c365_i32_99 = arith.constant 365 : i32
    %138 = tpu.dynamic_rotate %104 by %c365_i32_99 dim 1 : vector<32x384xf32>, i32 -> vector<32x384xf32>
    %c208 = arith.constant 208 : index
    %c0_100 = arith.constant 0 : index
    %139 = vector.load %arg3[%c208, %c0_100] : memref<216x32xf32, #tpu.memory_space<vmem>>, vector<8x32xf32>
    %cst_101 = arith.constant dense<0.000000e+00> : vector<8x384xf32>
    %140 = tpu.matmul %139, %138, %cst_101 {dimension_numbers = #tpu.dot_dimension_numbers<[1], [0], [0], [1], [0, 0, 1, 1], [], []>} : vector<8x32xf32>, vector<32x384xf32>, vector<8x384xf32> -> vector<8x384xf32>
    %141 = arith.addf %137, %140 : vector<8x384xf32>
    %c16_102 = arith.constant 16 : index
    %c0_103 = arith.constant 0 : index
    %142 = vector.load %arg4[%c16_102, %c0_103] : memref<24x1xf32, #tpu.memory_space<vmem>>, vector<8x1xf32>
    %143 = vector.broadcast %142 : vector<8x1xf32> to vector<8x384xf32>
    %144 = arith.addf %141, %143 : vector<8x384xf32>
    %cst_104 = arith.constant 0.000000e+00 : f32
    %145 = vector.broadcast %cst_104 : f32 to vector<8x384xf32>
    %146 = arith.cmpf ogt, %144, %145 : vector<8x384xf32>
    %cst_105 = arith.constant 1.000000e-01 : f32
    %147 = vector.broadcast %cst_105 : f32 to vector<8x384xf32>
    %148 = arith.mulf %147, %144 : vector<8x384xf32>
    %149 = arith.select %146, %144, %148 : vector<8x384xi1>, vector<8x384xf32>
    %150 = vector.broadcast %0 : vector<1x384xf32> to vector<8x384xf32>
    %151 = arith.mulf %149, %150 : vector<8x384xf32>
    %c24_106 = arith.constant 24 : index
    %c0_107 = arith.constant 0 : index
    %152 = vector.load %arg8[%c24_106, %c0_107] : memref<32x384xf32, #tpu.memory_space<vmem>>, vector<8x384xf32>
    tpu.vector_store %arg8[%c24_106, %c0_107], %151 {strides = array<i32>} : memref<32x384xf32, #tpu.memory_space<vmem>>, vector<8x384xf32>,
    %c0_108 = arith.constant 0 : index
    %c0_109 = arith.constant 0 : index
    %153 = vector.load %arg8[%c0_108, %c0_109] : memref<32x384xf32, #tpu.memory_space<vmem>>, vector<32x384xf32>
    %c0_110 = arith.constant 0 : index
    %c0_111 = arith.constant 0 : index
    %154 = vector.load %arg5[%c0_110, %c0_111] : memref<8x32xf32, #tpu.memory_space<vmem>>, vector<8x32xf32>
    %cst_112 = arith.constant dense<0.000000e+00> : vector<8x384xf32>
    %155 = tpu.matmul %154, %153, %cst_112 {dimension_numbers = #tpu.dot_dimension_numbers<[1], [0], [0], [1], [0, 0, 1, 1], [], []>} : vector<8x32xf32>, vector<32x384xf32>, vector<8x384xf32> -> vector<8x384xf32>
    %c0_113 = arith.constant 0 : index
    %c0_114 = arith.constant 0 : index
    %156 = vector.load %arg6[%c0_113, %c0_114] : memref<8x1xf32, #tpu.memory_space<vmem>>, vector<8x1xf32>
    %157 = vector.broadcast %156 : vector<8x1xf32> to vector<8x384xf32>
    %158 = arith.addf %155, %157 : vector<8x384xf32>
    %159 = arith.addf %158, %2 : vector<8x384xf32>
    %c0_115 = arith.constant 0 : index
    %c0_116 = arith.constant 0 : index
    %c0_117 = arith.constant 0 : index
    %160 = vector.load %arg7[%c0_115, %c0_116, %c0_117] : memref<1x8x384xf32, #tpu.memory_space<vmem>>, vector<1x8x384xf32>
    %161 = vector.shape_cast %160 : vector<1x8x384xf32> to vector<8x384xf32>
    %162 = vector.shape_cast %159 : vector<8x384xf32> to vector<1x8x384xf32>
    tpu.vector_store %arg7[%c0_115, %c0_116, %c0_117], %162 {strides = array<i32>} : memref<1x8x384xf32, #tpu.memory_space<vmem>>, vector<1x8x384xf32>,
    return
  }
  func.func @transform_0(%arg0: i32) -> (i32, i32, i32) {
    %c0_i32 = arith.constant 0 : i32
    %c0_i32_0 = arith.constant 0 : i32
    %c0_i32_1 = arith.constant 0 : i32
    return %arg0, %c0_i32, %c0_i32_0 : i32, i32, i32
  }
  func.func @transform_1(%arg0: i32) -> (i32, i32) {
    %c0_i32 = arith.constant 0 : i32
    %c0_i32_0 = arith.constant 0 : i32
    %c0_i32_1 = arith.constant 0 : i32
    return %c0_i32, %c0_i32_0 : i32, i32
  }
  func.func @transform_2(%arg0: i32) -> (i32, i32) {
    %c0_i32 = arith.constant 0 : i32
    %c0_i32_0 = arith.constant 0 : i32
    %c0_i32_1 = arith.constant 0 : i32
    return %c0_i32, %c0_i32_0 : i32, i32
  }
  func.func @transform_3(%arg0: i32) -> (i32, i32) {
    %c0_i32 = arith.constant 0 : i32
    %c0_i32_0 = arith.constant 0 : i32
    %c0_i32_1 = arith.constant 0 : i32
    return %c0_i32, %c0_i32_0 : i32, i32
  }
  func.func @transform_4(%arg0: i32) -> (i32, i32) {
    %c0_i32 = arith.constant 0 : i32
    %c0_i32_0 = arith.constant 0 : i32
    %c0_i32_1 = arith.constant 0 : i32
    return %c0_i32, %c0_i32_0 : i32, i32
  }
  func.func @transform_5(%arg0: i32) -> (i32, i32) {
    %c0_i32 = arith.constant 0 : i32
    %c0_i32_0 = arith.constant 0 : i32
    %c0_i32_1 = arith.constant 0 : i32
    return %c0_i32, %c0_i32_0 : i32, i32
  }
  func.func @transform_6(%arg0: i32) -> (i32, i32, i32) {
    %c0_i32 = arith.constant 0 : i32
    %c0_i32_0 = arith.constant 0 : i32
    %c0_i32_1 = arith.constant 0 : i32
    return %arg0, %c0_i32, %c0_i32_0 : i32, i32, i32
  }
}

</mosaic_0001>

<bundles_post_ra>
// kernel: tpu_custom_call.1
= control target key start
LH: loop header
LB: loop body
LE: loop exit
PB: predicated region body
PF: predicated region fallthrough
CT: control target
= control target key end

     0   :  { %11 = vsyncpa [#allocation4], 0  ;;  %s6224_s0 = inlined_call_operand.vmem [shape: f32[2,8,384], index: 0, kind: input, shape index: {}]   ;;  %s6225_s1 = inlined_call_operand.vmem [shape: f32[1,384], index: 1, kind: input, shape index: {}]   ;;  %s6226_s2 = inlined_call_operand.vmem [shape: f32[216,32], index: 2, kind: input, shape index: {}]   ;;  %s6227_s3 = inlined_call_operand.vmem [shape: f32[24,1], index: 3, kind: input, shape index: {}]   ;;  %s6228_s4 = inlined_call_operand.vmem [shape: f32[8,32], index: 4, kind: input, shape index: {}]   ;;  %s6229_s5 = inlined_call_operand.vmem [shape: f32[8,1], index: 5, kind: input, shape index: {}]   ;;  %s6230_s6 = inlined_call_operand.hbm [shape: f32[2,8,384], index: 6, kind: output, shape index: {}]  }
   0x1   :  { %13 = vsyncpa [#allocation4 + $0x1], 0  ;;  %s4195_s21 = smov 0   ;;  %s4197_s22 = smov 0  }
   0x2   :  { %s4199_s23 = smov 0   ;;  %s4201_s24 = smov 0  }
   0x3 LB: > { %s4216_s25 = sadd.s32 4294967295, %s4148_s24   ;;  %s3211_s26 = sadd.s32 4294967294, %s4148_s24   ;;  %s4148_s24 = sphi %s4201_s24, %s6285_s24   ;;  %s4144_s23 = sphi %s4199_s23, %s6284_s23   ;;  %s4140_s22 = sphi %s4197_s22, %s6283_s22   ;;  %s4136_s21 = sphi %s4195_s21, %s6282_s21  }
   0x4   : > { %s4220_s27 = sadd.s32 1, %s4148_s24   ;;  %s157_s28 = sadd.s32 1, %s4144_s23 }
   0x5   : > { %s154_s29 = ssub.s32 %s4148_s24, %s4220_s27  ;;  %p167_p0 = scmp.ne.s32.totalorder %s4144_s23, %s4140_s22 }
   0x6   : > { %p155_p1 = scmp.eq.s32.totalorder %s154_s29, 0  ;;  %p168_p2 = scmp.eq.s32.totalorder %s4216_s25, 1 }
   0x7   : > { %p173_p3 = scmp.ne.s32.totalorder %s4140_s22, %s4136_s21  ;;  %p174_p4 = scmp.eq.s32.totalorder %s3211_s26, 1 }
   0x8   : > { %s4231_s30 = scalar_select %p155_p1, %s4144_s23, %s157_s28  }
   0x9   : > { %p4233_p5 = por %p168_p2, %p167_p0  ;;  %p4237_p6 = por %p174_p4, %p173_p3 }
   0xa   : > { %p3214_p7 = scmp.ge.s32.totalorder %s4148_s24, 1  ;;  %p215_p8 = scmp.lt.s32.totalorder %s4148_s24, 3 }
   0xc   : > { %p216_p9 = pnand %p3214_p7, %p215_p8 }
   0xe   : > { %219 = sbr.rel (%p216_p9) target bundleno = 1253 (0x4e5), region = 44 }
  0x13   : > { %p245_p10 = scmp.lt.s32.totalorder %s4216_s25, 1  ;;  %v6239_v0 = vmov 0.0   ;;  %s4151_s10 = smov 19   ;;  %v302_v12 = vlaneseq  ;;  %vm356_vm2 = vcmask 261120   ;;  %v4435_v49 = vld [vmem:[%s6226_s2] sm:$0xff] }
  0x14   : > { %3361 = vrot.lane.b32.xlu1 %v6239_v0, %s4151_s10  ;;  %3356 = vrot.lane.b32.xlu0 %v6239_v0, %s4151_s10  ;;  %s4152_s15 = smov 18   ;;  %s4153_s16 = smov 17  }
  0x15   : > { %s246_s9 = scalar_select %p245_p10, %s4216_s25, 1  ;;  %3366 = vrot.lane.b32.xlu2 %v6239_v0, %s4151_s10  ;;  %v4364_v15 = vand.u32 127, %v302_v12 }
  0x16   : > { %s4154_s17 = smov 1   ;;  %s4155_s18 = smov 127  }
  0x17   : > { %s3304_s11 = smul.u32 24, %s246_s9  ;;  %s4156_s19 = smov 111   ;;  %vm304_vm0 = vcmp.lt.s32.totalorder %v4364_v15, 19  ;;  %vm342_vm1 = vcmp.lt.s32.totalorder %v4364_v15, 18  ;;  %vm507_vm3 = vcmp.lt.s32.totalorder %v4364_v15, 17  ;;  %vm611_vm4 = vcmp.lt.s32.totalorder %v4364_v15, 1 }
  0x18   : > { %s4157_s20 = smov 110   ;;  %s4158_s26 = smov 109   ;;  %vm886_vm5 = vcmp.lt.s32.totalorder %v4364_v15, 111  ;;  %vm782_vm6 = vcmp.lt.s32.totalorder %v4364_v15, 127  ;;  %vm990_vm7 = vcmp.lt.s32.totalorder %v4364_v15, 110  ;;  %vm1094_vm8 = vcmp.lt.s32.totalorder %v4364_v15, 109 }
  0x19   : > { %s4254_s14 = scalar_lea.vmem %s6224_s0, %s3304_s11  ;;  %s242_s9 = sand.u32 1, %s4140_s22  }
  0x1a   : > { %v4257_v1 = vld [vmem:[%s4254_s14 + $0x8] sm:$0xff]  ;;  %v4260_v2 = vld [vmem:[%s4254_s14] sm:$0xff]  ;;  %v4263_v3 = vld [vmem:[%s4254_s14 + $0x10] sm:$0xff]  ;;  %s3303_s11 = smul.u32 24, %s242_s9 }
  0x1b   : > { %v3375_v4 = vpack.i.bf16 0.0, %v4257_v1  ;;  %v4267_v5 = vpack.i.bf16 0.0, %v4260_v2  ;;  %v4270_v6 = vpack.i.bf16 0.0, %v4263_v3  ;;  %v4285_v7 = vpack.i.bf16 %v4257_v1, %v6239_v0  ;;  %s3305_s12 = smul.u32 24, %s4216_s25  ;;  %s3136_s25 = scalar_lea.sflag [#allocation4], %s242_s9 }
  0x1c   : > { %v4313_v8 = vpack.i.bf16 %v4257_v1, %v4260_v2  ;;  %v3470_v9 = vpack.i.bf16 %v4263_v3, %v6239_v0  ;;  %v3565_v14 = vpack.i.bf16 %v4260_v2, %v6239_v0 }
  0x1d   : > { %3376 = vrot.lane.b32.xlu1 %v3375_v4, %s4151_s10  ;;  %3371 = vrot.lane.b32.xlu0 %v4267_v5, %s4151_s10 }
  0x1e   : > { %3381 = vrot.lane.b32.xlu2 %v4270_v6, %s4151_s10 }
  0x25   : > { %3391 = vrot.lane.b32.xlu1 %v6239_v0, %s4152_s15  ;;  %3386 = vrot.lane.b32.xlu0 %v4267_v5, %s4152_s15 }
  0x26   : > { %3396 = vrot.lane.b32.xlu2 %v6239_v0, %s4152_s15 }
  0x2d   : > { %3406 = vrot.lane.b32.xlu1 %v4285_v7, %s4152_s15  ;;  %3401 = vrot.lane.b32.xlu0 %v6239_v0, %s4152_s15 }
  0x2e   : > { %3411 = vrot.lane.b32.xlu2 %v4270_v6, %s4152_s15 }
  0x35   : > { %3421 = vrot.lane.b32.xlu1 %v6239_v0, %s4153_s16  ;;  %3416 = vrot.lane.b32.xlu0 %v6239_v0, %s4153_s16 }
  0x36   : > { %3426 = vrot.lane.b32.xlu2 %v6239_v0, %s4153_s16 }
  0x3d   : > { %3436 = vrot.lane.b32.xlu1 %v4270_v6, %s4153_s16  ;;  %3431 = vrot.lane.b32.xlu0 %v4267_v5, %s4153_s16 }
  0x3e   : > { %3441 = vrot.lane.b32.xlu2 %v6239_v0, %s4154_s17 }
  0x45   : > { %3451 = vrot.lane.b32.xlu1 %v6239_v0, %s4154_s17  ;;  %3446 = vrot.lane.b32.xlu0 %v4285_v7, %s4153_s16 }
  0x46   : > { %3456 = vrot.lane.b32.xlu2 %v6239_v0, %s4154_s17 }
  0x4d   : > { %3466 = vrot.lane.b32.xlu1 %v6239_v0, %s4154_s17  ;;  %3461 = vrot.lane.b32.xlu0 %v4313_v8, %s4154_s17 }
  0x4e   : > { %3471 = vrot.lane.b32.xlu2 %v3470_v9, %s4154_s17 }
  0x55   : > { %3481 = vrot.lane.b32.xlu1 %v6239_v0, %s4155_s18  ;;  %3476 = vrot.lane.b32.xlu0 %v6239_v0, %s4155_s18 }
  0x56   : > { %3486 = vrot.lane.b32.xlu2 %v6239_v0, %s4156_s19 }
  0x5d   : > { %3496 = vrot.lane.b32.xlu1 %v6239_v0, %s4156_s19  ;;  %3491 = vrot.lane.b32.xlu0 %v6239_v0, %s4155_s18 }
  0x5e   : > { %3501 = vrot.lane.b32.xlu2 %v4313_v8, %s4155_s18 }
  0x65   : > { %3511 = vrot.lane.b32.xlu1 %v6239_v0, %s4155_s18  ;;  %3506 = vrot.lane.b32.xlu0 %v6239_v0, %s4156_s19 }
  0x66   : > { %3516 = vrot.lane.b32.xlu2 %v4313_v8, %s4156_s19 }
  0x6d   : > { %3526 = vrot.lane.b32.xlu1 %v6239_v0, %s4157_s20  ;;  %3521 = vrot.lane.b32.xlu0 %v6239_v0, %s4156_s19 }
  0x6e   : > { %3531 = vrot.lane.b32.xlu2 %v3470_v9, %s4155_s18 }
  0x6f   : > { %v4345_v10 = vpop.permute.xlu2 %3366 }
  0x70   : > { %v3369_v16 = vunpack.i.h.bf16 %v4345_v10  ;;  %v3368_v19 = vunpack.i.l.bf16 %v4345_v10 }
  0x75   : > { %3541 = vrot.lane.b32.xlu1 %v6239_v0, %s4157_s20  ;;  %3536 = vrot.lane.b32.xlu0 %v3470_v9, %s4156_s19 }
  0x76   : > { %3546 = vrot.lane.b32.xlu2 %v6239_v0, %s4157_s20 }
  0x78   : > { %v4352_v11 = vpop.permute.xlu2 %3381 }
  0x79   : > { %v3384_v25 = vunpack.i.h.bf16 %v4352_v11  ;;  %v3383_v28 = vunpack.i.l.bf16 %v4352_v11 }
  0x7d   : > { %3556 = vrot.lane.b32.xlu1 %v4270_v6, %s4157_s20  ;;  %3551 = vrot.lane.b32.xlu0 %v4285_v7, %s4157_s20 }
  0x7e   : > { %3561 = vrot.lane.b32.xlu2 %v6239_v0, %s4158_s26 }
  0x80   : > { %v4360_v13 = vpop.permute.xlu2 %3396 }
  0x81   : > { %v3399_v34 = vunpack.i.h.bf16 %v4360_v13  ;;  %v3398_v35 = vunpack.i.l.bf16 %v4360_v13 }
  0x83   : > { %v345_v42 = vsel %vm342_vm1, %v3398_v35, %v3399_v34 }
  0x85   : > { %3571 = vrot.lane.b32.xlu1 %v6239_v0, %s4158_s26  ;;  %3566 = vrot.lane.b32.xlu0 %v3565_v14, %s4157_s20 }
  0x86   : > { %3576 = vrot.lane.b32.xlu2 %v6239_v0, %s4158_s26  ;;  %v4372_v17 = vpop.permute.xlu1 %3361  ;;  %v4374_v18 = vpop.permute.xlu0 %3356 }
  0x87   : > { %v3359_v20 = vunpack.i.h.bf16 %v4374_v18  ;;  %v3358_v21 = vunpack.i.l.bf16 %v4374_v18  ;;  %v3364_v61 = vunpack.i.h.bf16 %v4372_v17  ;;  %v3363_v62 = vunpack.i.l.bf16 %v4372_v17 }
  0x88   : > { %v4380_v22 = vpop.permute.xlu2 %3411 }
  0x89   : > { %v316_v23 = vsel %vm304_vm0, %v3369_v16, %v3359_v20  ;;  %v315_v24 = vsel %vm304_vm0, %v3368_v19, %v3358_v21  ;;  %v3414_v43 = vunpack.i.h.bf16 %v4380_v22  ;;  %v3413_v50 = vunpack.i.l.bf16 %v4380_v22  ;;  %v355_v22 = vld [vmem:[%s6226_s2 + $0x8] sm:$0xff] }
  0x8a   : > { %435 = vmatpush.msra.mxu3 %v316_v23 }
  0x8b   : > { %v353_v58 = vsel %vm342_vm1, %v3399_v34, %v3414_v43  ;;  %v349_v59 = vsel %vm342_vm1, %v3414_v43, %v3398_v35  ;;  %v312_v35 = vsel %vm304_vm0, %v3359_v20, %v3364_v61  ;;  %v311_v20 = vsel %vm304_vm0, %v3358_v21, %v3363_v62 }
  0x8c   : > { %436 = vmatpush.msra.mxu3 %v315_v24 }
  0x8d   : > { %3586 = vrot.lane.b32.xlu1 %v4270_v6, %s4158_s26  ;;  %3581 = vrot.lane.b32.xlu0 %v4267_v5, %s4158_s26 }
  0x8e   : > { %3591 = vrot.lane.b32.xlu2 %v4285_v7, %s4158_s26 }
  0x8f   : > { %v4401_v26 = vpop.permute.xlu1 %3376  ;;  %v4403_v27 = vpop.permute.xlu0 %3371 }
  0x90   : > { %v3374_v29 = vunpack.i.h.bf16 %v4403_v27  ;;  %v3373_v30 = vunpack.i.l.bf16 %v4403_v27  ;;  %v4408_v31 = vpop.permute.xlu2 %3426  ;;  %v3379_v34 = vunpack.i.h.bf16 %v4401_v26 }
  0x91   : > { %v3429_v7 = vunpack.i.h.bf16 %v4408_v31  ;;  %v3428_v9 = vunpack.i.l.bf16 %v4408_v31 }
  0x92   : > { %v314_v32 = vsel %vm304_vm0, %v3384_v25, %v3374_v29  ;;  %v313_v33 = vsel %vm304_vm0, %v3383_v28, %v3373_v30  ;;  %v310_v10 = vsel %vm304_vm0, %v3374_v29, %v3379_v34 }
  0x93   : > { %437 = vmatpush.msra.mxu3 %v314_v32 }
  0x95   : > { %438 = vmatpush.msra.mxu3 %v313_v33  ;;  %3597 = vrot.lane.b32.xlu1 %v6239_v0, %s4152_s15 }
  0x96   : > { %3219 = vmatmul.msk.f32.vlgmr.msra.gmra.mxu3 %vm356_vm2, %v4435_v49  ;;  %3602 = vrot.lane.b32.xlu2 %v6239_v0, %s4152_s15 }
  0x97   : > { %v3392_v36 = vpop.permute.xlu1 %3391  ;;  %v3387_v37 = vpop.permute.xlu0 %3386 }
  0x98   : > { %v3394_v38 = vunpack.i.h.bf16 %v3392_v36  ;;  %v3393_v39 = vunpack.i.l.bf16 %v3392_v36  ;;  %v4427_v41 = vpop.permute.xlu2 %3441  ;;  %v3388_v55 = vunpack.i.l.bf16 %v3387_v37  ;;  %v3389_v57 = vunpack.i.h.bf16 %v3387_v37 }
  0x99   : > { %v308_v36 = vsel %vm304_vm0, %v3364_v61, %v3369_v16  ;;  %v307_v16 = vsel %vm304_vm0, %v3363_v62, %v3368_v19  ;;  %v3444_v18 = vunpack.i.h.bf16 %v4427_v41  ;;  %v3443_v21 = vunpack.i.l.bf16 %v4427_v41 }
  0x9a   : > { %v346_v40 = vsel %vm342_vm1, %v3393_v39, %v3394_v38  ;;  %v351_v14 = vsel %vm342_vm1, %v3413_v50, %v3388_v55  ;;  %v306_v19 = vsel %vm304_vm0, %v3379_v34, %v3384_v25 }
  0x9b   : > { %412 = vmatpush.msra.mxu2 %v346_v40  ;;  %v619_v27 = vsel %vm611_vm4, %v3443_v21, %v3444_v18 }
  0x9d   : > { %413 = vmatpush.msra.mxu2 %v345_v42  ;;  %3617 = vrot.lane.b32.xlu1 %v6239_v0, %s4151_s10 }
  0x9e   : > { %3607 = vrot.lane.b32.xlu2 %v4267_v5, %s4152_s15 }
  0x9f   : > { %v3407_v44 = vpop.permute.xlu1 %3406  ;;  %v3402_v45 = vpop.permute.xlu0 %3401 }
  0xa0   : > { %v3408_v46 = vunpack.i.l.bf16 %v3407_v44  ;;  %v3404_v47 = vunpack.i.h.bf16 %v3402_v45  ;;  %v3403_v48 = vunpack.i.l.bf16 %v3402_v45  ;;  %v3409_v51 = vunpack.i.h.bf16 %v3407_v44  ;;  %v4452_v60 = vpop.permute.xlu2 %3456 }
  0xa2   : > { %v354_v52 = vsel %vm342_vm1, %v3394_v38, %v3408_v46  ;;  %v350_v53 = vsel %vm342_vm1, %v3408_v46, %v3393_v39  ;;  %v344_v54 = vsel %vm342_vm1, %v3403_v48, %v3404_v47  ;;  %v343_v56 = vsel %vm342_vm1, %v3409_v51, %v3413_v50 }
  0xa3   : > { %372 = vmatpush.msra.mxu0 %v354_v52  ;;  %392 = vmatpush.msra.mxu1 %v350_v53  ;;  %v352_v63 = vsel %vm342_vm1, %v3404_v47, %v3389_v57  ;;  %v348_v4 = vsel %vm342_vm1, %v3389_v57, %v3403_v48  ;;  %v347_v17 = vsel %vm342_vm1, %v3388_v55, %v3409_v51  ;;  %v3378_v39 = vunpack.i.l.bf16 %v4401_v26  ;;  %v520_v48 = vld [vmem:[%s6226_s2 + $0x10] sm:$0xff] }
  0xa4   : > { %414 = vmatpush.msra.mxu2 %v344_v54  ;;  %v517_v26 = vsel %vm507_vm3, %v3429_v7, %v3428_v9  ;;  %v3459_v52 = vunpack.i.h.bf16 %v4452_v60  ;;  %v3458_v53 = vunpack.i.l.bf16 %v4452_v60 }
  0xa5   : > { %373 = vmatpush.msra.mxu0 %v353_v58  ;;  %393 = vmatpush.msra.mxu1 %v349_v59  ;;  %v309_v29 = vsel %vm304_vm0, %v3373_v30, %v3378_v39  ;;  %v305_v25 = vsel %vm304_vm0, %v3378_v39, %v3383_v28 }
  0xa6   : > { %415 = vmatpush.msra.mxu2 %v343_v56  ;;  %3622 = vrot.lane.b32.xlu2 %v6239_v0, %s4151_s10 }
  0xa7   : > { %v4463_v12 = vpop.permute.xlu1 %3421  ;;  %v3417_v13 = vpop.permute.xlu0 %3416  ;;  %374 = vmatpush.msra.mxu0 %v352_v63  ;;  %394 = vmatpush.msra.mxu1 %v348_v4  ;;  %v617_v63 = vsel %vm611_vm4, %v3458_v53, %v3459_v52 }
  0xa8   : > { %v3424_v23 = vunpack.i.h.bf16 %v4463_v12  ;;  %v3423_v24 = vunpack.i.l.bf16 %v4463_v12  ;;  %v3419_v32 = vunpack.i.h.bf16 %v3417_v13  ;;  %v3418_v33 = vunpack.i.l.bf16 %v3417_v13  ;;  %3218 = vmatmul.msk.f32.vlgmr.msra.gmra.mxu2 %vm356_vm2, %v355_v22  ;;  %v4515_v40 = vpop.permute.xlu2 %3471  ;;  %3642 = vrot.lane.b32.xlu1 %v6239_v0, %s4153_s16 }
  0xa9   : > { %375 = vmatpush.msra.mxu0 %v351_v14  ;;  %395 = vmatpush.msra.mxu1 %v347_v17 }
  0xaa   : > { %v519_v37 = vsel %vm507_vm3, %v3419_v32, %v3418_v33  ;;  %v518_v38 = vsel %vm507_vm3, %v3424_v23, %v3423_v24  ;;  %3216 = vmatmul.msk.f32.vlgmr.msra.gmra.mxu0 %vm356_vm2, %v355_v22  ;;  %3217 = vmatmul.msk.f32.vlgmr.msra.gmra.mxu1 %vm356_vm2, %v355_v22 }
  0xab   : > { %455 = vmatpush.msrb.mxu0 %v312_v35  ;;  %475 = vmatpush.msrb.mxu1 %v308_v36  ;;  %v3474_v36 = vunpack.i.h.bf16 %v4515_v40 }
  0xac   : > { %536 = vmatpush.msrb.mxu2 %v519_v37 }
  0xad   : > { %456 = vmatpush.msrb.mxu0 %v311_v20  ;;  %476 = vmatpush.msrb.mxu1 %v307_v16 }
  0xae   : > { %537 = vmatpush.msrb.mxu2 %v518_v38  ;;  %v691_v38 = vld [vmem:[%s6226_s2 + $0x20] sm:$0xff]  ;;  %3632 = vrot.lane.b32.xlu2 %v6239_v0, %s4153_s16 }
  0xaf   : > { %457 = vmatpush.msrb.mxu0 %v310_v10  ;;  %477 = vmatpush.msrb.mxu1 %v306_v19  ;;  %v3437_v42 = vpop.permute.xlu1 %3436  ;;  %v3432_v43 = vpop.permute.xlu0 %3431 }
  0xb0   : > { %538 = vmatpush.msrb.mxu2 %v517_v26  ;;  %v3439_v44 = vunpack.i.h.bf16 %v3437_v42  ;;  %v3438_v45 = vunpack.i.l.bf16 %v3437_v42  ;;  %v3434_v46 = vunpack.i.h.bf16 %v3432_v43  ;;  %v3433_v47 = vunpack.i.l.bf16 %v3432_v43  ;;  %v4552_v56 = vpop.permute.xlu2 %3486 }
  0xb1   : > { %458 = vmatpush.msrb.mxu0 %v309_v29  ;;  %478 = vmatpush.msrb.mxu1 %v305_v25  ;;  %v3489_v31 = vunpack.i.h.bf16 %v4552_v56 }
  0xb2   : > { %v516_v30 = vsel %vm507_vm3, %v3438_v45, %v3433_v47  ;;  %v515_v11 = vsel %vm507_vm3, %v3418_v33, %v3434_v46  ;;  %v511_v28 = vsel %vm507_vm3, %v3434_v46, %v3419_v32  ;;  %v514_v50 = vsel %vm507_vm3, %v3423_v24, %v3439_v44  ;;  %3221 = vmatmul.msk.f32.vlgmr.msrb.gmra.mxu1 %vm356_vm2, %v4435_v49 }
  0xb3   : > { %539 = vmatpush.msrb.mxu2 %v516_v30  ;;  %556 = vmatpush.msrb.mxu3 %v515_v11  ;;  %v510_v51 = vsel %vm507_vm3, %v3439_v44, %v3424_v23  ;;  %v3473_v24 = vunpack.i.l.bf16 %v4515_v40 }
  0xb4   : > { %576 = vmatpush.msra.mxu0 %v511_v28  ;;  %3222 = vmatmul.msk.f32.vlgmr.msrb.gmra.mxu2 %vm356_vm2, %v520_v48 }
  0xb5   : > { %660 = vmatpush.msra.mxu2 %v619_v27  ;;  %557 = vmatpush.msrb.mxu3 %v514_v50  ;;  %v621_v20 = vsel %vm611_vm4, %v3473_v24, %v3458_v53 }
  0xb6   : > { %577 = vmatpush.msra.mxu0 %v510_v51  ;;  %v795_v51 = vld [vmem:[%s6226_s2 + $0x28] sm:$0xff]  ;;  %3652 = vrot.lane.b32.xlu2 %v6239_v0, %s4154_s17 }
  0xb7   : > { %v3452_v54 = vpop.permute.xlu1 %3451  ;;  %v3447_v55 = vpop.permute.xlu0 %3446  ;;  %3220 = vmatmul.msk.f32.vlgmr.msrb.gmra.mxu0 %vm356_vm2, %v4435_v49 }
  0xb8   : > { %v3454_v57 = vunpack.i.h.bf16 %v3452_v54  ;;  %v3453_v58 = vunpack.i.l.bf16 %v3452_v54  ;;  %v3449_v59 = vunpack.i.h.bf16 %v3447_v55  ;;  %v3448_v61 = vunpack.i.l.bf16 %v3447_v55  ;;  %v4577_v32 = vpop.permute.xlu2 %3501 }
  0xb9   : > { %v3504_v44 = vunpack.i.h.bf16 %v4577_v32 }
  0xba   : > { %v513_v62 = vsel %vm507_vm3, %v3428_v9, %v3448_v61  ;;  %v509_v60 = vsel %vm507_vm3, %v3448_v61, %v3429_v7  ;;  %v618_v49 = vsel %vm611_vm4, %v3453_v58, %v3454_v57  ;;  %v512_v4 = vsel %vm507_vm3, %v3433_v47, %v3449_v59 }
  0xbb   : > { %558 = vmatpush.msrb.mxu3 %v513_v62  ;;  %578 = vmatpush.msra.mxu0 %v509_v60  ;;  %v508_v12 = vsel %vm507_vm3, %v3449_v59, %v3438_v45  ;;  %v3488_v7 = vunpack.i.l.bf16 %v4552_v56  ;;  %v3503_v45 = vunpack.i.l.bf16 %v4577_v32 }
  0xbc   : > { %661 = vmatpush.msra.mxu2 %v618_v49 }
  0xbd   : > { %559 = vmatpush.msrb.mxu3 %v512_v4  ;;  %579 = vmatpush.msra.mxu0 %v508_v12  ;;  %v894_v37 = vsel %vm886_vm5, %v3488_v7, %v3489_v31  ;;  %v787_v50 = vsel %vm782_vm6, %v3503_v45, %v3504_v44 }
  0xbe   : > { %662 = vmatpush.msra.mxu2 %v617_v63  ;;  %3223 = vmatmul.msk.f32.vlgmr.msrb.gmra.mxu3 %vm356_vm2, %v520_v48 }
  0xbf   : > { %v3467_v9 = vpop.permute.xlu1 %3466  ;;  %v3462_v13 = vpop.permute.xlu0 %3461  ;;  %3224 = vmatmul.msk.f32.vlgmr.msra.gmra.mxu0 %vm356_vm2, %v520_v48  ;;  %3667 = vrot.lane.b32.xlu2 %v6239_v0, %s4155_s18 }
  0xc0   : > { %v3469_v14 = vunpack.i.h.bf16 %v3467_v9  ;;  %v3468_v17 = vunpack.i.l.bf16 %v3467_v9  ;;  %v3464_v22 = vunpack.i.h.bf16 %v3462_v13  ;;  %v3463_v23 = vunpack.i.l.bf16 %v3462_v13  ;;  %710 = vmatpush.msrb.mxu0 %v4260_v2  ;;  %v624_v2 = vld [vmem:[%s6226_s2 + $0x18] sm:$0xff]  ;;  %v4624_v25 = vpop.permute.xlu2 %3516 }
  0xc1   : > { %v3519_v53 = vunpack.i.h.bf16 %v4624_v25  ;;  %v3518_v54 = vunpack.i.l.bf16 %v4624_v25 }
  0xc2   : > { %v623_v33 = vsel %vm611_vm4, %v3468_v17, %v3443_v21  ;;  %v616_v34 = vsel %vm611_vm4, %v3463_v23, %v3464_v22  ;;  %v615_v35 = vsel %vm611_vm4, %v3444_v18, %v3468_v17  ;;  %v622_v41 = vsel %vm611_vm4, %v3469_v14, %v3453_v58  ;;  %v899_v17 = vld [vmem:[%s6226_s2 + $0x30] sm:$0xff] }
  0xc3   : > { %640 = vmatpush.msra.mxu1 %v623_v33  ;;  %663 = vmatpush.msra.mxu2 %v616_v34  ;;  %v614_v39 = vsel %vm611_vm4, %v3454_v57, %v3469_v14  ;;  %v620_v18 = vsel %vm611_vm4, %v3474_v36, %v3463_v23  ;;  %v612_v42 = vsel %vm611_vm4, %v3464_v22, %v3474_v36 }
  0xc4   : > { %680 = vmatpush.msra.mxu3 %v615_v35  ;;  %3226 = vmatmul.msk.f32.vlgmr.msra.gmra.mxu2 %vm356_vm2, %v624_v2  ;;  %v891_v9 = vsel %vm886_vm5, %v3518_v54, %v3519_v53 }
  0xc5   : > { %750 = vmatpush.msrb.mxu2 %v4263_v3  ;;  %641 = vmatpush.msra.mxu1 %v622_v41  ;;  %v613_v3 = vsel %vm611_vm4, %v3459_v52, %v3473_v24 }
  0xc6   : > { %681 = vmatpush.msra.mxu3 %v614_v39 }
  0xc7   : > { %915 = vmatpush.msra.mxu2 %v894_v37  ;;  %v3482_v16 = vpop.permute.xlu1 %3481  ;;  %v3477_v26 = vpop.permute.xlu0 %3476  ;;  %642 = vmatpush.msra.mxu1 %v621_v20 }
  0xc8   : > { %3228 = vmatmul.msk.f32.vlgmr.msrb.gmra.mxu0 %vm356_vm2, %v691_v38  ;;  %v3484_v21 = vunpack.i.h.bf16 %v3482_v16  ;;  %v3483_v10 = vunpack.i.l.bf16 %v3482_v16  ;;  %v3479_v19 = vunpack.i.h.bf16 %v3477_v26  ;;  %v3478_v40 = vunpack.i.l.bf16 %v3477_v26  ;;  %682 = vmatpush.msra.mxu3 %v613_v3  ;;  %v3532_v52 = vpop.permute.xlu2 %3531 }
  0xc9   : > { %643 = vmatpush.msra.mxu1 %v620_v18  ;;  %v3533_v60 = vunpack.i.l.bf16 %v3532_v52  ;;  %v3534_v12 = vunpack.i.h.bf16 %v3532_v52  ;;  %v1003_v52 = vld [vmem:[%s6226_s2 + $0x38] sm:$0xff]  ;;  %3687 = vrot.lane.b32.xlu2 %v6239_v0, %s4156_s19 }
  0xca   : > { %683 = vmatpush.msra.mxu3 %v612_v42  ;;  %v790_v43 = vsel %vm782_vm6, %v3478_v40, %v3479_v19  ;;  %v789_v29 = vsel %vm782_vm6, %v3483_v10, %v3484_v21  ;;  %3225 = vmatmul.msk.f32.vlgmr.msra.gmra.mxu1 %vm356_vm2, %v624_v2 }
  0xcb   : > { %730 = vmatpush.msrb.mxu1 %v4257_v1  ;;  %3227 = vmatmul.msk.f32.vlgmr.msra.gmra.mxu3 %vm356_vm2, %v624_v2  ;;  %v783_v33 = vsel %vm782_vm6, %v3504_v44, %v3534_v12  ;;  %v791_v34 = vsel %vm782_vm6, %v3534_v12, %v3503_v45 }
  0xcc   : > { %811 = vmatpush.msrb.mxu3 %v790_v43  ;;  %3230 = vmatmul.msk.f32.vlgmr.msrb.gmra.mxu2 %vm356_vm2, %v691_v38 }
  0xce   : > { %812 = vmatpush.msrb.mxu3 %v789_v29 }
  0xcf   : > { %v4630_v46 = vpop.permute.xlu1 %3496  ;;  %v3492_v47 = vpop.permute.xlu0 %3491 }
  0xd0   : > { %v3499_v27 = vunpack.i.h.bf16 %v4630_v46  ;;  %v3498_v30 = vunpack.i.l.bf16 %v4630_v46  ;;  %v3494_v11 = vunpack.i.h.bf16 %v3492_v47  ;;  %v3493_v1 = vunpack.i.l.bf16 %v3492_v47  ;;  %v4681_v41 = vpop.permute.xlu2 %3546  ;;  %v1174_v47 = vld [vmem:[%s6227_s3] sm:$0xff] }
  0xd1   : > { %v3549_v56 = vunpack.i.h.bf16 %v4681_v41 }
  0xd2   : > { %v788_v28 = vsel %vm782_vm6, %v3493_v1, %v3494_v11  ;;  %v893_v48 = vsel %vm886_vm5, %v3498_v30, %v3499_v27  ;;  %3229 = vmatmul.msk.f32.vlgmr.msrb.gmra.mxu1 %vm356_vm2, %v691_v38  ;;  %v784_v22 = vsel %vm782_vm6, %v3494_v11, %v3533_v60  ;;  %v792_v23 = vsel %vm782_vm6, %v3533_v60, %v3493_v1 }
  0xd3   : > { %813 = vmatpush.msrb.mxu3 %v788_v28  ;;  %916 = vmatpush.msra.mxu2 %v893_v48  ;;  %v4159_v1 = vmov 0  }
  0xd4   : > { %3595 = vset.pattern.permute.xlu0 %v4159_v1  ;;  %3836 = vset.pattern.permute.xlu2 %v4159_v1 }
  0xd5   : > { %814 = vmatpush.msrb.mxu3 %v787_v50  ;;  %1177 = vperm.xlu0 %3595, %v1174_v47  }
  0xd6   : > { %3231 = vmatmul.msk.f32.vlgmr.msrb.gmra.mxu3 %vm356_vm2, %v795_v51  ;;  %4077 = vset.pattern.permute.xlu1 %v4159_v1 }
  0xd7   : > { %v3512_v55 = vpop.permute.xlu1 %3511  ;;  %v3507_v57 = vpop.permute.xlu0 %3506 }
  0xd8   : > { %v3514_v58 = vunpack.i.h.bf16 %v3512_v55  ;;  %v3513_v59 = vunpack.i.l.bf16 %v3512_v55  ;;  %v3509_v61 = vunpack.i.h.bf16 %v3507_v57  ;;  %v3508_v62 = vunpack.i.l.bf16 %v3507_v57  ;;  %v4706_v29 = vpop.permute.xlu2 %3561 }
  0xda   : > { %v786_v49 = vsel %vm782_vm6, %v3479_v19, %v3513_v59  ;;  %v794_v63 = vsel %vm782_vm6, %v3513_v59, %v3478_v40  ;;  %v892_v4 = vsel %vm886_vm5, %v3508_v62, %v3509_v61  ;;  %v785_v13 = vsel %vm782_vm6, %v3484_v21, %v3514_v58 }
  0xdb   : > { %831 = vmatpush.msra.mxu0 %v786_v49  ;;  %851 = vmatpush.msra.mxu1 %v794_v63  ;;  %v793_v14 = vsel %vm782_vm6, %v3514_v58, %v3483_v10 }
  0xdc   : > { %917 = vmatpush.msra.mxu2 %v892_v4 }
  0xdd   : > { %832 = vmatpush.msra.mxu0 %v785_v13  ;;  %852 = vmatpush.msra.mxu1 %v793_v14 }
  0xde   : > { %918 = vmatpush.msra.mxu2 %v891_v9  ;;  %3612 = vrot.lane.b32.xlu0 %v4270_v6, %s4152_s15 }
  0xdf   : > { %v4670_v24 = vpop.permute.xlu1 %3526  ;;  %v3522_v32 = vpop.permute.xlu0 %3521  ;;  %833 = vmatpush.msra.mxu0 %v784_v22  ;;  %853 = vmatpush.msra.mxu1 %v792_v23 }
  0xe0   : > { %v3529_v35 = vunpack.i.h.bf16 %v4670_v24  ;;  %v3528_v2 = vunpack.i.l.bf16 %v4670_v24  ;;  %v3524_v36 = vunpack.i.h.bf16 %v3522_v32  ;;  %v3523_v37 = vunpack.i.l.bf16 %v3522_v32  ;;  %3234 = vmatmul.msk.f32.vlgmr.msra.gmra.mxu2 %vm356_vm2, %v899_v17 }
  0xe1   : > { %834 = vmatpush.msra.mxu0 %v783_v33  ;;  %854 = vmatpush.msra.mxu1 %v791_v34 }
  0xe2   : > { %3232 = vmatmul.msk.f32.vlgmr.msra.gmra.mxu0 %vm356_vm2, %v795_v51  ;;  %v890_v38 = vsel %vm886_vm5, %v3489_v31, %v3523_v37  ;;  %v898_v39 = vsel %vm886_vm5, %v3523_v37, %v3488_v7  ;;  %v994_v20 = vsel %vm990_vm7, %v3528_v2, %v3529_v35  ;;  %v889_v16 = vsel %vm886_vm5, %v3499_v27, %v3524_v36 }
  0xe3   : > { %935 = vmatpush.msra.mxu3 %v890_v38  ;;  %955 = vmatpush.msrb.mxu0 %v898_v39  ;;  %v897_v26 = vsel %vm886_vm5, %v3524_v36, %v3498_v30  ;;  %v3548_v31 = vunpack.i.l.bf16 %v4681_v41  ;;  %v3564_v27 = vunpack.i.h.bf16 %v4706_v29  ;;  %v3563_v30 = vunpack.i.l.bf16 %v4706_v29 }
  0xe4   : > { %1039 = vmatpush.msrb.mxu2 %v994_v20  ;;  %3233 = vmatmul.msk.f32.vlgmr.msra.gmra.mxu1 %vm356_vm2, %v795_v51 }
  0xe5   : > { %936 = vmatpush.msra.mxu3 %v889_v16  ;;  %956 = vmatpush.msrb.mxu0 %v897_v26  ;;  %v992_v46 = vsel %vm990_vm7, %v3548_v31, %v3549_v56  ;;  %v1106_v57 = vsel %vm1094_vm8, %v3564_v27, %v3563_v30  ;;  %v1107_v26 = vld [vmem:[%s6226_s2 + $0x40] sm:$0xff] }
  0xe6   : > { %3627 = vrot.lane.b32.xlu0 %v4313_v8, %s4151_s10  ;;  %v4811_v8 = vld [vmem:[%s4254_s14] sm:$0xff] }
  0xe7   : > { %v3542_v7 = vpop.permute.xlu1 %3541  ;;  %v3537_v3 = vpop.permute.xlu0 %3536 }
  0xe8   : > { %v3544_v18 = vunpack.i.h.bf16 %v3542_v7  ;;  %v3543_v21 = vunpack.i.l.bf16 %v3542_v7  ;;  %v3539_v10 = vunpack.i.h.bf16 %v3537_v3  ;;  %v3538_v19 = vunpack.i.l.bf16 %v3537_v3 }
  0xea   : > { %v888_v40 = vsel %vm886_vm5, %v3509_v61, %v3538_v19  ;;  %v896_v42 = vsel %vm886_vm5, %v3538_v19, %v3508_v62  ;;  %v993_v43 = vsel %vm990_vm7, %v3543_v21, %v3544_v18  ;;  %v887_v44 = vsel %vm886_vm5, %v3519_v53, %v3539_v10  ;;  %v3577_v61 = vpop.permute.xlu2 %3576 }
  0xeb   : > { %937 = vmatpush.msra.mxu3 %v888_v40  ;;  %957 = vmatpush.msrb.mxu0 %v896_v42  ;;  %v895_v45 = vsel %vm886_vm5, %v3539_v10, %v3518_v54  ;;  %v3579_v62 = vunpack.i.h.bf16 %v3577_v61  ;;  %v3578_v60 = vunpack.i.l.bf16 %v3577_v61  ;;  %v4814_v40 = vld [vmem:[%s4254_s14 + $0x10] sm:$0xff] }
  0xec   : > { %1040 = vmatpush.msrb.mxu2 %v993_v43  ;;  %v3646_v42 = vpack.i.bf16 %v4811_v8, %v4814_v40  ;;  %v3661_v43 = vpack.i.bf16 %v4814_v40, %v6239_v0 }
  0xed   : > { %938 = vmatpush.msra.mxu3 %v887_v44  ;;  %958 = vmatpush.msrb.mxu0 %v895_v45  ;;  %v1104_v32 = vsel %vm1094_vm8, %v3579_v62, %v3578_v60 }
  0xee   : > { %3235 = vmatmul.msk.f32.vlgmr.msra.gmra.mxu3 %vm356_vm2, %v899_v17  ;;  %3236 = vmatmul.msk.f32.vlgmr.msrb.gmra.mxu0 %vm356_vm2, %v899_v17 }
  0xef   : > { %v3557_v25 = vpop.permute.xlu1 %3556  ;;  %v3552_v11 = vpop.permute.xlu0 %3551  ;;  %1041 = vmatpush.msrb.mxu2 %v992_v46  ;;  %3637 = vrot.lane.b32.xlu0 %v6239_v0, %s4153_s16 }
  0xf0   : > { %v3559_v28 = vunpack.i.h.bf16 %v3557_v25  ;;  %v3558_v48 = vunpack.i.l.bf16 %v3557_v25  ;;  %v3554_v50 = vunpack.i.h.bf16 %v3552_v11  ;;  %v3553_v51 = vunpack.i.l.bf16 %v3552_v11  ;;  %3647 = vrot.lane.b32.xlu1 %v3646_v42, %s4153_s16 }
  0xf2   : > { %v998_v53 = vsel %vm990_vm7, %v3553_v51, %v3528_v2  ;;  %v991_v54 = vsel %vm990_vm7, %v3554_v50, %v3558_v48  ;;  %v1002_v55 = vsel %vm990_vm7, %v3529_v35, %v3553_v51  ;;  %v997_v58 = vsel %vm990_vm7, %v3559_v28, %v3543_v21  ;;  %v3592_v34 = vpop.permute.xlu2 %3591 }
  0xf3   : > { %1019 = vmatpush.msrb.mxu1 %v998_v53  ;;  %1042 = vmatpush.msrb.mxu2 %v991_v54  ;;  %v1001_v59 = vsel %vm990_vm7, %v3544_v18, %v3559_v28  ;;  %v3593_v38 = vunpack.i.l.bf16 %v3592_v34 }
  0xf4   : > { %1059 = vmatpush.msrb.mxu3 %v1002_v55  ;;  %3238 = vmatmul.msk.f32.vlgmr.msrb.gmra.mxu2 %vm356_vm2, %v1003_v52 }
  0xf5   : > { %1020 = vmatpush.msrb.mxu1 %v997_v58  ;;  %1163 = vmatpush.msra.mxu2 %v1106_v57  ;;  %v1100_v3 = vsel %vm1094_vm8, %v3578_v60, %v3593_v38  ;;  %v1096_v18 = vsel %vm1094_vm8, %v3593_v38, %v3579_v62 }
  0xf6   : > { %1060 = vmatpush.msrb.mxu3 %v1001_v59 }
  0xf7   : > { %v3572_v49 = vpop.permute.xlu1 %3571  ;;  %v3567_v63 = vpop.permute.xlu0 %3566  ;;  %3657 = vrot.lane.b32.xlu0 %v6239_v0, %s4154_s17 }
  0xf8   : > { %v3574_v4 = vunpack.i.h.bf16 %v3572_v49  ;;  %v3573_v12 = vunpack.i.l.bf16 %v3572_v49  ;;  %v3569_v9 = vunpack.i.h.bf16 %v3567_v63  ;;  %v3568_v13 = vunpack.i.l.bf16 %v3567_v63  ;;  %3677 = vrot.lane.b32.xlu1 %v6239_v0, %s4155_s18 }
  0xfa   : > { %v996_v14 = vsel %vm990_vm7, %v3568_v13, %v3548_v31  ;;  %v1000_v17 = vsel %vm990_vm7, %v3549_v56, %v3568_v13  ;;  %v1105_v22 = vsel %vm1094_vm8, %v3574_v4, %v3573_v12  ;;  %v995_v23 = vsel %vm990_vm7, %v3569_v9, %v3554_v50 }
  0xfb   : > { %1021 = vmatpush.msrb.mxu1 %v996_v14  ;;  %1061 = vmatpush.msrb.mxu3 %v1000_v17  ;;  %v999_v24 = vsel %vm990_vm7, %v3558_v48, %v3569_v9  ;;  %v3594_v56 = vunpack.i.h.bf16 %v3592_v34 }
  0xfc   : > { %1164 = vmatpush.msra.mxu2 %v1105_v22 }
  0xfd   : > { %1022 = vmatpush.msrb.mxu1 %v995_v23  ;;  %1062 = vmatpush.msrb.mxu3 %v999_v24 }
  0xfe   : > { %3237 = vmatmul.msk.f32.vlgmr.msrb.gmra.mxu1 %vm356_vm2, %v1003_v52  ;;  %3239 = vmatmul.msk.f32.vlgmr.msrb.gmra.mxu3 %vm356_vm2, %v1003_v52 }
  0xff   : > { %v3587_v33 = vpop.permute.xlu1 %3586  ;;  %1165 = vmatpush.msra.mxu2 %v1104_v32  ;;  %v3582_v2 = vpop.permute.xlu0 %3581  ;;  %3662 = vrot.lane.b32.xlu0 %v3661_v43, %s4154_s17 }
 0x100   : > { %v3588_v35 = vunpack.i.l.bf16 %v3587_v33  ;;  %v3589_v36 = vunpack.i.h.bf16 %v3587_v33  ;;  %v3584_v37 = vunpack.i.h.bf16 %v3582_v2  ;;  %v3583_v41 = vunpack.i.l.bf16 %v3582_v2  ;;  %3682 = vrot.lane.b32.xlu1 %v3646_v42, %s4155_s18  ;;  %v4852_v42 = vld [vmem:[%s4254_s14 + $0x8] sm:$0xff] }
 0x102   : > { %v1102_v39 = vsel %vm1094_vm8, %v3563_v30, %v3584_v37  ;;  %v1098_v20 = vsel %vm1094_vm8, %v3584_v37, %v3564_v27  ;;  %v1103_v16 = vsel %vm1094_vm8, %v3588_v35, %v3583_v41  ;;  %v1101_v31 = vsel %vm1094_vm8, %v3573_v12, %v3589_v36 }
 0x103   : > { %1123 = vmatpush.msra.mxu0 %v1102_v39  ;;  %1143 = vmatpush.msra.mxu1 %v1098_v20  ;;  %v1097_v7 = vsel %vm1094_vm8, %v3589_v36, %v3574_v4  ;;  %v1099_v21 = vsel %vm1094_vm8, %v3583_v41, %v3594_v56  ;;  %v1095_v10 = vsel %vm1094_vm8, %v3594_v56, %v3588_v35  ;;  %v250_v36 = vld [vmem:[%s6225_s1] sm:$0x7] }
 0x104   : > { %1166 = vmatpush.msra.mxu2 %v1103_v16  ;;  %v4838_v39 = vperm.slane %v250_v36, 0  ;;  %v4840_v16 = vperm.slane %v250_v36, 1 }
 0x105   : > { %3242 = vmatmul.msk.f32.vlgmr.msra.gmra.mxu2 %vm356_vm2, %v1107_v26  ;;  %1124 = vmatpush.msra.mxu0 %v1101_v31 }
 0x106   : > { %1144 = vmatpush.msra.mxu1 %v1097_v7  ;;  %6257 = vst [vmem:[#allocation6_spill] sm:$0xff] %v4838_v39 }
 0x107   : > { %1125 = vmatpush.msra.mxu0 %v1100_v3  ;;  %3672 = vrot.lane.b32.xlu0 %v6239_v0, %s4155_s18 }
 0x108   : > { %1145 = vmatpush.msra.mxu1 %v1096_v18 }
 0x109   : > { %1126 = vmatpush.msra.mxu0 %v1099_v21 }
 0x10a   : > { %1146 = vmatpush.msra.mxu1 %v1095_v10  ;;  %3240 = vmatmul.msk.f32.vlgmr.msra.gmra.mxu0 %vm356_vm2, %v1107_v26 }
 0x10b   : > { %3241 = vmatmul.msk.f32.vlgmr.msra.gmra.mxu1 %vm356_vm2, %v1107_v26 }
 0x10f   : > { %3692 = vrot.lane.b32.xlu0 %v6239_v0, %s4156_s19 }
 0x119   : > { %v440_v45 = vpop.f32.mrf.mxu3 }
 0x127   : > { %v377_v19 = vpop.f32.mrf.mxu0  ;;  %v397_v6 = vpop.f32.mrf.mxu1 }
 0x128   : > { %v441_v28 = vadd.f32 %v440_v45, %v377_v19 }
 0x12b   : > { %v417_v5 = vpop.f32.mrf.mxu2 }
 0x12f   : > { %v480_v44 = vpop.f32.mrf.mxu1 }
 0x130   : > { %v481_v12 = vadd.f32 %v480_v44, %v417_v5 }
 0x134   : > { %v460_v29 = vpop.f32.mrf.mxu0 }
 0x135   : > { %v461_v51 = vadd.f32 %v460_v29, %v397_v6 }
 0x137   : > { %v541_v46 = vpop.f32.mrf.mxu2 }
 0x138   : > { %v584_v52 = vadd.f32 %v541_v46, %v441_v28 }
 0x13c   : > { %v581_v47 = vpop.f32.mrf.mxu0 }
 0x13d   : > { %v586_v22 = vadd.f32 %v581_v47, %v481_v12 }
 0x141   : > { %v561_v30 = vpop.f32.mrf.mxu3 }
 0x142   : > { %v585_v53 = vadd.f32 %v561_v30, %v461_v51 }
 0x145   : > { %v712_v11 = vpop.f32.mrf.mxu0 }
 0x147   : > { %v645_v27 = vpop.f32.mrf.mxu1  ;;  %v665_v25 = vpop.f32.mrf.mxu2 }
 0x148   : > { %v688_v55 = vadd.f32 %v645_v27, %v584_v52  ;;  %v689_v59 = vadd.f32 %v665_v25, %v585_v53  ;;  %v1178_v34 = vpop.permute.xlu0 %1177 }
 0x14a   : > { %v755_v61 = vadd.f32 %v712_v11, %v688_v55  ;;  %v4871_v11 = vperm.slane %v250_v36, 2 }
 0x14c   : > { %6258 = vst [vmem:[#allocation7_spill] sm:$0xff] %v4871_v11 }
 0x14e   : > { %v685_v48 = vpop.f32.mrf.mxu3 }
 0x14f   : > { %v732_v1 = vpop.f32.mrf.mxu1  ;;  %v752_v50 = vpop.f32.mrf.mxu2  ;;  %v690_v37 = vadd.f32 %v685_v48, %v586_v22 }
 0x150   : > { %v756_v60 = vadd.f32 %v732_v1, %v689_v59 }
 0x151   : > { %v757_v56 = vadd.f32 %v752_v50, %v690_v37  ;;  %v3603_v50 = vpop.permute.xlu2 %3602 }
 0x159   : > { %v816_v58 = vpop.f32.mrf.mxu3 }
 0x15a   : > { %v859_v63 = vadd.f32 %v816_v58, %v755_v61  ;;  %v4910_v58 = vpop.permute.xlu2 %3607  ;;  %v3598_v61 = vpop.permute.xlu1 %3597 }
 0x15b   : > { %v3610_v59 = vunpack.i.h.bf16 %v4910_v58  ;;  %v6245_v37 = vunpack.i.l.bf16 %v4910_v58 }
 0x15f   : > { %v836_v54 = vpop.f32.mrf.mxu0 }
 0x160   : > { %v860_v13 = vadd.f32 %v836_v54, %v756_v60  ;;  %v4900_v54 = vpop.permute.xlu0 %3612  ;;  %v3600_v60 = vunpack.i.h.bf16 %v3598_v61 }
 0x161   : > { %v856_v57 = vpop.f32.mrf.mxu1 }
 0x162   : > { %v861_v10 = vadd.f32 %v856_v57, %v757_v56  ;;  %v4934_v22 = vpop.permute.xlu2 %3622 }
 0x163   : > { %v920_v62 = vpop.f32.mrf.mxu2 }
 0x164   : > { %v963_v14 = vadd.f32 %v920_v62, %v859_v63  ;;  %v3776_v63 = vpack.i.bf16 %v4811_v8, %v6239_v0 }
 0x168   : > { %v4919_v62 = vpop.permute.xlu0 %3627 }
 0x16a   : > { %v4952_v36 = vpop.permute.xlu2 %3632 }
 0x16b   : > { %v960_v49 = vpop.f32.mrf.mxu0 }
 0x16c   : > { %v965_v29 = vadd.f32 %v960_v49, %v861_v10  ;;  %v3599_v49 = vunpack.i.l.bf16 %v3598_v61  ;;  %v4978_v10 = vpack.i.bf16 %v4852_v42, %v4811_v8 }
 0x16e   : > { %v1285_v12 = vsel %vm342_vm1, %v3599_v49, %v3610_v59 }
 0x16f   : > { %1326 = vmatpush.msrb.mxu0 %v1285_v12 }
 0x171   : > { %v940_v9 = vpop.f32.mrf.mxu3 }
 0x172   : > { %v964_v23 = vadd.f32 %v940_v9, %v860_v13  ;;  %v1281_v9 = vsel %vm342_vm1, %v3610_v59, %v3600_v60  ;;  %v3605_v13 = vunpack.i.h.bf16 %v3603_v50 }
 0x173   : > { %1346 = vmatpush.msrb.mxu1 %v1281_v9 }
 0x177   : > { %v1044_v17 = vpop.f32.mrf.mxu2 }
 0x178   : > { %v1068_v32 = vadd.f32 %v1044_v17, %v964_v23  ;;  %v3615_v17 = vunpack.i.h.bf16 %v4900_v54 }
 0x17b   : > { %v1024_v4 = vpop.f32.mrf.mxu1 }
 0x17c   : > { %v1067_v24 = vadd.f32 %v1024_v4, %v963_v14  ;;  %v1289_v4 = vsel %vm342_vm1, %v3600_v60, %v3599_v49  ;;  %v3604_v14 = vunpack.i.l.bf16 %v3603_v50 }
 0x17d   : > { %1306 = vmatpush.msra.mxu3 %v1289_v4 }
 0x17e   : > { %v1288_v23 = vsel %vm342_vm1, %v3605_v13, %v3604_v14 }
 0x17f   : > { %1307 = vmatpush.msra.mxu3 %v1288_v23 }
 0x181   : > { %v1064_v6 = vpop.f32.mrf.mxu3 }
 0x182   : > { %v1069_v45 = vadd.f32 %v1064_v6, %v965_v29 }
 0x187   : > { %v1128_v33 = vpop.f32.mrf.mxu0 }
 0x188   : > { %v1171_v35 = vadd.f32 %v1128_v33, %v1067_v24  ;;  %v1148_v2 = vpop.f32.mrf.mxu1  ;;  %v1168_v44 = vpop.f32.mrf.mxu2  ;;  %v1284_v24 = vsel %vm342_vm1, %v3604_v14, %v3615_v17 }
 0x189   : > { %v1172_v41 = vadd.f32 %v1148_v2, %v1068_v32  ;;  %v1173_v46 = vadd.f32 %v1168_v44, %v1069_v45  ;;  %v1280_v32 = vsel %vm342_vm1, %v3615_v17, %v3605_v13  ;;  %1327 = vmatpush.msrb.mxu0 %v1284_v24  ;;  %v4942_v33 = vpop.permute.xlu1 %3617  ;;  %v6238_v45 = vunpack.i.h.bf16 %v4952_v36 }
 0x18a   : > { %v1180_v38 = vadd.f32 %v1178_v34, %v1171_v35  ;;  %1347 = vmatpush.msrb.mxu1 %v1280_v32  ;;  %v3751_v35 = vpack.i.bf16 %v4852_v42, %v4814_v40  ;;  %v3862_v32 = vpack.i.bf16 %v4814_v40, %v4852_v42 }
 0x18b   : > { %v1181_v20 = vadd.f32 %v1178_v34, %v1172_v41  ;;  %v1182_v30 = vadd.f32 %v1178_v34, %v1173_v46  ;;  %v3638_v34 = vpop.permute.xlu0 %3637  ;;  %v3806_v41 = vpack.i.bf16 0.0, %v4852_v42  ;;  %v6237_v46 = vunpack.i.l.bf16 %v4952_v36 }
 0x18c   : > { %vm1183_vm9 = vcmp.gt.f32.partialorder %v1180_v38, 0.0  ;;  %v1186_v26 = vmul.f32 0.1, %v1180_v38  ;;  %v3640_v56 = vunpack.i.h.bf16 %v3638_v34 }
 0x18d   : > { %vm1184_vm10 = vcmp.gt.f32.partialorder %v1181_v20, 0.0  ;;  %v1187_v31 = vmul.f32 0.1, %v1181_v20  ;;  %v1188_v25 = vmul.f32 0.1, %v1182_v30  ;;  %vm1185_vm11 = vcmp.gt.f32.partialorder %v1182_v30, 0.0 }
 0x18e   : > { %v1189_v7 = vsel %vm1183_vm9, %v1180_v38, %v1186_v26  ;;  %v6244_v38 = vunpack.i.l.bf16 %v4900_v54 }
 0x18f   : > { %v1190_v3 = vsel %vm1184_vm10, %v1181_v20, %v1187_v31  ;;  %v4843_v18 = vmul.f32 %v4838_v39, %v1189_v7  ;;  %v1191_v28 = vsel %vm1185_vm11, %v1182_v30, %v1188_v25  ;;  %v2102_v30 = vld [vmem:[%s6227_s3 + $0x8] sm:$0xff] }
 0x190   : > { %v4846_v21 = vmul.f32 %v4840_v16, %v1190_v3  ;;  %v4883_v48 = vmul.f32 %v4871_v11, %v1191_v28  ;;  %v4974_v3 = vsel %vm342_vm1, %v6244_v38, %v6245_v37  ;;  %v1290_v11 = vld [vmem:[%s6226_s2 + $0x50] sm:$0xff] }
 0x191   : > { %v3696_v19 = vpack.i.bf16 %v4843_v18, %v6239_v0  ;;  %v3711_v47 = vpack.i.bf16 %v4852_v42, %v4843_v18  ;;  %v6246_v27 = vpack.i.bf16 0.0, %v4843_v18  ;;  %v4957_v20 = vpop.permute.xlu1 %3642  ;;  %v3872_v4 = vpack.i.bf16 %v4811_v8, %v4843_v18 }
 0x192   : > { %v3706_v5 = vpack.i.bf16 0.0, %v4846_v21  ;;  %v4856_v43 = vpack.i.bf16 %v4852_v42, %v4846_v21  ;;  %v4875_v1 = vpack.i.bf16 %v4846_v21, %v4843_v18  ;;  %v3746_v51 = vpack.i.bf16 %v4846_v21, %v4811_v8 }
 0x193   : > { %3697 = vrot.lane.b32.xlu0 %v3696_v19, %s4151_s10  ;;  %v4889_v52 = vpack.i.bf16 %v4883_v48, %v4846_v21  ;;  %v4893_v53 = vpack.i.bf16 %v4883_v48, %v4843_v18  ;;  %v4904_v55 = vpack.i.bf16 %v4811_v8, %v4883_v48  ;;  %v4908_v57 = vpack.i.bf16 %v4814_v40, %v4883_v48  ;;  %v4959_v26 = vpop.permute.xlu0 %3657 }
 0x194   : > { %3707 = vrot.lane.b32.xlu2 %v3706_v5, %s4151_s10  ;;  %3702 = vrot.lane.b32.xlu1 %v4856_v43, %s4152_s15  ;;  %6259 = vst [vmem:[#allocation8_spill] sm:$0xff] %v4875_v1  ;;  %v3801_v2 = vpack.i.bf16 %v4883_v48, %v6239_v0  ;;  %v6242_v31 = vunpack.i.h.bf16 %v4957_v20  ;;  %v6241_v7 = vunpack.i.l.bf16 %v4957_v20  ;;  %v6236_v49 = vunpack.i.l.bf16 %v4959_v26 }
 0x195   : > { %v6235_v9 = vunpack.i.h.bf16 %v4959_v26 }
 0x196   : > { %v4986_v6 = vsel %vm507_vm3, %v3640_v56, %v6241_v7  ;;  %v4992_v5 = vsel %vm507_vm3, %v6242_v31, %v3640_v56  ;;  %v3857_v56 = vpack.i.bf16 %v4846_v21, %v6239_v0 }
 0x199   : > { %v4994_v29 = vpop.permute.xlu1 %3647 }
 0x19b   : > { %3712 = vrot.lane.b32.xlu0 %v3711_v47, %s4153_s16  ;;  %v4996_v44 = vpop.permute.xlu0 %3662 }
 0x19c   : > { %3757 = vrot.lane.b32.xlu2 %v6239_v0, %s4157_s20  ;;  %3717 = vrot.lane.b32.xlu1 %v6246_v27, %s4154_s17 }
 0x1a1   : > { %v5014_v28 = vpop.permute.xlu1 %3677 }
 0x1a2   : > { %v6231_v61 = vunpack.i.l.bf16 %v5014_v28  ;;  %v6232_v12 = vunpack.i.h.bf16 %v5014_v28 }
 0x1a3   : > { %3727 = vrot.lane.b32.xlu0 %v3711_v47, %s4155_s18  ;;  %v3639_v47 = vunpack.i.l.bf16 %v3638_v34  ;;  %v3673_v50 = vpop.permute.xlu0 %3672 }
 0x1a4   : > { %3772 = vrot.lane.b32.xlu2 %v4875_v1, %s4157_s20  ;;  %3722 = vrot.lane.b32.xlu1 %v4856_v43, %s4154_s17  ;;  %v3675_v60 = vunpack.i.h.bf16 %v3673_v50 }
 0x1a5   : > { %v5026_v59 = vsel %vm507_vm3, %v3639_v47, %v6237_v46 }
 0x1a6   : > { %v5040_v13 = vsel %vm782_vm6, %v3675_v60, %v6231_v61  ;;  %v5058_v23 = vsel %vm782_vm6, %v6232_v12, %v3675_v60 }
 0x1a9   : > { %v5106_v60 = vpop.permute.xlu1 %3682 }
 0x1ab   : > { %3747 = vrot.lane.b32.xlu0 %v3746_v51, %s4156_s19  ;;  %v5020_v51 = vsel %vm507_vm3, %v6238_v45, %v3639_v47 }
 0x1ac   : > { %3787 = vrot.lane.b32.xlu2 %v4889_v52, %s4153_s16  ;;  %3732 = vrot.lane.b32.xlu1 %v4893_v53, %s4152_s15 }
 0x1b3   : > { %3762 = vrot.lane.b32.xlu0 %v6239_v0, %s4157_s20 }
 0x1b4   : > { %3792 = vrot.lane.b32.xlu2 %v4904_v55, %s4154_s17  ;;  %3737 = vrot.lane.b32.xlu1 %v4908_v57, %s4151_s10 }
 0x1bb   : > { %3777 = vrot.lane.b32.xlu0 %v3776_v63, %s4157_s20 }
 0x1bc   : > { %3797 = vrot.lane.b32.xlu2 %v4889_v52, %s4155_s18  ;;  %3742 = vrot.lane.b32.xlu1 %v3696_v19, %s4156_s19  ;;  %v4980_v19 = vpop.permute.xlu2 %3652 }
 0x1c3   : > { %3812 = vrot.lane.b32.xlu0 %v4875_v1, %s4158_s26 }
 0x1c4   : > { %3802 = vrot.lane.b32.xlu2 %v3801_v2, %s4156_s19  ;;  %3752 = vrot.lane.b32.xlu1 %v3751_v35, %s4156_s19  ;;  %v5009_v25 = vpop.permute.xlu2 %3667 }
 0x1c5   : > { %v6234_v35 = vunpack.i.h.bf16 %v5009_v25  ;;  %v6233_v2 = vunpack.i.l.bf16 %v5009_v25 }
 0x1cb   : > { %3822 = vrot.lane.b32.xlu0 %v6239_v0, %s4158_s26 }
 0x1cc   : > { %3807 = vrot.lane.b32.xlu2 %v3806_v41, %s4157_s20  ;;  %3767 = vrot.lane.b32.xlu1 %v6239_v0, %s4158_s26  ;;  %v5046_v14 = vpop.permute.xlu2 %3687  ;;  %v3674_v41 = vunpack.i.l.bf16 %v3673_v50 }
 0x1ce   : > { %v5085_v47 = vsel %vm782_vm6, %v6234_v35, %v3674_v41 }
 0x1d3   : > { %3838 = vrot.lane.b32.xlu0 %v6239_v0, %s4152_s15 }
 0x1d4   : > { %3817 = vrot.lane.b32.xlu2 %v4978_v10, %s4158_s26  ;;  %3782 = vrot.lane.b32.xlu1 %v6239_v0, %s4158_s26 }
 0x1db   : > { %3848 = vrot.lane.b32.xlu0 %v3776_v63, %s4152_s15  ;;  %v3664_v63 = vunpack.i.l.bf16 %v4996_v44 }
 0x1dc   : > { %2105 = vperm.xlu2 %3836, %v2102_v30   ;;  %3827 = vrot.lane.b32.xlu1 %v4908_v57, %s4157_s20  ;;  %v5091_v30 = vsel %vm782_vm6, %v3674_v41, %v6233_v2  ;;  %v3619_v41 = vunpack.i.l.bf16 %v4942_v33 }
 0x1dd   : > { %v5052_v17 = vsel %vm611_vm4, %v6236_v49, %v3664_v63  ;;  %v5064_v24 = vsel %vm611_vm4, %v3664_v63, %v6235_v9 }
 0x1e3   : > { %3873 = vrot.lane.b32.xlu0 %v3872_v4, %s4151_s10 }
 0x1e4   : > { %3843 = vrot.lane.b32.xlu2 %v4875_v1, %s4152_s15  ;;  %3832 = vrot.lane.b32.xlu1 %v4908_v57, %s4158_s26 }
 0x1eb   : > { %3903 = vrot.lane.b32.xlu0 %v6239_v0, %s4155_s18 }
 0x1ec   : > { %3853 = vrot.lane.b32.xlu2 %v6239_v0, %s4151_s10  ;;  %3863 = vrot.lane.b32.xlu1 %v3862_v32, %s4151_s10  ;;  %v6243_v32 = vunpack.i.l.bf16 %v4934_v22 }
 0x1ee   : > { %v5073_v34 = vpop.permute.xlu2 %3707 }
 0x1f3   : > { %3918 = vrot.lane.b32.xlu0 %v4908_v57, %s4152_s15  ;;  %v5100_v57 = vpop.permute.xlu0 %3692 }
 0x1f4   : > { %3858 = vrot.lane.b32.xlu2 %v3857_v56, %s4151_s10  ;;  %3893 = vrot.lane.b32.xlu1 %v4856_v43, %s4153_s16  ;;  %v3710_v56 = vunpack.i.h.bf16 %v5073_v34 }
 0x1f6   : > { %v5096_v50 = vpop.permute.xlu2 %3757  ;;  %v1251_v35 = vsel %vm304_vm0, %v3710_v56, %v6243_v32 }
 0x1fb   : > { %3923 = vrot.lane.b32.xlu0 %v4893_v53, %s4153_s16 }
 0x1fc   : > { %3868 = vrot.lane.b32.xlu2 %v6239_v0, %s4153_s16  ;;  %3928 = vrot.lane.b32.xlu1 %v4893_v53, %s4154_s17 }
 0x1fe   : > { %v5108_v63 = vpop.permute.xlu2 %3772 }
 0x203   : > { %3933 = vrot.lane.b32.xlu0 %v4904_v55, %s4155_s18  ;;  %v3882_v55 = vpack.i.bf16 0.0, %v4811_v8 }
 0x204   : > { %3878 = vrot.lane.b32.xlu2 %v6239_v0, %s4154_s17 }
 0x205   : > { %v5114_v4 = vpop.permute.xlu0 %3697 }
 0x206   : > { %v3699_v53 = vunpack.i.l.bf16 %v5114_v4  ;;  %v5120_v61 = vpop.permute.xlu2 %3787  ;;  %v3703_v12 = vpop.permute.xlu1 %3702 }
 0x207   : > { %v3704_v32 = vunpack.i.l.bf16 %v3703_v12  ;;  %v3705_v27 = vunpack.i.h.bf16 %v3703_v12  ;;  %v6260_v12 = vpack.i.bf16 0.0, %v4843_v18 }
 0x208   : > { %v1252_v2 = vsel %vm304_vm0, %v3699_v53, %v3619_v41 }
 0x209   : > { %1369 = vmatpush.msrb.mxu2 %v1252_v2 }
 0x20b   : > { %1370 = vmatpush.msrb.mxu2 %v1251_v35 }
 0x20c   : > { %3883 = vrot.lane.b32.xlu2 %v3882_v55, %s4153_s16 }
 0x20d   : > { %v5130_v9 = vpop.permute.xlu0 %3712 }
 0x20e   : > { %v5132_v49 = vpop.permute.xlu2 %3792  ;;  %v5134_v46 = vpop.permute.xlu1 %3717 }
 0x214   : > { %3888 = vrot.lane.b32.xlu2 %v3882_v55, %s4154_s17 }
 0x215   : > { %v5137_v45 = vpop.permute.xlu0 %3727 }
 0x216   : > { %v5139_v0 = vpop.permute.xlu2 %3797  ;;  %v5141_v2 = vpop.permute.xlu1 %3722 }
 0x21c   : > { %3898 = vrot.lane.b32.xlu2 %v4856_v43, %s4154_s17  ;;  %v3620_v43 = vunpack.i.h.bf16 %v4942_v33 }
 0x21d   : > { %v5145_v35 = vpop.permute.xlu0 %3747 }
 0x21e   : > { %v5147_v7 = vpop.permute.xlu2 %3802  ;;  %v3733_v31 = vpop.permute.xlu1 %3732 }
 0x21f   : > { %v3735_v38 = vunpack.i.h.bf16 %v3733_v31  ;;  %v3734_v37 = vunpack.i.l.bf16 %v3733_v31  ;;  %v3625_v31 = vunpack.i.h.bf16 %v4934_v22 }
 0x221   : > { %v1287_v55 = vsel %vm342_vm1, %v3735_v38, %v3734_v37  ;;  %v1283_v1 = vsel %vm342_vm1, %v3734_v37, %v3704_v32  ;;  %v1279_v39 = vsel %vm342_vm1, %v3704_v32, %v3735_v38  ;;  %v6261_v37 = vunpack.i.l.bf16 %v4910_v58 }
 0x222   : > { %1308 = vmatpush.msra.mxu3 %v1287_v55  ;;  %1328 = vmatpush.msrb.mxu0 %v1283_v1  ;;  %v6262_v1 = vunpack.i.l.bf16 %v4900_v54  ;;  %v3630_v38 = vunpack.i.h.bf16 %v4919_v62  ;;  %v3629_v32 = vunpack.i.l.bf16 %v4919_v62 }
 0x223   : > { %1348 = vmatpush.msrb.mxu1 %v1279_v39  ;;  %v1282_v33 = vsel %vm342_vm1, %v6261_v37, %v3705_v27  ;;  %v3709_v37 = vunpack.i.l.bf16 %v5073_v34  ;;  %v1243_v34 = vsel %vm304_vm0, %v3625_v31, %v3710_v56 }
 0x224   : > { %3908 = vrot.lane.b32.xlu2 %v6260_v12, %s4155_s18  ;;  %1309 = vmatpush.msra.mxu3 %v4974_v3  ;;  %v1278_v39 = vsel %vm342_vm1, %v3705_v27, %v6262_v1  ;;  %v3650_v3 = vunpack.i.h.bf16 %v4994_v29  ;;  %v3700_v12 = vunpack.i.h.bf16 %v5114_v4  ;;  %v1248_v27 = vsel %vm304_vm0, %v3619_v41, %v3620_v43 }
 0x225   : > { %1329 = vmatpush.msrb.mxu0 %v1282_v33  ;;  %1349 = vmatpush.msrb.mxu1 %v1278_v39  ;;  %v5174_v55 = vpop.permute.xlu0 %3762  ;;  %v3714_v33 = vunpack.i.l.bf16 %v5130_v9  ;;  %v1244_v4 = vsel %vm304_vm0, %v3620_v43, %v3699_v53  ;;  %v3790_v39 = vunpack.i.h.bf16 %v5120_v61  ;;  %v6263_v41 = vunpack.i.l.bf16 %v4934_v22 }
 0x226   : > { %3243 = vmatmul.msk.f32.vlgmr.msra.gmra.mxu3 %vm356_vm2, %v1290_v11  ;;  %3244 = vmatmul.msk.f32.vlgmr.msrb.gmra.mxu0 %vm356_vm2, %v1290_v11  ;;  %v5183_v54 = vpop.permute.xlu2 %3807  ;;  %v3738_v62 = vpop.permute.xlu1 %3737  ;;  %v1246_v56 = vsel %vm304_vm0, %v3700_v12, %v3709_v37 }
 0x227   : > { %3245 = vmatmul.msk.f32.vlgmr.msrb.gmra.mxu1 %vm356_vm2, %v1290_v11  ;;  %1389 = vmatpush.msrb.mxu3 %v1248_v27  ;;  %v3739_v1 = vunpack.i.l.bf16 %v3738_v62  ;;  %v1247_v58 = vsel %vm304_vm0, %v6263_v41, %v3625_v31  ;;  %v6264_v11 = vunpack.i.h.bf16 %v4957_v20  ;;  %v6265_v27 = vunpack.i.l.bf16 %v4957_v20  ;;  %v1253_v41 = vld [vmem:[%s6226_s2 + $0x48] sm:$0xff] }
 0x228   : > { %1409 = vmatpush.msra.mxu0 %v1244_v4  ;;  %1469 = vmatpush.msra.mxu1 %v5020_v51  ;;  %v3740_v43 = vunpack.i.h.bf16 %v3738_v62  ;;  %v3720_v31 = vunpack.i.h.bf16 %v5134_v46  ;;  %v1450_v20 = vsel %vm507_vm3, %v3790_v39, %v3714_v33  ;;  %v3654_v62 = vunpack.i.l.bf16 %v4980_v19 }
 0x229   : > { %v1451_v53 = vsel %vm507_vm3, %v6265_v27, %v6264_v11  ;;  %1390 = vmatpush.msrb.mxu3 %v1247_v58  ;;  %v1250_v51 = vsel %vm304_vm0, %v3739_v1, %v3700_v12  ;;  %v1242_v22 = vsel %vm304_vm0, %v3709_v37, %v3739_v1  ;;  %v1245_v58 = vsel %vm304_vm0, %v3629_v32, %v3630_v38 }
 0x22a   : > { %1410 = vmatpush.msra.mxu0 %v1243_v34  ;;  %1470 = vmatpush.msra.mxu1 %v1451_v53  ;;  %v6266_v12 = vunpack.i.l.bf16 %v4994_v29  ;;  %v6267_v4 = vmov 0.0   ;;  %v1249_v1 = vsel %vm304_vm0, %v3740_v43, %v3629_v32  ;;  %v3655_v11 = vunpack.i.h.bf16 %v4980_v19 }
 0x22b   : > { %1391 = vmatpush.msrb.mxu3 %v1246_v56  ;;  %1371 = vmatpush.msrb.mxu2 %v1250_v51  ;;  %v1241_v27 = vsel %vm304_vm0, %v3630_v38, %v3740_v43  ;;  %v6268_v53 = vunpack.i.h.bf16 %v4952_v36  ;;  %v6269_v51 = vunpack.i.l.bf16 %v4952_v36  ;;  %v1551_v19 = vsel %vm611_vm4, %v3654_v62, %v3720_v31  ;;  %v1453_v38 = vld [vmem:[%s6226_s2 + $0x58] sm:$0xff] }
 0x22c   : > { %1471 = vmatpush.msra.mxu1 %v1450_v20  ;;  %1411 = vmatpush.msra.mxu0 %v1242_v22  ;;  %v1449_v37 = vsel %vm507_vm3, %v6266_v12, %v3650_v3  ;;  %v3789_v36 = vunpack.i.l.bf16 %v5120_v61  ;;  %v3724_v43 = vunpack.i.l.bf16 %v5141_v2  ;;  %v3715_v20 = vunpack.i.h.bf16 %v5130_v9 }
 0x22d   : > { %1392 = vmatpush.msrb.mxu3 %v1245_v58  ;;  %3913 = vrot.lane.b32.xlu2 %v6267_v4, %s4156_s19  ;;  %v5231_v34 = vpop.permute.xlu0 %3777  ;;  %v1444_v32 = vsel %vm507_vm3, %v6269_v51, %v6268_v53  ;;  %v3794_v58 = vunpack.i.l.bf16 %v5132_v49  ;;  %v3719_v12 = vunpack.i.l.bf16 %v5134_v46  ;;  %v1555_v61 = vsel %vm611_vm4, %v3655_v11, %v3654_v62 }
 0x22e   : > { %1472 = vmatpush.msra.mxu1 %v1449_v37  ;;  %1372 = vmatpush.msrb.mxu2 %v1249_v1  ;;  %v5242_v22 = vpop.permute.xlu2 %3817  ;;  %v5244_v56 = vpop.permute.xlu1 %3742  ;;  %v3725_v37 = vunpack.i.h.bf16 %v5141_v2  ;;  %v3795_v1 = vunpack.i.h.bf16 %v5132_v49  ;;  %v1442_v62 = vsel %vm507_vm3, %v3789_v36, %v3790_v39  ;;  %v6272_v53 = vunpack.i.l.bf16 %v4994_v29 }
 0x22f   : > { %1412 = vmatpush.msra.mxu0 %v1241_v27  ;;  %1509 = vmatpush.msra.mxu3 %v1444_v32  ;;  %v6271_v27 = vunpack.i.h.bf16 %v4959_v26  ;;  %v1553_v39 = vsel %vm611_vm4, %v3794_v58, %v3719_v12  ;;  %v1547_v29 = vsel %vm611_vm4, %v3720_v31, %v3655_v11  ;;  %v3804_v46 = vunpack.i.l.bf16 %v5147_v7 }
 0x230   : > { %1592 = vmatpush.msrb.mxu1 %v1551_v19  ;;  %3246 = vmatmul.msk.f32.vlgmr.msrb.gmra.mxu2 %vm356_vm2, %v1253_v41  ;;  %v1441_v51 = vsel %vm507_vm3, %v3715_v20, %v6272_v53  ;;  %v3694_v11 = vunpack.i.l.bf16 %v5100_v57  ;;  %v3685_v2 = vunpack.i.h.bf16 %v5106_v60  ;;  %v3690_v53 = vunpack.i.h.bf16 %v5046_v14 }
 0x231   : > { %3247 = vmatmul.msk.f32.vlgmr.msrb.gmra.mxu3 %vm356_vm2, %v1253_v41  ;;  %3248 = vmatmul.msk.f32.vlgmr.msra.gmra.mxu0 %vm356_vm2, %v1253_v41  ;;  %v6270_v41 = vunpack.i.l.bf16 %v4959_v26  ;;  %v3665_v26 = vunpack.i.h.bf16 %v4996_v44  ;;  %v1548_v44 = vsel %vm611_vm4, %v3795_v1, %v3725_v37 }
 0x232   : > { %3249 = vmatmul.msk.f32.vlgmr.msra.gmra.mxu1 %vm356_vm2, %v1453_v38  ;;  %1489 = vmatpush.msra.mxu2 %v5026_v59 }
 0x233   : > { %1572 = vmatpush.msrb.mxu0 %v1555_v61  ;;  %1510 = vmatpush.msra.mxu3 %v4986_v6  ;;  %v1554_v59 = vsel %vm611_vm4, %v6271_v27, %v6270_v41  ;;  %v1549_v6 = vsel %vm611_vm4, %v3719_v12, %v3724_v43  ;;  %v1552_v19 = vsel %vm611_vm4, %v3665_v26, %v3795_v1  ;;  %v6273_v12 = vunpack.i.h.bf16 %v5009_v25 }
 0x234   : > { %1593 = vmatpush.msrb.mxu1 %v5052_v17  ;;  %1490 = vmatpush.msra.mxu2 %v4992_v5  ;;  %v1446_v5 = vsel %vm507_vm3, %v3714_v33, %v3789_v36  ;;  %v1445_v33 = vsel %vm507_vm3, %v3650_v3, %v3715_v20  ;;  %v5322_v3 = vld [vmem:[%s6226_s2 + $0x60] sm:$0xff]  ;;  %v3689_v36 = vunpack.i.l.bf16 %v5046_v14  ;;  %v3695_v20 = vunpack.i.h.bf16 %v5100_v57 }
 0x235   : > { %1573 = vmatpush.msrb.mxu0 %v1554_v59  ;;  %1511 = vmatpush.msra.mxu3 %v1442_v62  ;;  %v5286_v17 = vpop.permute.xlu0 %3812  ;;  %v3800_v27 = vunpack.i.h.bf16 %v5139_v0  ;;  %v3799_v59 = vunpack.i.l.bf16 %v5139_v0  ;;  %v3745_v62 = vunpack.i.h.bf16 %v5244_v56 }
 0x236   : > { %1594 = vmatpush.msrb.mxu1 %v1549_v6  ;;  %1491 = vmatpush.msra.mxu2 %v1446_v5  ;;  %v5297_v9 = vpop.permute.xlu2 %2105  ;;  %v5299_v32 = vpop.permute.xlu1 %3752  ;;  %v1823_v6 = vsel %vm886_vm5, %v3694_v11, %v3804_v46  ;;  %v1544_v5 = vsel %vm611_vm4, %v3725_v37, %v3665_v26  ;;  %v3749_v37 = vunpack.i.l.bf16 %v5145_v35 }
 0x237   : > { %1574 = vmatpush.msrb.mxu0 %v1553_v39  ;;  %1512 = vmatpush.msra.mxu3 %v1441_v51  ;;  %v3755_v49 = vunpack.i.h.bf16 %v5299_v32  ;;  %v3684_v39 = vunpack.i.l.bf16 %v5106_v60  ;;  %v3760_v51 = vunpack.i.h.bf16 %v5096_v50 }
 0x238   : > { %1595 = vmatpush.msrb.mxu1 %v1548_v44  ;;  %1492 = vmatpush.msra.mxu2 %v1445_v33  ;;  %v3759_v44 = vunpack.i.l.bf16 %v5096_v50  ;;  %v1623_v33 = vld [vmem:[%s6226_s2 + $0x68] sm:$0xff] }
 0x239   : > { %1575 = vmatpush.msrb.mxu0 %v1552_v19  ;;  %1641 = vmatpush.msrb.mxu3 %v4843_v18 }
 0x23a   : > { %1681 = vmatpush.msra.mxu1 %v4883_v48  ;;  %3978 = vrot.lane.b32.xlu2 %v6267_v4, %s4157_s20  ;;  %v1927_v14 = vsel %vm990_vm7, %v3759_v44, %v3760_v51 }
 0x23b   : > { %1612 = vmatpush.msrb.mxu2 %v1547_v29  ;;  %1661 = vmatpush.msra.mxu0 %v4846_v21  ;;  %v3765_v29 = vunpack.i.h.bf16 %v5174_v55 }
 0x23c   : > { %3250 = vmatmul.msk.f32.vlgmr.msra.gmra.mxu2 %vm356_vm2, %v1453_v38  ;;  %3251 = vmatmul.msk.f32.vlgmr.msra.gmra.mxu3 %vm356_vm2, %v1453_v38  ;;  %v6274_v38 = vunpack.i.l.bf16 %v5009_v25  ;;  %v1545_v25 = vsel %vm611_vm4, %v3724_v43, %v3794_v58  ;;  %v6275_v43 = vunpack.i.h.bf16 %v5014_v28  ;;  %v6276_v58 = vunpack.i.l.bf16 %v5014_v28 }
 0x23d   : > { %3252 = vmatmul.msk.f32.vlgmr.msrb.gmra.mxu0 %vm356_vm2, %v5322_v3  ;;  %3253 = vmatmul.msk.f32.vlgmr.msrb.gmra.mxu1 %vm356_vm2, %v5322_v3  ;;  %v5334_v31 = vpop.permute.xlu0 %3822 }
 0x23e   : > { %1642 = vmatpush.msrb.mxu3 %v4811_v8  ;;  %1682 = vmatpush.msra.mxu1 %v4814_v40  ;;  %v1717_v61 = vsel %vm782_vm6, %v6274_v38, %v6273_v12  ;;  %v5345_v1 = vpop.permute.xlu2 %3843  ;;  %v5347_v41 = vpop.permute.xlu1 %3767  ;;  %v1824_v8 = vsel %vm886_vm5, %v3689_v36, %v3695_v20  ;;  %v3729_v40 = vunpack.i.l.bf16 %v5137_v45  ;;  %v3810_v12 = vunpack.i.h.bf16 %v5183_v54 }
 0x23f   : > { %1613 = vmatpush.msrb.mxu2 %v5064_v24  ;;  %1662 = vmatpush.msra.mxu0 %v4852_v42  ;;  %v3730_v42 = vunpack.i.h.bf16 %v5137_v45  ;;  %v3750_v24 = vunpack.i.h.bf16 %v5145_v35  ;;  %v3779_v38 = vunpack.i.l.bf16 %v5231_v34 }
 0x240   : > { %1762 = vmatpush.msra.mxu3 %v1717_v61  ;;  %1845 = vmatpush.msrb.mxu1 %v1824_v8  ;;  %v1723_v26 = vsel %vm782_vm6, %v3800_v27, %v3729_v40  ;;  %v3744_v8 = vunpack.i.l.bf16 %v5244_v56 }
 0x241   : > { %1782 = vmatpush.msrb.mxu0 %v5085_v47  ;;  %1614 = vmatpush.msrb.mxu2 %v1545_v25  ;;  %v1724_v47 = vsel %vm782_vm6, %v6276_v58, %v6275_v43  ;;  %v1822_v28 = vsel %vm886_vm5, %v3745_v62, %v3750_v24  ;;  %v1714_v60 = vsel %vm782_vm6, %v3730_v42, %v3684_v39  ;;  %v3775_v25 = vunpack.i.h.bf16 %v5108_v63 }
 0x242   : > { %1763 = vmatpush.msra.mxu3 %v5040_v13  ;;  %1846 = vmatpush.msrb.mxu1 %v1823_v6  ;;  %v1715_v13 = vsel %vm782_vm6, %v3799_v59, %v3800_v27  ;;  %v3774_v6 = vunpack.i.l.bf16 %v5108_v63  ;;  %v3764_v43 = vunpack.i.l.bf16 %v5174_v55  ;;  %v1722_v58 = vsel %vm782_vm6, %v3684_v39, %v3685_v2 }
 0x243   : > { %1783 = vmatpush.msrb.mxu0 %v1724_v47  ;;  %1615 = vmatpush.msrb.mxu2 %v1544_v5  ;;  %v3809_v47 = vunpack.i.l.bf16 %v5183_v54  ;;  %v3780_v5 = vunpack.i.h.bf16 %v5231_v34  ;;  %v1923_v39 = vsel %vm990_vm7, %v3760_v51, %v3779_v38  ;;  %v1718_v57 = vsel %vm782_vm6, %v3685_v2, %v3730_v42  ;;  %v2035_v34 = vld [vmem:[%s6226_s2 + $0x88] sm:$0xff] }
 0x244   : > { %1764 = vmatpush.msra.mxu3 %v1715_v13  ;;  %1847 = vmatpush.msrb.mxu1 %v1822_v28  ;;  %v1820_v13 = vsel %vm886_vm5, %v3695_v20, %v3690_v53  ;;  %v3754_v20 = vunpack.i.l.bf16 %v5299_v32  ;;  %v1719_v28 = vsel %vm782_vm6, %v3729_v40, %v3799_v59  ;;  %v1925_v0 = vsel %vm990_vm7, %v3774_v6, %v3775_v25 }
 0x245   : > { %1742 = vmatpush.msra.mxu2 %v5091_v30  ;;  %1784 = vmatpush.msrb.mxu0 %v1723_v26  ;;  %v5416_v19 = vpop.permute.xlu0 %3838  ;;  %v1821_v30 = vsel %vm886_vm5, %v3749_v37, %v3755_v49  ;;  %v1827_v26 = vsel %vm886_vm5, %v3744_v8, %v3694_v11  ;;  %v3770_v59 = vunpack.i.h.bf16 %v5347_v41  ;;  %v1924_v40 = vsel %vm990_vm7, %v3780_v5, %v3809_v47 }
 0x246   : > { %3988 = vrot.lane.b32.xlu2 %v4978_v10, %s4156_s19  ;;  %1765 = vmatpush.msra.mxu3 %v1714_v60  ;;  %v5429_v61 = vpop.permute.xlu2 %3853  ;;  %v5431_v27 = vpop.permute.xlu1 %3782  ;;  %v3769_v60 = vunpack.i.l.bf16 %v5347_v41  ;;  %v1931_v32 = vsel %vm990_vm7, %v3779_v38, %v3759_v44  ;;  %v1930_v44 = vsel %vm990_vm7, %v3810_v12, %v3764_v43  ;;  %v1932_v38 = vld [vmem:[%s6226_s2 + $0x80] sm:$0xff] }
 0x247   : > { %1848 = vmatpush.msrb.mxu1 %v1821_v30  ;;  %3254 = vmatmul.msk.f32.vlgmr.msrb.gmra.mxu2 %vm356_vm2, %v5322_v3  ;;  %v1828_v3 = vsel %vm886_vm5, %v3690_v53, %v3689_v36  ;;  %v3805_v36 = vunpack.i.h.bf16 %v5147_v7  ;;  %v1926_v53 = vsel %vm990_vm7, %v3764_v43, %v3765_v29  ;;  %v3855_v45 = vunpack.i.l.bf16 %v5429_v61 }
 0x248   : > { %3255 = vmatmul.msk.f32.vlgmr.msrb.gmra.mxu3 %vm356_vm2, %v1623_v33  ;;  %3256 = vmatmul.msk.f32.vlgmr.msra.gmra.mxu0 %vm356_vm2, %v1623_v33  ;;  %v3785_v56 = vunpack.i.h.bf16 %v5431_v27  ;;  %v3784_v42 = vunpack.i.l.bf16 %v5431_v27  ;;  %v1825_v30 = vsel %vm886_vm5, %v3754_v20, %v3749_v37  ;;  %v3815_v37 = vunpack.i.h.bf16 %v5286_v17  ;;  %v5658_v27 = vld [vmem:[%s4254_s14] sm:$0xff] }
 0x249   : > { %3257 = vmatmul.msk.f32.vlgmr.msra.gmra.mxu1 %vm356_vm2, %v1623_v33  ;;  %1743 = vmatpush.msra.mxu2 %v5058_v23  ;;  %v1922_v23 = vsel %vm990_vm7, %v3765_v29, %v3810_v12  ;;  %v1826_v11 = vsel %vm886_vm5, %v3805_v36, %v3745_v62  ;;  %v3825_v33 = vunpack.i.h.bf16 %v5334_v31  ;;  %v3824_v29 = vunpack.i.l.bf16 %v5334_v31 }
 0x24a   : > { %1785 = vmatpush.msrb.mxu0 %v1722_v58  ;;  %1885 = vmatpush.msrb.mxu3 %v1828_v3  ;;  %v1726_v58 = vld [vmem:[%s6226_s2 + $0x70] sm:$0xff]  ;;  %v2030_v7 = vsel %vm1094_vm8, %v3769_v60, %v3770_v59 }
 0x24b   : > { %1968 = vmatpush.msra.mxu1 %v1923_v39  ;;  %1744 = vmatpush.msra.mxu2 %v1719_v28  ;;  %v3820_v39 = vunpack.i.h.bf16 %v5242_v22  ;;  %v3814_v28 = vunpack.i.l.bf16 %v5286_v17  ;;  %v2034_v54 = vsel %vm1094_vm8, %v3824_v29, %v3769_v60  ;;  %v2033_v41 = vsel %vm1094_vm8, %v3825_v33, %v3784_v42 }
 0x24c   : > { %1948 = vmatpush.msra.mxu0 %v1927_v14  ;;  %1886 = vmatpush.msrb.mxu3 %v1827_v26  ;;  %v3819_v14 = vunpack.i.l.bf16 %v5242_v22  ;;  %v1818_v26 = vsel %vm886_vm5, %v3750_v24, %v3805_v36 }
 0x24d   : > { %1969 = vmatpush.msra.mxu1 %v1922_v23  ;;  %v5504_v51 = vpop.permute.xlu0 %3848  ;;  %1745 = vmatpush.msra.mxu2 %v1718_v57 }
 0x24e   : > { %1949 = vmatpush.msra.mxu0 %v1926_v53  ;;  %1887 = vmatpush.msrb.mxu3 %v1826_v11  ;;  %v5510_v62 = vpop.permute.xlu2 %3858  ;;  %v5512_v2 = vpop.permute.xlu1 %3827  ;;  %v2025_v53 = vsel %vm1094_vm8, %v3785_v56, %v3825_v33  ;;  %v2027_v36 = vsel %vm1094_vm8, %v3819_v14, %v3820_v39  ;;  %v3856_v11 = vunpack.i.h.bf16 %v5429_v61 }
 0x24f   : > { %1865 = vmatpush.msrb.mxu2 %v1820_v13  ;;  %v3860_v3 = vunpack.i.l.bf16 %v5510_v62  ;;  %4003 = vrot.lane.b32.xlu2 %v4978_v10, %s4157_s20  ;;  %v1819_v13 = vsel %vm886_vm5, %v3804_v46, %v3744_v8  ;;  %v3829_v23 = vunpack.i.l.bf16 %v5512_v2  ;;  %v2029_v10 = vsel %vm1094_vm8, %v3784_v42, %v3785_v56  ;;  %v1829_v46 = vld [vmem:[%s6226_s2 + $0x78] sm:$0xff] }
 0x250   : > { %1950 = vmatpush.msra.mxu0 %v1925_v0  ;;  %1888 = vmatpush.msrb.mxu3 %v1825_v30  ;;  %v2026_v8 = vsel %vm1094_vm8, %v3770_v59, %v3824_v29  ;;  %v1817_v0 = vsel %vm886_vm5, %v3755_v49, %v3754_v20  ;;  %v2028_v49 = vsel %vm1094_vm8, %v3814_v28, %v3815_v37  ;;  %v3830_v20 = vunpack.i.h.bf16 %v5512_v2 }
 0x251   : > { %1866 = vmatpush.msrb.mxu2 %v1819_v13  ;;  %3259 = vmatmul.msk.f32.vlgmr.msra.gmra.mxu3 %vm356_vm2, %v1726_v58  ;;  %v5554_v17 = vsel %vm304_vm0, %v3860_v3, %v3855_v45  ;;  %v1921_v35 = vsel %vm990_vm7, %v3775_v25, %v3829_v23  ;;  %v1929_v59 = vsel %vm990_vm7, %v3829_v23, %v3774_v6 }
 0x252   : > { %1951 = vmatpush.msra.mxu0 %v1924_v40  ;;  %3258 = vmatmul.msk.f32.vlgmr.msra.gmra.mxu2 %vm356_vm2, %v1726_v58  ;;  %v1920_v63 = vsel %vm990_vm7, %v3809_v47, %v3830_v20  ;;  %v1928_v12 = vsel %vm990_vm7, %v3830_v20, %v3780_v5  ;;  %v4072_v40 = vpack.i.bf16 %v5658_v27, %v4843_v18 }
 0x253   : > { %3260 = vmatmul.msk.f32.vlgmr.msrb.gmra.mxu0 %vm356_vm2, %v1726_v58  ;;  %2051 = vmatpush.msra.mxu3 %v2030_v7  ;;  %v2173_v22 = vsel %vm304_vm0, %v3856_v11, %v3860_v3 }
 0x254   : > { %2071 = vmatpush.msrb.mxu0 %v2026_v8  ;;  %1867 = vmatpush.msrb.mxu2 %v1818_v26 }
 0x255   : > { %2052 = vmatpush.msra.mxu3 %v2029_v10  ;;  %3261 = vmatmul.msk.f32.vlgmr.msrb.gmra.mxu1 %vm356_vm2, %v1829_v46  ;;  %v5578_v24 = vpop.permute.xlu0 %3873 }
 0x256   : > { %1868 = vmatpush.msrb.mxu2 %v1817_v0  ;;  %2072 = vmatpush.msrb.mxu0 %v2025_v53  ;;  %v3833_v25 = vpop.permute.xlu1 %3832 }
 0x257   : > { %2053 = vmatpush.msra.mxu3 %v2028_v49  ;;  %v3834_v50 = vunpack.i.l.bf16 %v3833_v25  ;;  %4018 = vrot.lane.b32.xlu2 %v6267_v4, %s4158_s26  ;;  %v3835_v55 = vunpack.i.h.bf16 %v3833_v25 }
 0x258   : > { %1988 = vmatpush.msra.mxu2 %v1931_v32  ;;  %1970 = vmatpush.msra.mxu1 %v1921_v35 }
 0x259   : > { %2054 = vmatpush.msra.mxu3 %v2027_v36  ;;  %v2024_v57 = vsel %vm1094_vm8, %v3815_v37, %v3834_v50  ;;  %v2023_v6 = vsel %vm1094_vm8, %v3820_v39, %v3835_v55  ;;  %v2032_v47 = vsel %vm1094_vm8, %v3834_v50, %v3814_v28 }
 0x25a   : > { %1989 = vmatpush.msra.mxu2 %v1930_v44  ;;  %3263 = vmatmul.msk.f32.vlgmr.msrb.gmra.mxu3 %vm356_vm2, %v1829_v46 }
 0x25b   : > { %3262 = vmatmul.msk.f32.vlgmr.msrb.gmra.mxu2 %vm356_vm2, %v1829_v46  ;;  %3264 = vmatmul.msk.f32.vlgmr.msra.gmra.mxu0 %vm356_vm2, %v1932_v38 }
 0x25c   : > { %1990 = vmatpush.msra.mxu2 %v1929_v59  ;;  %1971 = vmatpush.msra.mxu1 %v1920_v63 }
 0x25d   : > { %2073 = vmatpush.msrb.mxu0 %v2024_v57  ;;  %3265 = vmatmul.msk.f32.vlgmr.msra.gmra.mxu1 %vm356_vm2, %v1932_v38  ;;  %v5630_v43 = vpop.permute.xlu0 %3903 }
 0x25e   : > { %1991 = vmatpush.msra.mxu2 %v1928_v12  ;;  %2091 = vmatpush.msrb.mxu1 %v2034_v54  ;;  %v5645_v5 = vpop.permute.xlu1 %3863 }
 0x25f   : > { %2074 = vmatpush.msrb.mxu0 %v2023_v6  ;;  %4058 = vrot.lane.b32.xlu2 %v4889_v52, %s4158_s26  ;;  %v2031_v52 = vsel %vm1094_vm8, %v3835_v55, %v3819_v14 }
 0x260   : > { %2092 = vmatpush.msrb.mxu1 %v2033_v41 }
 0x262   : > { %3267 = vmatmul.msk.f32.vlgmr.msra.gmra.mxu3 %vm356_vm2, %v2035_v34  ;;  %2093 = vmatpush.msrb.mxu1 %v2032_v47 }
 0x263   : > { %3266 = vmatmul.msk.f32.vlgmr.msra.gmra.mxu2 %vm356_vm2, %v1932_v38  ;;  %3268 = vmatmul.msk.f32.vlgmr.msrb.gmra.mxu0 %vm356_vm2, %v2035_v34 }
 0x264   : > { %2094 = vmatpush.msrb.mxu1 %v2031_v52 }
 0x265   : > { %v5655_v31 = vpop.permute.xlu0 %3918  ;;  %3269 = vmatmul.msk.f32.vlgmr.msrb.gmra.mxu1 %vm356_vm2, %v2035_v34 }
 0x266   : > { %2290 = vmatpush.msra.mxu1 %v2173_v22  ;;  %v5670_v60 = vpop.permute.xlu1 %3893 }
 0x267   : > { %4073 = vrot.lane.b32.xlu2 %v4072_v40, %s4158_s26  ;;  %v3895_v42 = vunpack.i.l.bf16 %v5670_v60 }
 0x26d   : > { %v5672_v56 = vpop.permute.xlu0 %3923 }
 0x26e   : > { %v6253_v2 = vunpack.i.h.bf16 %v5672_v56  ;;  %v6254_v33 = vunpack.i.l.bf16 %v5672_v56 }
 0x270   : > { %v5681_v29 = vsel %vm507_vm3, %v6254_v33, %v3895_v42  ;;  %v5687_v30 = vsel %vm507_vm3, %v3895_v42, %v6253_v2 }
 0x2a3   : > { %v1331_v58 = vpop.f32.mrf.mxu0 }
 0x2a4   : > { %v1351_v3 = vpop.f32.mrf.mxu1 }
 0x2a9   : > { %v1311_v13 = vpop.f32.mrf.mxu3 }
 0x2ae   : > { %v1414_v39 = vpop.f32.mrf.mxu0 }
 0x2af   : > { %v1474_v14 = vpop.f32.mrf.mxu1  ;;  %v1415_v44 = vadd.f32 %v1414_v39, %v1351_v3 }
 0x2b3   : > { %v1374_v37 = vpop.f32.mrf.mxu2 }
 0x2b4   : > { %v1394_v23 = vpop.f32.mrf.mxu3  ;;  %v1375_v49 = vadd.f32 %v1374_v37, %v1311_v13 }
 0x2b5   : > { %v1395_v35 = vadd.f32 %v1394_v23, %v1331_v58 }
 0x2b6   : > { %v1517_v38 = vadd.f32 %v1474_v14, %v1375_v49 }
 0x2ba   : > { %v1577_v28 = vpop.f32.mrf.mxu0  ;;  %v1597_v7 = vpop.f32.mrf.mxu1 }
 0x2bb   : > { %v1620_v63 = vadd.f32 %v1577_v28, %v1517_v38 }
 0x2bf   : > { %v1494_v10 = vpop.f32.mrf.mxu2  ;;  %v1514_v46 = vpop.f32.mrf.mxu3 }
 0x2c0   : > { %v1518_v36 = vadd.f32 %v1494_v10, %v1395_v35  ;;  %v1519_v55 = vadd.f32 %v1514_v46, %v1415_v44 }
 0x2c2   : > { %v1621_v59 = vadd.f32 %v1597_v7, %v1518_v36  ;;  %v5695_v36 = vld [vmem:[%s4254_s14 + $0x10] sm:$0xff] }
 0x2c5   : > { %v1664_v8 = vpop.f32.mrf.mxu0 }
 0x2c6   : > { %v1684_v26 = vpop.f32.mrf.mxu1  ;;  %v1688_v12 = vadd.f32 %v1664_v8, %v1621_v59  ;;  %v6277_v59 = vld [vmem:[#allocation7_spill] sm:$0xff] }
 0x2ca   : > { %v1617_v53 = vpop.f32.mrf.mxu2 }
 0x2cb   : > { %v1644_v0 = vpop.f32.mrf.mxu3  ;;  %v1622_v54 = vadd.f32 %v1617_v53, %v1519_v55 }
 0x2cc   : > { %v1687_v34 = vadd.f32 %v1644_v0, %v1620_v63  ;;  %v5708_v63 = vld [vmem:[%s4254_s14 + $0x8] sm:$0xff] }
 0x2cd   : > { %v1689_v40 = vadd.f32 %v1684_v26, %v1622_v54 }
 0x2d0   : > { %v1787_v32 = vpop.f32.mrf.mxu0 }
 0x2d1   : > { %v1792_v37 = vadd.f32 %v1787_v32, %v1689_v40  ;;  %v6279_v40 = vld [vmem:[#allocation8_spill] sm:$0xff] }
 0x2d2   : > { %v1850_v25 = vpop.f32.mrf.mxu1 }
 0x2d4   : > { %v1767_v50 = vpop.f32.mrf.mxu3 }
 0x2d5   : > { %v1747_v20 = vpop.f32.mrf.mxu2  ;;  %v1791_v41 = vadd.f32 %v1767_v50, %v1688_v12 }
 0x2d6   : > { %v1790_v22 = vadd.f32 %v1747_v20, %v1687_v34 }
 0x2d8   : > { %v1953_v57 = vpop.f32.mrf.mxu0  ;;  %v1893_v23 = vadd.f32 %v1850_v25, %v1790_v22 }
 0x2da   : > { %v1973_v6 = vpop.f32.mrf.mxu1  ;;  %v1996_v46 = vadd.f32 %v1953_v57, %v1893_v23  ;;  %v3850_v23 = vunpack.i.l.bf16 %v5504_v51 }
 0x2dd   : > { %v1890_v52 = vpop.f32.mrf.mxu3 }
 0x2de   : > { %v1870_v47 = vpop.f32.mrf.mxu2  ;;  %v1895_v39 = vadd.f32 %v1890_v52, %v1792_v37  ;;  %v3840_v37 = vunpack.i.l.bf16 %v5416_v19 }
 0x2df   : > { %v1894_v42 = vadd.f32 %v1870_v47, %v1791_v41  ;;  %v3972_v47 = vpack.i.bf16 %v5708_v63, %v4846_v21 }
 0x2e0   : > { %v2076_v13 = vpop.f32.mrf.mxu0 }
 0x2e1   : > { %v1997_v58 = vadd.f32 %v1973_v6, %v1894_v42  ;;  %v4012_v42 = vpack.i.bf16 %v5695_v36, %v4883_v48 }
 0x2e2   : > { %v2096_v28 = vpop.f32.mrf.mxu1 }
 0x2e3   : > { %v2100_v3 = vadd.f32 %v2076_v13, %v1997_v58  ;;  %v3841_v13 = vunpack.i.h.bf16 %v5416_v19  ;;  %v4062_v19 = vpack.i.bf16 %v5708_v63, %v6267_v4 }
 0x2e5   : > { %v2109_v14 = vadd.f32 %v5297_v9, %v2100_v3  ;;  %v2056_v10 = vpop.f32.mrf.mxu3  ;;  %v2210_v3 = vsel %vm342_vm1, %v3850_v23, %v3840_v37 }
 0x2e6   : > { %v1993_v7 = vpop.f32.mrf.mxu2  ;;  %v2099_v0 = vadd.f32 %v2056_v10, %v1996_v46  ;;  %2227 = vmatpush.msrb.mxu2 %v2210_v3  ;;  %v5771_v46 = vpop.permute.xlu1 %3928 }
 0x2e7   : > { %v1998_v8 = vadd.f32 %v1993_v7, %v1895_v39  ;;  %vm2112_vm12 = vcmp.gt.f32.partialorder %v2109_v14, 0.0  ;;  %v2115_v53 = vmul.f32 0.1, %v2109_v14  ;;  %v2206_v39 = vsel %vm342_vm1, %v3840_v37, %v3841_v13  ;;  %v5763_v7 = vpop.permute.xlu2 %3868 }
 0x2e8   : > { %v2108_v50 = vadd.f32 %v5297_v9, %v2099_v0  ;;  %2247 = vmatpush.msrb.mxu3 %v2206_v39  ;;  %v3845_v37 = vunpack.i.l.bf16 %v5345_v1 }
 0x2e9   : > { %v2118_v26 = vsel %vm2112_vm12, %v2109_v14, %v2115_v53  ;;  %v2101_v35 = vadd.f32 %v2096_v28, %v1998_v8  ;;  %v2202_v14 = vsel %vm342_vm1, %v3841_v13, %v3850_v23  ;;  %v3023_v28 = vld [vmem:[%s6227_s3 + $0x10] sm:$0xff]  ;;  %v5773_v8 = vpop.permute.xlu0 %3933  ;;  %v3846_v13 = vunpack.i.h.bf16 %v5345_v1 }
 0x2ea   : > { %v5691_v49 = vmul.f32 %v2118_v26, %v4840_v16  ;;  %v2114_v57 = vmul.f32 0.1, %v2108_v50  ;;  %vm2111_vm14 = vcmp.gt.f32.partialorder %v2108_v50, 0.0  ;;  %2267 = vmatpush.msra.mxu0 %v2202_v14  ;;  %v3920_v14 = vunpack.i.l.bf16 %v5655_v31 }
 0x2eb   : > { %v2110_v32 = vadd.f32 %v5297_v9, %v2101_v35  ;;  %v6278_v9 = vld [vmem:[#allocation6_spill] sm:$0xff] }
 0x2ec   : > { %v3947_v25 = vpack.i.bf16 %v5695_v36, %v5691_v49  ;;  %v3937_v20 = vpack.i.bf16 %v5691_v49, %v5695_v36  ;;  %v2117_v54 = vsel %vm2111_vm14, %v2108_v50, %v2114_v57 }
 0x2ed   : > { %vm2113_vm13 = vcmp.gt.f32.partialorder %v2110_v32, 0.0  ;;  %v2116_v44 = vmul.f32 0.1, %v2110_v32  ;;  %v5715_v6 = vmul.f32 %v2117_v54, %v6278_v9  ;;  %v3875_v54 = vunpack.i.l.bf16 %v5578_v24 }
 0x2ee   : > { %3948 = vrot.lane.b32.xlu1 %v3947_v25, %s4155_s18  ;;  %3938 = vrot.lane.b32.xlu0 %v3937_v20, %s4153_s16 }
 0x2ef   : > { %v2119_v38 = vsel %vm2113_vm13, %v2110_v32, %v2116_v44  ;;  %v3967_v34 = vpack.i.bf16 %v5715_v6, %v4883_v48  ;;  %v3962_v52 = vpack.i.bf16 %v5691_v49, %v5715_v6  ;;  %v5769_v10 = vpop.permute.xlu2 %3878 }
 0x2f0   : > { %v5705_v55 = vmul.f32 %v2119_v38, %v6277_v59 }
 0x2f2   : > { %v3952_v12 = vpack.i.bf16 %v5705_v55, %v5708_v63  ;;  %v3957_v41 = vpack.i.bf16 %v5705_v55, %v5691_v49  ;;  %v3992_v22 = vpack.i.bf16 %v5705_v55, %v6267_v4  ;;  %v4027_v58 = vpack.i.bf16 %v5705_v55, %v5715_v6 }
 0x2f3   : > { %v4067_v4 = vpack.i.bf16 %v5715_v6, %v5695_v36 }
 0x2f6   : > { %3943 = vrot.lane.b32.xlu0 %v3937_v20, %s4154_s17  ;;  %3953 = vrot.lane.b32.xlu1 %v3952_v12, %s4152_s15 }
 0x2f7   : > { %v5775_v53 = vpop.permute.xlu2 %3883 }
 0x2fe   : > { %3968 = vrot.lane.b32.xlu0 %v3967_v34, %s4151_s10  ;;  %3958 = vrot.lane.b32.xlu1 %v3957_v41, %s4151_s10  ;;  %v3866_v34 = vunpack.i.h.bf16 %v5645_v5 }
 0x2ff   : > { %v5781_v35 = vpop.permute.xlu2 %3888 }
 0x306   : > { %3973 = vrot.lane.b32.xlu0 %v3972_v47, %s4155_s18  ;;  %3963 = vrot.lane.b32.xlu1 %v3962_v52, %s4152_s15  ;;  %v3870_v47 = vunpack.i.l.bf16 %v5763_v7  ;;  %s3147_s15 = scalar_lea.hbm %s6230_s6, %s3305_s12 }
 0x307   : > { %v5785_v20 = vpop.permute.xlu2 %3898 }
 0x30e   : > { %3983 = vrot.lane.b32.xlu0 %v6279_v40, %s4156_s19  ;;  %3998 = vrot.lane.b32.xlu1 %v6279_v40, %s4157_s20  ;;  %v3876_v40 = vunpack.i.h.bf16 %v5578_v24 }
 0x30f   : > { %v5820_v23 = vpop.permute.xlu2 %3908 }
 0x316   : > { %3993 = vrot.lane.b32.xlu0 %v3992_v22, %s4156_s19  ;;  %4013 = vrot.lane.b32.xlu1 %v4012_v42, %s4156_s19 }
 0x31e   : > { %4008 = vrot.lane.b32.xlu0 %v3992_v22, %s4157_s20  ;;  %4028 = vrot.lane.b32.xlu1 %v4027_v58, %s4153_s16  ;;  %s244_s16 = scalar_lea.vmem [#allocation3], %s3303_s11 }
 0x326   : > { %4023 = vrot.lane.b32.xlu0 %v4012_v42, %s4157_s20  ;;  %4033 = vrot.lane.b32.xlu1 %v4027_v58, %s4154_s17  ;;  %v2170_v42 = vsel %vm304_vm0, %v3866_v34, %v3876_v40  ;;  %s3149_s17 = sshll.u32 %s244_s16, 4  ;;  %s3150_s17 = int_to_ptr.vmem [resolvable:$true] %s3149_s17 }
 0x32e   : > { %4063 = vrot.lane.b32.xlu0 %v4062_v19, %s4158_s26  ;;  %4038 = vrot.lane.b32.xlu1 %v4027_v58, %s4155_s18  ;;  %v5816_v58 = vld [vmem:[%s6226_s2 + $0x90] sm:$0xff]  ;;  %s3151_s18 = sshll.u32 %s3147_s15, 4  ;;  %s3152_s18 = int_to_ptr.hbm [resolvable:$true] %s3151_s18 }
 0x336   : > { %3026 = vperm.xlu0 %3595, %v3023_v28   ;;  %4043 = vrot.lane.b32.xlu1 %v3962_v52, %s4156_s19  ;;  %s4100_s19 = sshra.s32 %s3152_s18, 4  ;;  %s4101_s19 = int_to_ptr.hbm [resolvable:$true] %s4100_s19 }
 0x337   : > { %p4107_p0 = scmp.lt.s32.totalorder %s4101_s19, %s6230_s6 }
 0x33e   : > { %4048 = vrot.lane.b32.xlu1 %v3962_v52, %s4157_s20  ;;  %v3886_v52 = vunpack.i.h.bf16 %v5775_v53  ;;  %s4102_s20 = scalar_lea.hbm %s4101_s19, 24 }
 0x33f   : > { %p4103_p11 = scmp.ne.s32.totalorder %s4101_s19, %s4102_s20 }
 0x340   : > { %v2369_v39 = vsel %vm507_vm3, %v3870_v47, %v3886_v52 }
 0x341   : > { %p4104_p12 = pnand %p4103_p11, %p4233_p5 }
 0x343   : > { %p4105_p13 = pneg %p4104_p12 }
 0x346   : > { %4053 = vrot.lane.b32.xlu1 %v3957_v41, %s4158_s26 }
 0x34e   : > { %4068 = vrot.lane.b32.xlu1 %v4067_v4, %s4158_s26 }
 0x360   : > { %v5777_v0 = vpop.permute.xlu1 %3948  ;;  %v5779_v26 = vpop.permute.xlu0 %3938 }
 0x368   : > { %v5783_v32 = vpop.permute.xlu0 %3943  ;;  %v3954_v25 = vpop.permute.xlu1 %3953 }
 0x369   : > { %v3956_v19 = vunpack.i.h.bf16 %v3954_v25  ;;  %v3955_v1 = vunpack.i.l.bf16 %v3954_v25 }
 0x370   : > { %v5787_v50 = vpop.permute.xlu0 %3968  ;;  %v5789_v44 = vpop.permute.xlu1 %3958 }
 0x371   : > { %v3971_v38 = vunpack.i.h.bf16 %v5787_v50  ;;  %v3970_v57 = vunpack.i.l.bf16 %v5787_v50  ;;  %v3961_v12 = vunpack.i.h.bf16 %v5789_v44  ;;  %v3960_v25 = vunpack.i.l.bf16 %v5789_v44 }
 0x373   : > { %v2172_v41 = vsel %vm304_vm0, %v3961_v12, %v3971_v38  ;;  %v2171_v22 = vsel %vm304_vm0, %v3970_v57, %v3875_v54  ;;  %v2164_v61 = vsel %vm304_vm0, %v3960_v25, %v3961_v12 }
 0x374   : > { %2291 = vmatpush.msra.mxu1 %v2172_v41  ;;  %v3851_v41 = vunpack.i.h.bf16 %v5504_v51  ;;  %v2208_v51 = vsel %vm342_vm1, %v3920_v14, %v3845_v37 }
 0x376   : > { %2292 = vmatpush.msra.mxu1 %v2171_v22  ;;  %v3921_v22 = vunpack.i.h.bf16 %v5655_v31  ;;  %v2204_v31 = vsel %vm342_vm1, %v3845_v37, %v3846_v13  ;;  %v2165_v37 = vsel %vm304_vm0, %v3855_v45, %v3856_v11  ;;  %v3881_v45 = vunpack.i.h.bf16 %v5769_v10 }
 0x377   : > { %v3880_v11 = vunpack.i.l.bf16 %v5769_v10 }
 0x378   : > { %v3964_v3 = vpop.permute.xlu1 %3963  ;;  %2293 = vmatpush.msra.mxu1 %v2170_v42  ;;  %v2199_v44 = vsel %vm342_vm1, %v3955_v1, %v3921_v22 }
 0x379   : > { %v3966_v28 = vunpack.i.h.bf16 %v3964_v3  ;;  %v3965_v4 = vunpack.i.l.bf16 %v3964_v3  ;;  %3273 = vmatmul.msk.f32.vlgmr.msra.gmra.mxu1 %vm356_vm2, %v5816_v58  ;;  %v3871_v3 = vunpack.i.h.bf16 %v5763_v7  ;;  %v5849_v7 = vpop.permute.xlu0 %3973  ;;  %v2476_v24 = vsel %vm611_vm4, %v3881_v45, %v3880_v11 }
 0x37a   : > { %2410 = vmatpush.msrb.mxu1 %v2369_v39  ;;  %v2200_v39 = vsel %vm342_vm1, %v3846_v13, %v3920_v14  ;;  %v2211_v13 = vld [vmem:[%s6226_s2 + $0x98] sm:$0xff] }
 0x37b   : > { %v2209_v42 = vsel %vm342_vm1, %v3956_v19, %v3965_v4  ;;  %v2205_v2 = vsel %vm342_vm1, %v3965_v4, %v3966_v28  ;;  %v2201_v33 = vsel %vm342_vm1, %v3966_v28, %v3956_v19  ;;  %v2373_v14 = vsel %vm507_vm3, %v3871_v3, %v3870_v47 }
 0x37c   : > { %2228 = vmatpush.msrb.mxu2 %v2209_v42  ;;  %2248 = vmatpush.msrb.mxu3 %v2205_v2  ;;  %v2207_v2 = vsel %vm342_vm1, %v3921_v22, %v3851_v41  ;;  %v3861_v28 = vunpack.i.h.bf16 %v5510_v62  ;;  %v3865_v4 = vunpack.i.l.bf16 %v5645_v5  ;;  %v2365_v50 = vsel %vm507_vm3, %v3886_v52, %v3871_v3 }
 0x37d   : > { %2268 = vmatpush.msra.mxu0 %v2201_v33  ;;  %v2203_v33 = vsel %vm342_vm1, %v3851_v41, %v3955_v1  ;;  %v5869_v41 = vpop.permute.xlu2 %3913  ;;  %v3941_v47 = vunpack.i.h.bf16 %v5779_v26  ;;  %v3885_v22 = vunpack.i.l.bf16 %v5775_v53  ;;  %v3896_v1 = vunpack.i.h.bf16 %v5670_v60 }
 0x37e   : > { %2229 = vmatpush.msrb.mxu2 %v2208_v51  ;;  %2249 = vmatpush.msrb.mxu3 %v2204_v31  ;;  %v2167_v62 = vsel %vm304_vm0, %v3875_v54, %v3861_v28  ;;  %v2166_v10 = vsel %vm304_vm0, %v3876_v40, %v3865_v4  ;;  %v2162_v12 = vsel %vm304_vm0, %v3865_v4, %v3866_v34  ;;  %v3940_v42 = vunpack.i.l.bf16 %v5779_v26 }
 0x37f   : > { %2269 = vmatpush.msra.mxu0 %v2200_v39  ;;  %v6280_v53 = vunpack.i.l.bf16 %v5672_v56  ;;  %v6281_v60 = vunpack.i.h.bf16 %v5672_v56  ;;  %v2366_v56 = vsel %vm507_vm3, %v3885_v22, %v3896_v1  ;;  %v3900_v4 = vunpack.i.l.bf16 %v5785_v20 }
 0x380   : > { %v5851_v19 = vpop.permute.xlu1 %3998  ;;  %2230 = vmatpush.msrb.mxu2 %v2207_v2  ;;  %2250 = vmatpush.msrb.mxu3 %v2203_v33  ;;  %v2374_v2 = vld [vmem:[%s6226_s2 + $0xa0] sm:$0xff]  ;;  %v2370_v33 = vsel %vm507_vm3, %v3940_v42, %v3885_v22 }
 0x381   : > { %2270 = vmatpush.msra.mxu0 %v2199_v44  ;;  %3271 = vmatmul.msk.f32.vlgmr.msrb.gmra.mxu3 %vm356_vm2, %v2211_v13  ;;  %v5904_v54 = vpop.permute.xlu0 %3983  ;;  %v2371_v26 = vsel %vm507_vm3, %v6281_v60, %v6280_v53  ;;  %v3931_v44 = vunpack.i.h.bf16 %v5771_v46  ;;  %v3950_v53 = vunpack.i.l.bf16 %v5777_v0  ;;  %v3975_v60 = vunpack.i.l.bf16 %v5849_v7 }
 0x382   : > { %2310 = vmatpush.msra.mxu2 %v5554_v17  ;;  %2330 = vmatpush.msra.mxu3 %v2165_v37  ;;  %v2168_v17 = vsel %vm304_vm0, %v3971_v38, %v3960_v25  ;;  %v2163_v38 = vsel %vm304_vm0, %v3861_v28, %v3970_v57  ;;  %v3891_v25 = vunpack.i.h.bf16 %v5781_v35  ;;  %v3930_v37 = vunpack.i.l.bf16 %v5771_v46 }
 0x383   : > { %2390 = vmatpush.msrb.mxu0 %v2373_v14  ;;  %3270 = vmatmul.msk.f32.vlgmr.msrb.gmra.mxu2 %vm356_vm2, %v2211_v13  ;;  %v3946_v14 = vunpack.i.h.bf16 %v5783_v32  ;;  %v3945_v46 = vunpack.i.l.bf16 %v5783_v32 }
 0x384   : > { %2311 = vmatpush.msra.mxu2 %v2168_v17  ;;  %2331 = vmatpush.msra.mxu3 %v2164_v61  ;;  %v2472_v17 = vsel %vm611_vm4, %v3880_v11, %v3891_v25  ;;  %v2468_v61 = vsel %vm611_vm4, %v3891_v25, %v3881_v45  ;;  %v3890_v11 = vunpack.i.l.bf16 %v5781_v35  ;;  %v3911_v45 = vunpack.i.h.bf16 %v5820_v23 }
 0x385   : > { %3272 = vmatmul.msk.f32.vlgmr.msra.gmra.mxu0 %vm356_vm2, %v2211_v13  ;;  %v5908_v5 = vpop.permute.xlu2 %3978  ;;  %v2474_v32 = vsel %vm611_vm4, %v3931_v44, %v3930_v37  ;;  %v2470_v35 = vsel %vm611_vm4, %v3930_v37, %v3900_v4  ;;  %v3915_v37 = vunpack.i.l.bf16 %v5869_v41 }
 0x386   : > { %2312 = vmatpush.msra.mxu2 %v2167_v62  ;;  %2332 = vmatpush.msra.mxu3 %v2163_v38 }
 0x388   : > { %2313 = vmatpush.msra.mxu2 %v2166_v10  ;;  %2333 = vmatpush.msra.mxu3 %v2162_v12  ;;  %v5900_v57 = vpop.permute.xlu1 %4013  ;;  %v3906_v12 = vunpack.i.h.bf16 %v5630_v43 }
 0x389   : > { %3275 = vmatmul.msk.f32.vlgmr.msra.gmra.mxu3 %vm356_vm2, %v5816_v58  ;;  %v5922_v31 = vpop.permute.xlu0 %3993 }
 0x38a   : > { %2430 = vmatpush.msrb.mxu2 %v2365_v50  ;;  %2493 = vmatpush.msrb.mxu3 %v2476_v24  ;;  %v3901_v50 = vunpack.i.h.bf16 %v5785_v20  ;;  %v2466_v20 = vsel %vm611_vm4, %v3900_v4, %v3931_v44  ;;  %v2638_v22 = vsel %vm782_vm6, %v3911_v45, %v3906_v12  ;;  %v3976_v44 = vunpack.i.h.bf16 %v5849_v7 }
 0x38b   : > { %3274 = vmatmul.msk.f32.vlgmr.msra.gmra.mxu2 %vm356_vm2, %v5816_v58 }
 0x38d   : > { %v5931_v39 = vpop.permute.xlu2 %3988 }
 0x390   : > { %v4029_v34 = vpop.permute.xlu1 %4028 }
 0x391   : > { %v4031_v52 = vunpack.i.h.bf16 %v4029_v34  ;;  %v4030_v40 = vunpack.i.l.bf16 %v4029_v34  ;;  %v5969_v24 = vpop.permute.xlu0 %4008  ;;  %v2473_v34 = vsel %vm611_vm4, %v3945_v46, %v3890_v11 }
 0x393   : > { %v2372_v3 = vsel %vm507_vm3, %v4031_v52, %v4030_v40  ;;  %v2368_v51 = vsel %vm507_vm3, %v4030_v40, %v3941_v47  ;;  %v2364_v58 = vsel %vm507_vm3, %v3941_v47, %v4031_v52  ;;  %v2477_v47 = vld [vmem:[%s6226_s2 + $0xa8] sm:$0xff]  ;;  %v3905_v52 = vunpack.i.l.bf16 %v5630_v43 }
 0x394   : > { %2391 = vmatpush.msrb.mxu0 %v2372_v3  ;;  %2411 = vmatpush.msrb.mxu1 %v2368_v51 }
 0x395   : > { %2431 = vmatpush.msrb.mxu2 %v2364_v58  ;;  %v5982_v40 = vpop.permute.xlu2 %4003  ;;  %v2465_v58 = vsel %vm611_vm4, %v3901_v50, %v3945_v46 }
 0x396   : > { %2392 = vmatpush.msrb.mxu0 %v2371_v26  ;;  %2412 = vmatpush.msrb.mxu1 %v5681_v29  ;;  %v2362_v29 = vsel %vm507_vm3, %v3896_v1, %v3940_v42  ;;  %v2469_v42 = vsel %vm611_vm4, %v3890_v11, %v3901_v50  ;;  %v2642_v26 = vsel %vm782_vm6, %v3905_v52, %v3911_v45  ;;  %v2647_v50 = vld [vmem:[%s6226_s2 + $0xb8] sm:$0xff] }
 0x397   : > { %2432 = vmatpush.msrb.mxu2 %v5687_v30 }
 0x398   : > { %v4034_v13 = vpop.permute.xlu1 %4033  ;;  %2393 = vmatpush.msrb.mxu0 %v2370_v33  ;;  %2413 = vmatpush.msrb.mxu1 %v2366_v56  ;;  %v3935_v33 = vunpack.i.l.bf16 %v5773_v8  ;;  %v3910_v56 = vunpack.i.l.bf16 %v5820_v23 }
 0x399   : > { %v4036_v28 = vunpack.i.h.bf16 %v4034_v13  ;;  %v4035_v30 = vunpack.i.l.bf16 %v4034_v13  ;;  %2433 = vmatpush.msrb.mxu2 %v2362_v29  ;;  %3276 = vmatmul.msk.f32.vlgmr.msrb.gmra.mxu0 %vm356_vm2, %v2374_v2  ;;  %v3936_v13 = vunpack.i.h.bf16 %v5773_v8  ;;  %v3916_v29 = vunpack.i.h.bf16 %v5869_v41 }
 0x39a   : > { %3277 = vmatmul.msk.f32.vlgmr.msrb.gmra.mxu1 %vm356_vm2, %v2374_v2  ;;  %3278 = vmatmul.msk.f32.vlgmr.msrb.gmra.mxu2 %vm356_vm2, %v2374_v2  ;;  %v2640_v23 = vsel %vm782_vm6, %v3910_v56, %v3975_v60  ;;  %v2636_v8 = vsel %vm782_vm6, %v3975_v60, %v3935_v33 }
 0x39b   : > { %2513 = vmatpush.msra.mxu0 %v2472_v17  ;;  %2533 = vmatpush.msra.mxu1 %v2468_v61  ;;  %v2475_v62 = vsel %vm611_vm4, %v4036_v28, %v4035_v30  ;;  %v2471_v38 = vsel %vm611_vm4, %v4035_v30, %v3946_v14  ;;  %v2467_v10 = vsel %vm611_vm4, %v3946_v14, %v4036_v28  ;;  %v3951_v14 = vunpack.i.h.bf16 %v5777_v0  ;;  %v6020_v30 = vpop.permute.xlu0 %4023 }
 0x39c   : > { %2561 = vmatpush.msra.mxu2 %v5715_v6  ;;  %2494 = vmatpush.msrb.mxu3 %v2475_v62  ;;  %v3995_v28 = vunpack.i.l.bf16 %v5922_v31  ;;  %v2646_v0 = vsel %vm782_vm6, %v3906_v12, %v3905_v52  ;;  %v2745_v41 = vsel %vm886_vm5, %v3915_v37, %v3916_v29  ;;  %v2639_v46 = vsel %vm782_vm6, %v3936_v13, %v3976_v44 }
 0x39d   : > { %2514 = vmatpush.msra.mxu0 %v2471_v38  ;;  %2534 = vmatpush.msra.mxu1 %v2467_v10  ;;  %v6034_v61 = vpop.permute.xlu2 %4018  ;;  %v2635_v62 = vsel %vm782_vm6, %v3976_v44, %v3951_v14  ;;  %v3986_v38 = vunpack.i.h.bf16 %v5904_v54  ;;  %v3985_v10 = vunpack.i.l.bf16 %v5904_v54  ;;  %v3996_v12 = vunpack.i.h.bf16 %v5922_v31 }
 0x39e   : > { %2562 = vmatpush.msra.mxu2 %v4843_v18  ;;  %2495 = vmatpush.msrb.mxu3 %v2474_v32  ;;  %v2741_v11 = vsel %vm886_vm5, %v3916_v29, %v3995_v28  ;;  %v2749_v45 = vsel %vm886_vm5, %v3995_v28, %v3915_v37  ;;  %v2644_v54 = vsel %vm782_vm6, %v3935_v33, %v3910_v56  ;;  %v4015_v32 = vunpack.i.l.bf16 %v5900_v57  ;;  %v2750_v33 = vld [vmem:[%s6226_s2 + $0xc0] sm:$0xff] }
 0x39f   : > { %2515 = vmatpush.msra.mxu0 %v2470_v35  ;;  %2535 = vmatpush.msra.mxu1 %v2466_v20  ;;  %v2643_v52 = vsel %vm782_vm6, %v3951_v14, %v3936_v13  ;;  %v4011_v13 = vunpack.i.h.bf16 %v5969_v24  ;;  %v4001_v14 = vunpack.i.h.bf16 %v5851_v19  ;;  %v4000_v28 = vunpack.i.l.bf16 %v5851_v19 }
 0x3a0   : > { %2563 = vmatpush.msra.mxu2 %v5658_v27  ;;  %v4039_v1 = vpop.permute.xlu1 %4038  ;;  %2496 = vmatpush.msrb.mxu3 %v2473_v34  ;;  %v2544_v27 = vld [vmem:[%s6226_s2 + $0xb0] sm:$0xff]  ;;  %v3981_v34 = vunpack.i.h.bf16 %v5908_v5 }
 0x3a1   : > { %v4041_v3 = vunpack.i.h.bf16 %v4039_v1  ;;  %v4040_v51 = vunpack.i.l.bf16 %v4039_v1  ;;  %2516 = vmatpush.msra.mxu0 %v2469_v42  ;;  %2536 = vmatpush.msra.mxu1 %v2465_v58  ;;  %v3990_v1 = vunpack.i.l.bf16 %v5931_v39  ;;  %v4016_v42 = vunpack.i.h.bf16 %v5900_v57 }
 0x3a2   : > { %2683 = vmatpush.msrb.mxu2 %v2638_v22  ;;  %3279 = vmatmul.msk.f32.vlgmr.msrb.gmra.mxu3 %vm356_vm2, %v2477_v47  ;;  %v3991_v22 = vunpack.i.h.bf16 %v5931_v39  ;;  %v2739_v57 = vsel %vm886_vm5, %v3986_v38, %v4015_v32  ;;  %v2747_v39 = vsel %vm886_vm5, %v4015_v32, %v3985_v10 }
 0x3a3   : > { %3280 = vmatmul.msk.f32.vlgmr.msra.gmra.mxu0 %vm356_vm2, %v2477_v47  ;;  %3281 = vmatmul.msk.f32.vlgmr.msra.gmra.mxu1 %vm356_vm2, %v2477_v47  ;;  %v2641_v25 = vsel %vm782_vm6, %v4040_v51, %v3950_v53  ;;  %v2637_v2 = vsel %vm782_vm6, %v3950_v53, %v4041_v3  ;;  %v2645_v43 = vsel %vm782_vm6, %v4041_v3, %v4040_v51  ;;  %v3980_v47 = vunpack.i.l.bf16 %v5908_v5  ;;  %v6077_v60 = vpop.permute.xlu0 %4063 }
 0x3a4   : > { %2581 = vmatpush.msra.mxu3 %v5691_v49  ;;  %2601 = vmatpush.msrb.mxu0 %v5705_v55  ;;  %v2743_v3 = vsel %vm886_vm5, %v3985_v10, %v3986_v38  ;;  %v4010_v5 = vunpack.i.l.bf16 %v5969_v24  ;;  %v2738_v29 = vsel %vm886_vm5, %v3991_v22, %v4016_v42  ;;  %v2746_v37 = vsel %vm886_vm5, %v4016_v42, %v3990_v1 }
 0x3a5   : > { %2663 = vmatpush.msrb.mxu1 %v2642_v26  ;;  %3282 = vmatmul.msk.f32.vlgmr.msra.gmra.mxu2 %vm356_vm2, %v2544_v27  ;;  %v2848_v58 = vsel %vm990_vm7, %v3980_v47, %v3981_v34  ;;  %v4020_v26 = vunpack.i.l.bf16 %v6034_v61  ;;  %v6092_v44 = vpop.permute.xlu2 %4058 }
 0x3a6   : > { %2582 = vmatpush.msra.mxu3 %v4846_v21  ;;  %2602 = vmatpush.msrb.mxu0 %v4883_v48  ;;  %v2852_v24 = vsel %vm990_vm7, %v4010_v5, %v3980_v47  ;;  %v4060_v32 = vunpack.i.l.bf16 %v6092_v44 }
 0x3a7   : > { %2664 = vmatpush.msrb.mxu1 %v2641_v25  ;;  %2684 = vmatpush.msrb.mxu2 %v2637_v2  ;;  %v4065_v25 = vunpack.i.l.bf16 %v6077_v60  ;;  %v2742_v2 = vsel %vm886_vm5, %v3990_v1, %v3991_v22 }
 0x3a8   : > { %2583 = vmatpush.msra.mxu3 %v5708_v63  ;;  %2603 = vmatpush.msrb.mxu0 %v5695_v36  ;;  %v4044_v7 = vpop.permute.xlu1 %4043 }
 0x3a9   : > { %2665 = vmatpush.msrb.mxu1 %v2640_v23  ;;  %2685 = vmatpush.msrb.mxu2 %v2636_v8  ;;  %v4046_v4 = vunpack.i.h.bf16 %v4044_v7  ;;  %v4045_v17 = vunpack.i.l.bf16 %v4044_v7  ;;  %v2844_v23 = vsel %vm990_vm7, %v3981_v34, %v4010_v5  ;;  %v4025_v8 = vunpack.i.l.bf16 %v6020_v30 }
 0x3aa   : > { %2703 = vmatpush.msrb.mxu3 %v2646_v0  ;;  %2766 = vmatpush.msra.mxu0 %v2745_v41  ;;  %v2951_v0 = vsel %vm1094_vm8, %v4065_v25, %v4020_v26  ;;  %v4006_v41 = vunpack.i.h.bf16 %v5982_v40 }
 0x3ab   : > { %2666 = vmatpush.msrb.mxu1 %v2639_v46  ;;  %2686 = vmatpush.msrb.mxu2 %v2635_v62  ;;  %v2744_v31 = vsel %vm886_vm5, %v4045_v17, %v4046_v4  ;;  %v2740_v35 = vsel %vm886_vm5, %v4046_v4, %v3996_v12  ;;  %v2748_v20 = vsel %vm886_vm5, %v3996_v12, %v4045_v17  ;;  %v4005_v4 = vunpack.i.l.bf16 %v5982_v40  ;;  %v2853_v12 = vld [vmem:[%s6226_s2 + $0xc8] sm:$0xff] }
 0x3ac   : > { %2704 = vmatpush.msrb.mxu3 %v2645_v43  ;;  %3284 = vmatmul.msk.f32.vlgmr.msrb.gmra.mxu0 %vm356_vm2, %v2544_v27  ;;  %v4021_v17 = vunpack.i.h.bf16 %v6034_v61  ;;  %v4026_v46 = vunpack.i.h.bf16 %v6020_v30  ;;  %v2846_v43 = vsel %vm990_vm7, %v4000_v28, %v4001_v14  ;;  %v2842_v38 = vsel %vm990_vm7, %v4001_v14, %v4025_v8 }
 0x3ad   : > { %3283 = vmatmul.msk.f32.vlgmr.msra.gmra.mxu3 %vm356_vm2, %v2544_v27  ;;  %2786 = vmatpush.msra.mxu1 %v2741_v11  ;;  %v2850_v40 = vsel %vm990_vm7, %v4025_v8, %v4000_v28  ;;  %v2845_v30 = vsel %vm990_vm7, %v4005_v4, %v4006_v41 }
 0x3ae   : > { %2806 = vmatpush.msra.mxu2 %v2749_v45  ;;  %2705 = vmatpush.msrb.mxu3 %v2644_v54  ;;  %v2841_v11 = vsel %vm990_vm7, %v4006_v41, %v4026_v46  ;;  %v2947_v45 = vsel %vm1094_vm8, %v4020_v26, %v4021_v17  ;;  %v2955_v54 = vsel %vm1094_vm8, %v4021_v17, %v4065_v25 }
 0x3af   : > { %3285 = vmatmul.msk.f32.vlgmr.msrb.gmra.mxu1 %vm356_vm2, %v2647_v50  ;;  %3286 = vmatmul.msk.f32.vlgmr.msrb.gmra.mxu2 %vm356_vm2, %v2647_v50 }
 0x3b0   : > { %2706 = vmatpush.msrb.mxu3 %v2643_v52  ;;  %2767 = vmatpush.msra.mxu0 %v2744_v31  ;;  %v4049_v51 = vpop.permute.xlu1 %4048  ;;  %v4061_v31 = vunpack.i.h.bf16 %v6092_v44  ;;  %v4066_v52 = vunpack.i.h.bf16 %v6077_v60 }
 0x3b1   : > { %2787 = vmatpush.msra.mxu1 %v2740_v35  ;;  %2807 = vmatpush.msra.mxu2 %v2748_v20  ;;  %v4051_v53 = vunpack.i.h.bf16 %v4049_v51  ;;  %v4050_v27 = vunpack.i.l.bf16 %v4049_v51  ;;  %v4074_v35 = vpop.permute.xlu2 %4073 }
 0x3b2   : > { %2869 = vmatpush.msra.mxu3 %v2848_v58  ;;  %2768 = vmatpush.msra.mxu0 %v2743_v3  ;;  %v4075_v47 = vunpack.i.l.bf16 %v4074_v35  ;;  %v2945_v42 = vsel %vm1094_vm8, %v4060_v32, %v4061_v31  ;;  %v2956_v58 = vld [vmem:[%s6226_s2 + $0xd0] sm:$0xff] }
 0x3b3   : > { %2788 = vmatpush.msra.mxu1 %v2739_v57  ;;  %2808 = vmatpush.msra.mxu2 %v2747_v39  ;;  %v2847_v56 = vsel %vm990_vm7, %v4050_v27, %v4051_v53  ;;  %v2843_v7 = vsel %vm990_vm7, %v4051_v53, %v4011_v13  ;;  %v2851_v19 = vsel %vm990_vm7, %v4011_v13, %v4050_v27  ;;  %v4076_v53 = vunpack.i.h.bf16 %v4074_v35 }
 0x3b4   : > { %2769 = vmatpush.msra.mxu0 %v2742_v2  ;;  %2870 = vmatpush.msra.mxu3 %v2847_v56  ;;  %v2949_v27 = vsel %vm1094_vm8, %v4075_v47, %v4060_v32  ;;  %v2953_v60 = vsel %vm1094_vm8, %v4061_v31, %v4075_v47 }
 0x3b5   : > { %2789 = vmatpush.msra.mxu1 %v2738_v29  ;;  %2809 = vmatpush.msra.mxu2 %v2746_v37  ;;  %v2948_v57 = vsel %vm1094_vm8, %v4076_v53, %v4066_v52 }
 0x3b6   : > { %3287 = vmatmul.msk.f32.vlgmr.msrb.gmra.mxu3 %vm356_vm2, %v2647_v50  ;;  %3288 = vmatmul.msk.f32.vlgmr.msra.gmra.mxu0 %vm356_vm2, %v2750_v33  ;;  %v2849_v50 = vsel %vm990_vm7, %v4026_v46, %v4005_v4 }
 0x3b7   : > { %2889 = vmatpush.msrb.mxu0 %v2844_v23  ;;  %2909 = vmatpush.msrb.mxu1 %v2852_v24 }
 0x3b8   : > { %3289 = vmatmul.msk.f32.vlgmr.msra.gmra.mxu1 %vm356_vm2, %v2750_v33  ;;  %3290 = vmatmul.msk.f32.vlgmr.msra.gmra.mxu2 %vm356_vm2, %v2750_v33  ;;  %v4054_v62 = vpop.permute.xlu1 %4053 }
 0x3b9   : > { %2890 = vmatpush.msrb.mxu0 %v2843_v7  ;;  %2910 = vmatpush.msrb.mxu1 %v2851_v19  ;;  %v4056_v61 = vunpack.i.h.bf16 %v4054_v62  ;;  %v4055_v10 = vunpack.i.l.bf16 %v4054_v62 }
 0x3ba   : > { %2871 = vmatpush.msra.mxu3 %v2846_v43  ;;  %2972 = vmatpush.msrb.mxu2 %v2951_v0 }
 0x3bb   : > { %2891 = vmatpush.msrb.mxu0 %v2842_v38  ;;  %2911 = vmatpush.msrb.mxu1 %v2850_v40  ;;  %v2946_v20 = vsel %vm1094_vm8, %v4055_v10, %v4056_v61 }
 0x3bc   : > { %2872 = vmatpush.msra.mxu3 %v2845_v30 }
 0x3bd   : > { %2892 = vmatpush.msrb.mxu0 %v2841_v11  ;;  %2912 = vmatpush.msrb.mxu1 %v2849_v50 }
 0x3be   : > { %3291 = vmatmul.msk.f32.vlgmr.msra.gmra.mxu3 %vm356_vm2, %v2853_v12  ;;  %3292 = vmatmul.msk.f32.vlgmr.msrb.gmra.mxu0 %vm356_vm2, %v2853_v12 }
 0x3bf   : > { %2992 = vmatpush.msrb.mxu3 %v2947_v45  ;;  %3012 = vmatpush.msra.mxu0 %v2955_v54 }
 0x3c0   : > { %3293 = vmatmul.msk.f32.vlgmr.msrb.gmra.mxu1 %vm356_vm2, %v2853_v12  ;;  %v4069_v34 = vpop.permute.xlu1 %4068  ;;  %v3060_v12 = vld [vmem:[%s6229_s5] sm:$0xff] }
 0x3c1   : > { %2993 = vmatpush.msrb.mxu3 %v2946_v20  ;;  %v4071_v22 = vunpack.i.h.bf16 %v4069_v34  ;;  %v4070_v1 = vunpack.i.l.bf16 %v4069_v34  ;;  %3063 = vperm.xlu1 %4077, %v3060_v12  }
 0x3c3   : > { %2994 = vmatpush.msrb.mxu3 %v2945_v42  ;;  %v2950_v3 = vsel %vm1094_vm8, %v4071_v22, %v4055_v10  ;;  %v2944_v51 = vsel %vm1094_vm8, %v4066_v52, %v4070_v1  ;;  %v2954_v5 = vsel %vm1094_vm8, %v4056_v61, %v4071_v22  ;;  %v2952_v39 = vsel %vm1094_vm8, %v4070_v1, %v4076_v53 }
 0x3c4   : > { %2973 = vmatpush.msrb.mxu2 %v2950_v3  ;;  %3013 = vmatpush.msra.mxu0 %v2954_v5  ;;  %v3027_v5 = vpop.permute.xlu0 %3026 }
 0x3c5   : > { %2995 = vmatpush.msrb.mxu3 %v2944_v51 }
 0x3c6   : > { %3295 = vmatmul.msk.f32.vlgmr.msrb.gmra.mxu3 %vm356_vm2, %v2956_v58  ;;  %2974 = vmatpush.msrb.mxu2 %v2949_v27 }
 0x3c7   : > { %3014 = vmatpush.msra.mxu0 %v2953_v60 }
 0x3c8   : > { %2975 = vmatpush.msrb.mxu2 %v2948_v57 }
 0x3c9   : > { %3015 = vmatpush.msra.mxu0 %v2952_v39  ;;  %3294 = vmatmul.msk.f32.vlgmr.msrb.gmra.mxu2 %vm356_vm2, %v2956_v58 }
 0x3ca   : > { %3296 = vmatmul.msk.f32.vlgmr.msra.gmra.mxu0 %vm356_vm2, %v2956_v58 }
 0x3f6   : > { %v2295_v2 = vpop.f32.mrf.mxu1 }
 0x402   : > { %v2272_v26 = vpop.f32.mrf.mxu0 }
 0x404   : > { %v2252_v33 = vpop.f32.mrf.mxu3 }
 0x406   : > { %v2232_v25 = vpop.f32.mrf.mxu2 }
 0x407   : > { %v2296_v46 = vadd.f32 %v2295_v2, %v2232_v25 }
 0x40c   : > { %v2335_v29 = vpop.f32.mrf.mxu3 }
 0x40d   : > { %v2336_v19 = vadd.f32 %v2335_v29, %v2272_v26 }
 0x40e   : > { %v2315_v44 = vpop.f32.mrf.mxu2 }
 0x40f   : > { %v2316_v4 = vadd.f32 %v2315_v44, %v2252_v33 }
 0x416   : > { %v2395_v56 = vpop.f32.mrf.mxu0 }
 0x417   : > { %v2415_v13 = vpop.f32.mrf.mxu1  ;;  %v2438_v30 = vadd.f32 %v2395_v56, %v2296_v46 }
 0x418   : > { %v2439_v38 = vadd.f32 %v2415_v13, %v2316_v4 }
 0x41d   : > { %v2435_v14 = vpop.f32.mrf.mxu2 }
 0x41e   : > { %v2440_v17 = vadd.f32 %v2435_v14, %v2336_v19 }
 0x420   : > { %v2518_v37 = vpop.f32.mrf.mxu0  ;;  %v2538_v23 = vpop.f32.mrf.mxu1 }
 0x421   : > { %v2543_v40 = vadd.f32 %v2538_v23, %v2440_v17  ;;  %v2542_v61 = vadd.f32 %v2518_v37, %v2439_v38 }
 0x425   : > { %v2498_v28 = vpop.f32.mrf.mxu3 }
 0x426   : > { %v2541_v45 = vadd.f32 %v2498_v28, %v2438_v30 }
 0x428   : > { %v2565_v8 = vpop.f32.mrf.mxu2 }
 0x429   : > { %v2605_v15 = vpop.f32.mrf.mxu0  ;;  %v2608_v34 = vadd.f32 %v2565_v8, %v2541_v45  ;;  %v4085_v8 = vld [vmem:[%s4254_s14 + $0x10] sm:$0xff] }
 0x42a   : > { %v2610_v10 = vadd.f32 %v2605_v15, %v2543_v40 }
 0x42c   : > { %v2668_v24 = vpop.f32.mrf.mxu1 }
 0x42d   : > { %v2711_v1 = vadd.f32 %v2668_v24, %v2608_v34 }
 0x430   : > { %v2585_v7 = vpop.f32.mrf.mxu3 }
 0x431   : > { %v2609_v11 = vadd.f32 %v2585_v7, %v2542_v61 }
 0x432   : > { %v2688_v0 = vpop.f32.mrf.mxu2 }
 0x433   : > { %v2771_v41 = vpop.f32.mrf.mxu0  ;;  %v2712_v35 = vadd.f32 %v2688_v0, %v2609_v11 }
 0x434   : > { %v2814_v58 = vadd.f32 %v2771_v41, %v2711_v1 }
 0x435   : > { %v2791_v62 = vpop.f32.mrf.mxu1 }
 0x436   : > { %v2815_v52 = vadd.f32 %v2791_v62, %v2712_v35 }
 0x439   : > { %v2708_v43 = vpop.f32.mrf.mxu3 }
 0x43a   : > { %v2713_v50 = vadd.f32 %v2708_v43, %v2610_v10 }
 0x43b   : > { %v2811_v54 = vpop.f32.mrf.mxu2  ;;  %v2894_v31 = vpop.f32.mrf.mxu0 }
 0x43c   : > { %v2816_v20 = vadd.f32 %v2811_v54, %v2713_v50  ;;  %v2918_v3 = vadd.f32 %v2894_v31, %v2815_v52 }
 0x43d   : > { %v2914_v47 = vpop.f32.mrf.mxu1 }
 0x43e   : > { %v2919_v22 = vadd.f32 %v2914_v47, %v2816_v20 }
 0x441   : > { %v2874_v32 = vpop.f32.mrf.mxu3 }
 0x442   : > { %v2917_v57 = vadd.f32 %v2874_v32, %v2814_v58 }
 0x447   : > { %v3017_v42 = vpop.f32.mrf.mxu0 }
 0x448   : > { %v3022_v51 = vadd.f32 %v3017_v42, %v2919_v22 }
 0x449   : > { %v2997_v53 = vpop.f32.mrf.mxu3 }
 0x44a   : > { %v3031_v27 = vadd.f32 %v3027_v5, %v3022_v51  ;;  %v3021_v60 = vadd.f32 %v2997_v53, %v2918_v3 }
 0x44c   : > { %vm3034_vm15 = vcmp.gt.f32.partialorder %v3031_v27, 0.0  ;;  %v3037_v39 = vmul.f32 0.1, %v3031_v27  ;;  %v3030_v26 = vadd.f32 %v3027_v5, %v3021_v60  ;;  %v2977_v25 = vpop.f32.mrf.mxu2 }
 0x44d   : > { %v3020_v2 = vadd.f32 %v2977_v25, %v2917_v57 }
 0x44e   : > { %v3040_v33 = vsel %vm3034_vm15, %v3031_v27, %v3037_v39  ;;  %vm3033_vm0 = vcmp.gt.f32.partialorder %v3030_v26, 0.0  ;;  %v3036_v56 = vmul.f32 0.1, %v3030_v26 }
 0x44f   : > { %v3029_v44 = vadd.f32 %v3027_v5, %v3020_v2  ;;  %v3043_v13 = vmul.f32 %v3040_v33, %v6277_v59  ;;  %v3059_v59 = vld [vmem:[%s6228_s4] sm:$0xff] }
 0x450   : > { %v3039_v29 = vsel %vm3033_vm0, %v3030_v26, %v3036_v56 }
 0x451   : > { %vm3032_vm1 = vcmp.gt.f32.partialorder %v3029_v44, 0.0  ;;  %v3035_v37 = vmul.f32 0.1, %v3029_v44  ;;  %3121 = vmatpush.msra.mxu3 %v3043_v13  ;;  %v3042_v14 = vmul.f32 %v3039_v29, %v4840_v16  ;;  %v4084_v16 = vld [vmem:[%s4254_s14] sm:$0xff]  ;;  %s4106_s14 = scalar_lea.hbm %s6230_s6, 48 }
 0x452   : > { %p4108_p1 = scmp.lt.s32.totalorder %s4106_s14, %s4102_s20 }
 0x453   : > { %v3038_v28 = vsel %vm3032_vm1, %v3029_v44, %v3035_v37  ;;  %3101 = vmatpush.msra.mxu2 %v3042_v14  ;;  %3122 = vmatpush.msra.mxu3 %v5705_v55 }
 0x454   : > { %v3041_v23 = vmul.f32 %v3038_v28, %v6278_v9  ;;  %p4109_p2 = por %p4108_p1, %p4107_p0 }
 0x455   : > { %3102 = vmatpush.msra.mxu2 %v5691_v49  ;;  %3123 = vmatpush.msra.mxu3 %v4883_v48 }
 0x456   : > { %3081 = vmatpush.msra.mxu1 %v3041_v23  ;;  %p4110_p3 = pnand %p4109_p2, %p4105_p13 }
 0x457   : > { %3103 = vmatpush.msra.mxu2 %v4846_v21  ;;  %3124 = vmatpush.msra.mxu3 %v5695_v36  ;;  %v3064_v21 = vpop.permute.xlu1 %3063 }
 0x458   : > { %3082 = vmatpush.msra.mxu1 %v5715_v6  ;;  %3299 = vmatmul.msk.f32.vlgmr.msra.gmra.mxu3 %vm356_vm2, %v3059_v59 }
 0x459   : > { %3104 = vmatpush.msra.mxu2 %v5708_v63 }
 0x45a   : > { %3083 = vmatpush.msra.mxu1 %v4843_v18  ;;  %3298 = vmatmul.msk.f32.vlgmr.msra.gmra.mxu2 %vm356_vm2, %v3059_v59 }
 0x45c   : > { %3084 = vmatpush.msra.mxu1 %v4084_v16 }
 0x45d   : > { %3297 = vmatmul.msk.f32.vlgmr.msra.gmra.mxu1 %vm356_vm2, %v3059_v59 }
 0x4da   : > { %v3086_v48 = vpop.f32.mrf.mxu1 }
 0x4db   : > { %v3087_v49 = vadd.f32 %v3086_v48, %v3064_v21  ;;  %v3126_v36 = vpop.f32.mrf.mxu3 }
 0x4dc   : > { %v3127_v55 = vadd.f32 %v3126_v36, %v3064_v21 }
 0x4dd   : > { %v3129_v18 = vadd.f32 %v4084_v16, %v3087_v49  ;;  %v3106_v9 = vpop.f32.mrf.mxu2 }
 0x4de   : > { %v3107_v6 = vadd.f32 %v3106_v9, %v3064_v21  ;;  %v3131_v15 = vadd.f32 %v4085_v8, %v3127_v55 }
 0x4df   : > { %3132 = vst [vmem:[%s244_s16] sm:$0xff] %v3129_v18 }
 0x4e0   : > { %v3130_v24 = vadd.f32 %v5708_v63, %v3107_v6  ;;  %3134 = vst [vmem:[%s244_s16 + $0x10] sm:$0xff] %v3131_v15 }
 0x4e2   : > { %3133 = vst [vmem:[%s244_s16 + $0x8] sm:$0xff] %v3130_v24 }
 0x4e3   : > { %4113 = shalt.err (!%p4110_p3)
}
 0x4e4   : > { %3306 = dma.vmem_to_hbm [thread:$0]  (%p4233_p5), %s3150_s17, 384, %s3152_s18, %s3136_s25  }
 0x4e5 PF: > { %p3312_p4 = scmp.ge.s32.totalorder %s4148_s24, 2  ;;  %s3163_s9 = sand.u32 1, %s4136_s21  }
 0x4e6   : > { %s3164_s12 = scalar_lea.sflag [#allocation4], %s3163_s9 }
 0x4e7   : > { %p3309_p7 = pnand %p3312_p4, %p4237_p6 }
 0x4e9   : > { %p3310_p8 = pneg %p3309_p7 }
 0x4eb   : > { %4131 = dma.done.wait (%p3310_p8), %s3164_s12, 384  }
 0x4ec   : > { %4133 = vsyncadd (%p3310_p8), %s3164_s12, 4294966912  ;;  %p16_p9 = scmp.ge.s32.totalorder %s4220_s27, 4   ;;  %s6282_s21 = smov %s4140_s22 }
 0x4ed   : > { %s6283_s22 = smov %s4144_s23  ;;  %s6284_s23 = smov %s4231_s30 }
 0x4ee   : > { %s6285_s24 = smov %s4220_s27  ;;  %18 = sbr.rel (!%p16_p9) target bundleno = 3 (0x3), region = 79 }
 0x4f3   :  { %3170 = vsyncpa [#allocation4], 1 }
 0x4f4   :  { %3172 = vsyncpa [#allocation4 + $0x1], 1 }

</bundles_post_ra>
